<compile_context>
chip_gen: v7x
topology: tpu7x:2x2x1
jax: 0.10.0
libtpu: 0.0.40
codegen_flags: <defaults>
</compile_context>

<pallas_src>
import functools

import jax
import jax.numpy as jnp
from jax.experimental import pallas as pl
from jax.experimental.pallas import tpu as pltpu  # noqa: F401  (TPU backend target)

# ------------------------- small, self-consistent config -------------------------
D_MODEL = 32          # d_model == args.word_dim
NHEAD = 4
HEAD_DIM = D_MODEL // NHEAD
NUM_LAYERS = 2        # num_encoder_layers (kept small)
DIM_FF = 64           # dim_feedforward
SEQ = 8               # args.word_max_len
BATCH = 2             # args.batch_size
VOCAB = 50            # len(vocab)
HIDDEN = 32           # args.hidden_size
CLASSES = 3           # args.classes
EPS = 1e-5
SD = SEQ * D_MODEL    # flattened per-sentence feature size
NSENT = 2 * BATCH     # src + target sentences processed in one block
NTOK = NSENT * SEQ    # rows of the fused activation matrix (32)


# ------------------------------- kernel helpers ----------------------------------
def _layernorm(x, gamma, beta):
    mu = jnp.mean(x, axis=-1, keepdims=True)
    var = jnp.mean((x - mu) ** 2, axis=-1, keepdims=True)
    return (x - mu) * jax.lax.rsqrt(var + EPS) * gamma + beta


def _split_heads(t):
    """(NTOK, D) -> (NHEAD*NSENT, SEQ, HEAD_DIM), head-major batch axis.

    Only lane slices + tile-aligned leading reshapes + leading-axis concat are used
    (all layout-trivial on TPU) so the two attention einsums run batched over
    heads * sentences with a single softmax.
    """
    parts = [
        t[:, h * HEAD_DIM:(h + 1) * HEAD_DIM].reshape(NSENT, SEQ, HEAD_DIM)
        for h in range(NHEAD)
    ]
    return jnp.concatenate(parts, axis=0)


def _merge_heads(o):
    """(NHEAD*NSENT, SEQ, HEAD_DIM) -> (NTOK, D): inverse of _split_heads."""
    return jnp.concatenate(
        [o[h * NSENT:(h + 1) * NSENT].reshape(NTOK, HEAD_DIM) for h in range(NHEAD)],
        axis=-1)


# ------------------------ single fused forward-pass kernel -----------------------
def fused_kernel(tok_ref, emb_ref,
                 wqkv_ref, bqkv_ref, wo_ref, bo_ref,
                 g1_ref, be1_ref, g2_ref, be2_ref,
                 wf1_ref, bf1_ref, wf2_ref, bf2_ref,
                 gln_ref, bln_ref,
                 w1_ref, b1_ref, w2_ref, b2_ref, w3_ref, b3_ref,
                 o_ref):
    # ---- embedding gather as a one-hot matmul (keeps the gather on the MXU) ----
    tok = tok_ref[...]                                                   # (NTOK, 1) i32
    lane = jax.lax.broadcasted_iota(jnp.int32, (NTOK, VOCAB), 1)
    onehot = (tok == lane).astype(jnp.float32)                            # (NTOK, VOCAB)
    x = jnp.dot(onehot, emb_ref[...], preferred_element_type=jnp.float32)  # (NTOK, D)

    # ---- post-norm encoder layers, statically unrolled ----
    for l in range(NUM_LAYERS):
        # Fused QKV projection (1/sqrt(head_dim) already folded into the Q block).
        qkv = jnp.dot(x.astype(jnp.bfloat16), wqkv_ref[l],
                      preferred_element_type=jnp.float32) + bqkv_ref[l]   # (NTOK, 3D)
        q = qkv[:, :D_MODEL]
        k = qkv[:, D_MODEL:2 * D_MODEL]
        v = qkv[:, 2 * D_MODEL:]

        qh = _split_heads(q).astype(jnp.bfloat16)      # (NHEAD*NSENT, SEQ, HEAD_DIM)
        kh = _split_heads(k).astype(jnp.bfloat16)
        vh = _split_heads(v).astype(jnp.bfloat16)

        s = jnp.einsum("bqd,bkd->bqk", qh, kh,
                       preferred_element_type=jnp.float32)                # (HB, S, S)
        s = s - jnp.max(s, axis=-1, keepdims=True)
        p = jnp.exp(s)
        p = p * pl.reciprocal(jnp.sum(p, axis=-1, keepdims=True), approx=True)
        o = jnp.einsum("bqk,bkd->bqd", p.astype(jnp.bfloat16), vh,
                       preferred_element_type=jnp.float32)                # (HB, S, Hd)
        attn = _merge_heads(o)                                            # (NTOK, D)
        attn = jnp.dot(attn.astype(jnp.bfloat16), wo_ref[l],
                       preferred_element_type=jnp.float32) + bo_ref[l]
        x = _layernorm(x + attn, g1_ref[l], be1_ref[l])                   # post-norm 1

        h1 = jnp.maximum(
            jnp.dot(x.astype(jnp.bfloat16), wf1_ref[l],
                    preferred_element_type=jnp.float32) + bf1_ref[l], 0.0)
        ff = jnp.dot(h1.astype(jnp.bfloat16), wf2_ref[l],
                     preferred_element_type=jnp.float32) + bf2_ref[l]
        x = _layernorm(x + ff, g2_ref[l], be2_ref[l])                     # post-norm 2

    x = _layernorm(x, gln_ref[...], bln_ref[...])                         # encoder norm

    # ---- flatten (NSENT, SEQ, D) -> (NSENT, SEQ*D) via lane-concat (in vregs) ----
    x3 = x.reshape(NSENT, SEQ, D_MODEL)
    flat = jnp.concatenate([x3[:, s_, :] for s_ in range(SEQ)], axis=-1)  # (NSENT, SD)
    prem = flat[:BATCH]
    hypo = flat[BATCH:]

    # ---- classifier head ----
    feat = jnp.concatenate([prem, hypo, jnp.abs(prem - hypo), prem * hypo], axis=-1)
    z1 = jnp.maximum(
        jnp.dot(feat.astype(jnp.bfloat16), w1_ref[...],
                preferred_element_type=jnp.float32) + b1_ref[...], 0.0)
    z2 = jnp.maximum(
        jnp.dot(z1.astype(jnp.bfloat16), w2_ref[...],
                preferred_element_type=jnp.float32) + b2_ref[...], 0.0)
    out = jnp.dot(z2.astype(jnp.bfloat16), w3_ref[...],
                  preferred_element_type=jnp.float32) + b3_ref[...]
    o_ref[...] = out.astype(o_ref.dtype)


def pallas_forward(src_tok, tgt_tok, kp):
    """Full forward: one pallas_call, grid=().  Returns (BATCH, CLASSES) logits."""
    tok = jnp.concatenate([src_tok.reshape(-1), tgt_tok.reshape(-1)]).reshape(NTOK, 1)
    hd = kp["head"]
    return pl.pallas_call(
        fused_kernel,
        out_shape=jax.ShapeDtypeStruct((BATCH, CLASSES), jnp.float32),
    )(tok.astype(jnp.int32), kp["embedding"],
      kp["wqkv"], kp["bqkv"], kp["wo"], kp["bo"],
      kp["g1"], kp["be1"], kp["g2"], kp["be2"],
      kp["wf1"], kp["bf1"], kp["wf2"], kp["bf2"],
      kp["enc_g"], kp["enc_b"],
      hd["w1"], hd["b1"], hd["w2"], hd["b2"], hd["w3"], hd["b3"])


# ---------------------------------- parameters ------------------------------------
def init_params(key):
    keys = iter(jax.random.split(key, 64))

    def nrm(shape, scale=0.05):
        return jax.random.normal(next(keys), shape, jnp.float32) * scale

    params = {"embedding": nrm((VOCAB, D_MODEL), 0.1), "layers": []}
    for _ in range(NUM_LAYERS):
        params["layers"].append(dict(
            wq=nrm((D_MODEL, D_MODEL)), wk=nrm((D_MODEL, D_MODEL)), wv=nrm((D_MODEL, D_MODEL)),
            bq=nrm((1, D_MODEL), 0.02), bk=nrm((1, D_MODEL), 0.02), bv=nrm((1, D_MODEL), 0.02),
            wo=nrm((D_MODEL, D_MODEL)), bo=nrm((1, D_MODEL), 0.02),
            g1=jnp.ones((1, D_MODEL), jnp.float32), be1=jnp.zeros((1, D_MODEL), jnp.float32),
            g2=jnp.ones((1, D_MODEL), jnp.float32), be2=jnp.zeros((1, D_MODEL), jnp.float32),
            wf1=nrm((D_MODEL, DIM_FF)), bf1=nrm((1, DIM_FF), 0.02),
            wf2=nrm((DIM_FF, D_MODEL)), bf2=nrm((1, D_MODEL), 0.02),
        ))
    params["enc_norm_g"] = jnp.ones((1, D_MODEL), jnp.float32)
    params["enc_norm_b"] = jnp.zeros((1, D_MODEL), jnp.float32)

    params["head"] = dict(
        w1=nrm((4 * SD, 2 * HIDDEN), 0.02), b1=nrm((1, 2 * HIDDEN), 0.02),
        w2=nrm((2 * HIDDEN, HIDDEN)), b2=nrm((1, HIDDEN), 0.02),
        w3=nrm((HIDDEN, CLASSES)), b3=nrm((1, CLASSES), 0.02),
    )
    return params


def prepare_kernel_params(params):
    """One-time transform for the fused kernel: stack per-layer weights on a leading
    (NUM_LAYERS,) axis, fuse Wq/Wk/Wv, fold the 1/sqrt(head_dim) attention scale into
    the Q columns/bias, and store matmul weights in bfloat16 (biases / LN params f32).
    The embedding table stays f32 so the one-hot lookup is exact."""
    scale = 1.0 / (HEAD_DIM ** 0.5)
    ls = params["layers"]

    def stack(fn, dtype=jnp.float32):
        return jnp.stack([fn(lp) for lp in ls]).astype(dtype)

    hd = params["head"]
    return dict(
        embedding=params["embedding"],
        wqkv=stack(lambda lp: jnp.concatenate(
            [lp["wq"] * scale, lp["wk"], lp["wv"]], axis=1), jnp.bfloat16),  # (L, D, 3D)
        bqkv=stack(lambda lp: jnp.concatenate(
            [lp["bq"] * scale, lp["bk"], lp["bv"]], axis=1)),                # (L, 1, 3D)
        wo=stack(lambda lp: lp["wo"], jnp.bfloat16), bo=stack(lambda lp: lp["bo"]),
        g1=stack(lambda lp: lp["g1"]), be1=stack(lambda lp: lp["be1"]),
        g2=stack(lambda lp: lp["g2"]), be2=stack(lambda lp: lp["be2"]),
        wf1=stack(lambda lp: lp["wf1"], jnp.bfloat16), bf1=stack(lambda lp: lp["bf1"]),
        wf2=stack(lambda lp: lp["wf2"], jnp.bfloat16), bf2=stack(lambda lp: lp["bf2"]),
        enc_g=params["enc_norm_g"], enc_b=params["enc_norm_b"],
        head=dict(
            w1=hd["w1"].astype(jnp.bfloat16), b1=hd["b1"],
            w2=hd["w2"].astype(jnp.bfloat16), b2=hd["b2"],
            w3=hd["w3"].astype(jnp.bfloat16), b3=hd["b3"]),
    )


# ----------------------------- pure-JAX reference ---------------------------------
_dot = functools.partial(jnp.dot, precision=jax.lax.Precision.HIGHEST)


def _ref_ln(x, g, b):
    mu = x.mean(-1, keepdims=True)
    var = ((x - mu) ** 2).mean(-1, keepdims=True)
    return (x - mu) / jnp.sqrt(var + EPS) * g + b


def _ref_layer(x, p):
    B, S, D = x.shape
    q = _dot(x, p["wq"]) + p["bq"]
    k = _dot(x, p["wk"]) + p["bk"]
    v = _dot(x, p["wv"]) + p["bv"]
    qh = q.reshape(B, S, NHEAD, HEAD_DIM).transpose(0, 2, 1, 3)
    kh = k.reshape(B, S, NHEAD, HEAD_DIM).transpose(0, 2, 1, 3)
    vh = v.reshape(B, S, NHEAD, HEAD_DIM).transpose(0, 2, 1, 3)
    s = jnp.einsum("bhqd,bhkd->bhqk", qh, kh,
                   precision=jax.lax.Precision.HIGHEST) / jnp.sqrt(HEAD_DIM)
    a = jax.nn.softmax(s, axis=-1)
    o = jnp.einsum("bhqk,bhkd->bhqd", a, vh,
                   precision=jax.lax.Precision.HIGHEST).transpose(0, 2, 1, 3).reshape(B, S, D)
    x = _ref_ln(x + _dot(o, p["wo"]) + p["bo"], p["g1"], p["be1"])
    ff = _dot(jnp.maximum(_dot(x, p["wf1"]) + p["bf1"], 0.0), p["wf2"]) + p["bf2"]
    return _ref_ln(x + ff, p["g2"], p["be2"])


def ref_forward(src_tok, tgt_tok, params):
    emb = params["embedding"]

    def encode(tok):
        x = emb[tok]
        for lp in params["layers"]:
            x = _ref_layer(x, lp)
        return _ref_ln(x, params["enc_norm_g"], params["enc_norm_b"])

    p = encode(src_tok).reshape(BATCH, SD)
    h = encode(tgt_tok).reshape(BATCH, SD)
    hd = params["head"]
    feat = jnp.concatenate([p, h, jnp.abs(p - h), p * h], axis=1)
    z1 = jnp.maximum(_dot(feat, hd["w1"]) + hd["b1"], 0.0)
    z2 = jnp.maximum(_dot(z1, hd["w2"]) + hd["b2"], 0.0)
    return _dot(z2, hd["w3"]) + hd["b3"]


# ------------------------------------- main ----------------------------------------
if __name__ == "__main__":
    key = jax.random.PRNGKey(0)
    k_par, k_src, k_tgt = jax.random.split(key, 3)
    params = init_params(k_par)
    kernel_params = prepare_kernel_params(params)      # one-time weight transform
    src_tok = jax.random.randint(k_src, (BATCH, SEQ), 0, VOCAB, dtype=jnp.int32)
    tgt_tok = jax.random.randint(k_tgt, (BATCH, SEQ), 0, VOCAB, dtype=jnp.int32)

    out = jax.jit(pallas_forward)(src_tok, tgt_tok, kernel_params)
    out = jax.block_until_ready(out)

    ref = ref_forward(src_tok, tgt_tok, params)
    assert out.shape == (BATCH, CLASSES), out.shape
    assert bool(jnp.all(jnp.isfinite(out)))
    max_err = float(jnp.max(jnp.abs(out - ref)))
    # bf16 MXU operands + approx reciprocal vs f32 reference -> allow 3e-2 abs.
    assert max_err < 3e-2, f"mismatch vs reference: {max_err}"

    print("KERNEL_OK")
</pallas_src>

<mosaic_0001>
module attributes {stable_mosaic.version = 11 : i64} {
  func.func @fused_kernel(%arg0: memref<32x1xi32, #tpu.memory_space<vmem>>, %arg1: memref<50x32xf32, #tpu.memory_space<vmem>>, %arg2: memref<2x32x96xbf16, #tpu.memory_space<vmem>>, %arg3: memref<2x1x96xf32, #tpu.memory_space<vmem>>, %arg4: memref<2x32x32xbf16, #tpu.memory_space<vmem>>, %arg5: memref<2x1x32xf32, #tpu.memory_space<vmem>>, %arg6: memref<2x1x32xf32, #tpu.memory_space<vmem>>, %arg7: memref<2x1x32xf32, #tpu.memory_space<vmem>>, %arg8: memref<2x1x32xf32, #tpu.memory_space<vmem>>, %arg9: memref<2x1x32xf32, #tpu.memory_space<vmem>>, %arg10: memref<2x32x64xbf16, #tpu.memory_space<vmem>>, %arg11: memref<2x1x64xf32, #tpu.memory_space<vmem>>, %arg12: memref<2x64x32xbf16, #tpu.memory_space<vmem>>, %arg13: memref<2x1x32xf32, #tpu.memory_space<vmem>>, %arg14: memref<1x32xf32, #tpu.memory_space<vmem>>, %arg15: memref<1x32xf32, #tpu.memory_space<vmem>>, %arg16: memref<1024x64xbf16, #tpu.memory_space<vmem>>, %arg17: memref<1x64xf32, #tpu.memory_space<vmem>>, %arg18: memref<64x32xbf16, #tpu.memory_space<vmem>>, %arg19: memref<1x32xf32, #tpu.memory_space<vmem>>, %arg20: memref<32x3xbf16, #tpu.memory_space<vmem>>, %arg21: memref<1x3xf32, #tpu.memory_space<vmem>>, %arg22: memref<2x3xf32, #tpu.memory_space<vmem>>) attributes {dimension_semantics = [], scalar_prefetch = 0 : i64, scratch_operands = 0 : i64, tpu.core_type = #tpu.core_type<tc>} {
    %c0 = arith.constant 0 : index
    %c0_0 = arith.constant 0 : index
    %0 = vector.load %arg0[%c0, %c0_0] : memref<32x1xi32, #tpu.memory_space<vmem>>, vector<32x1xi32>
    %1 = tpu.iota {dimensions = array<i32: 1>} : vector<32x50xi32>
    %2 = vector.broadcast %0 : vector<32x1xi32> to vector<32x50xi32>
    %3 = arith.cmpi eq, %2, %1 : vector<32x50xi32>
    %4 = arith.extui %3 : vector<32x50xi1> to vector<32x50xi32>
    %5 = arith.sitofp %4 : vector<32x50xi32> to vector<32x50xf32>
    %c0_1 = arith.constant 0 : index
    %c0_2 = arith.constant 0 : index
    %6 = vector.load %arg1[%c0_1, %c0_2] : memref<50x32xf32, #tpu.memory_space<vmem>>, vector<50x32xf32>
    %cst = arith.constant dense<0.000000e+00> : vector<32x32xf32>
    %7 = tpu.matmul %5, %6, %cst {dimension_numbers = #tpu.dot_dimension_numbers<[1], [0], [0], [1], [0, 0, 1, 1], [], []>} : vector<32x50xf32>, vector<50x32xf32>, vector<32x32xf32> -> vector<32x32xf32>
    %8 = arith.truncf %7 : vector<32x32xf32> to vector<32x32xbf16>
    %c0_3 = arith.constant 0 : index
    %c0_4 = arith.constant 0 : index
    %c0_5 = arith.constant 0 : index
    %9 = vector.load %arg2[%c0_3, %c0_4, %c0_5] : memref<2x32x96xbf16, #tpu.memory_space<vmem>>, vector<1x32x96xbf16>
    %10 = vector.shape_cast %9 : vector<1x32x96xbf16> to vector<32x96xbf16>
    %cst_6 = arith.constant dense<0.000000e+00> : vector<32x96xf32>
    %11 = tpu.matmul %8, %10, %cst_6 {dimension_numbers = #tpu.dot_dimension_numbers<[1], [0], [0], [1], [0, 0, 1, 1], [], []>} : vector<32x32xbf16>, vector<32x96xbf16>, vector<32x96xf32> -> vector<32x96xf32>
    %c0_7 = arith.constant 0 : index
    %c0_8 = arith.constant 0 : index
    %c0_9 = arith.constant 0 : index
    %12 = vector.load %arg3[%c0_7, %c0_8, %c0_9] : memref<2x1x96xf32, #tpu.memory_space<vmem>>, vector<1x1x96xf32>
    %13 = vector.shape_cast %12 : vector<1x1x96xf32> to vector<1x96xf32>
    %14 = vector.broadcast %13 : vector<1x96xf32> to vector<32x96xf32>
    %15 = arith.addf %11, %14 : vector<32x96xf32>
    %16 = vector.extract_strided_slice %15 {offsets = [0, 0], sizes = [32, 32], strides = [1, 1]} : vector<32x96xf32> to vector<32x32xf32>
    %17 = vector.extract_strided_slice %15 {offsets = [0, 32], sizes = [32, 32], strides = [1, 1]} : vector<32x96xf32> to vector<32x32xf32>
    %18 = vector.extract_strided_slice %15 {offsets = [0, 64], sizes = [32, 32], strides = [1, 1]} : vector<32x96xf32> to vector<32x32xf32>
    %19 = vector.extract_strided_slice %16 {offsets = [0, 0], sizes = [32, 8], strides = [1, 1]} : vector<32x32xf32> to vector<32x8xf32>
    %20 = vector.shape_cast %19 : vector<32x8xf32> to vector<4x8x8xf32>
    %21 = vector.extract_strided_slice %16 {offsets = [0, 8], sizes = [32, 8], strides = [1, 1]} : vector<32x32xf32> to vector<32x8xf32>
    %22 = vector.shape_cast %21 : vector<32x8xf32> to vector<4x8x8xf32>
    %23 = vector.extract_strided_slice %16 {offsets = [0, 16], sizes = [32, 8], strides = [1, 1]} : vector<32x32xf32> to vector<32x8xf32>
    %24 = vector.shape_cast %23 : vector<32x8xf32> to vector<4x8x8xf32>
    %25 = vector.extract_strided_slice %16 {offsets = [0, 24], sizes = [32, 8], strides = [1, 1]} : vector<32x32xf32> to vector<32x8xf32>
    %26 = vector.shape_cast %25 : vector<32x8xf32> to vector<4x8x8xf32>
    %27 = tpu.concatenate %20, %22, %24, %26 in 0 : vector<4x8x8xf32>, vector<4x8x8xf32>, vector<4x8x8xf32>, vector<4x8x8xf32> -> vector<16x8x8xf32>
    %28 = arith.truncf %27 : vector<16x8x8xf32> to vector<16x8x8xbf16>
    %29 = vector.extract_strided_slice %17 {offsets = [0, 0], sizes = [32, 8], strides = [1, 1]} : vector<32x32xf32> to vector<32x8xf32>
    %30 = vector.shape_cast %29 : vector<32x8xf32> to vector<4x8x8xf32>
    %31 = vector.extract_strided_slice %17 {offsets = [0, 8], sizes = [32, 8], strides = [1, 1]} : vector<32x32xf32> to vector<32x8xf32>
    %32 = vector.shape_cast %31 : vector<32x8xf32> to vector<4x8x8xf32>
    %33 = vector.extract_strided_slice %17 {offsets = [0, 16], sizes = [32, 8], strides = [1, 1]} : vector<32x32xf32> to vector<32x8xf32>
    %34 = vector.shape_cast %33 : vector<32x8xf32> to vector<4x8x8xf32>
    %35 = vector.extract_strided_slice %17 {offsets = [0, 24], sizes = [32, 8], strides = [1, 1]} : vector<32x32xf32> to vector<32x8xf32>
    %36 = vector.shape_cast %35 : vector<32x8xf32> to vector<4x8x8xf32>
    %37 = tpu.concatenate %30, %32, %34, %36 in 0 : vector<4x8x8xf32>, vector<4x8x8xf32>, vector<4x8x8xf32>, vector<4x8x8xf32> -> vector<16x8x8xf32>
    %38 = arith.truncf %37 : vector<16x8x8xf32> to vector<16x8x8xbf16>
    %39 = vector.extract_strided_slice %18 {offsets = [0, 0], sizes = [32, 8], strides = [1, 1]} : vector<32x32xf32> to vector<32x8xf32>
    %40 = vector.shape_cast %39 : vector<32x8xf32> to vector<4x8x8xf32>
    %41 = vector.extract_strided_slice %18 {offsets = [0, 8], sizes = [32, 8], strides = [1, 1]} : vector<32x32xf32> to vector<32x8xf32>
    %42 = vector.shape_cast %41 : vector<32x8xf32> to vector<4x8x8xf32>
    %43 = vector.extract_strided_slice %18 {offsets = [0, 16], sizes = [32, 8], strides = [1, 1]} : vector<32x32xf32> to vector<32x8xf32>
    %44 = vector.shape_cast %43 : vector<32x8xf32> to vector<4x8x8xf32>
    %45 = vector.extract_strided_slice %18 {offsets = [0, 24], sizes = [32, 8], strides = [1, 1]} : vector<32x32xf32> to vector<32x8xf32>
    %46 = vector.shape_cast %45 : vector<32x8xf32> to vector<4x8x8xf32>
    %47 = tpu.concatenate %40, %42, %44, %46 in 0 : vector<4x8x8xf32>, vector<4x8x8xf32>, vector<4x8x8xf32>, vector<4x8x8xf32> -> vector<16x8x8xf32>
    %48 = arith.truncf %47 : vector<16x8x8xf32> to vector<16x8x8xbf16>
    "tpu.trace_start"() <{level = 10 : i32, message = "bqd,bkd->bqk"}> : () -> ()
    %cst_10 = arith.constant dense<0.000000e+00> : vector<16x8x8xf32>
    %49 = tpu.matmul %28, %38, %cst_10 {dimension_numbers = #tpu.dot_dimension_numbers<[2], [2], [1], [1], [0, 0, 0, 1, 1, 1], [0], [0]>} : vector<16x8x8xbf16>, vector<16x8x8xbf16>, vector<16x8x8xf32> -> vector<16x8x8xf32>
    "tpu.trace_stop"() : () -> ()
    %cst_11 = arith.constant dense<0xFF800000> : vector<16x8xf32>
    %50 = vector.multi_reduction <maximumf>, %49, %cst_11 [2] : vector<16x8x8xf32> to vector<16x8xf32>
    %51 = vector.shape_cast %50 : vector<16x8xf32> to vector<16x8x1xf32>
    %52 = vector.broadcast %51 : vector<16x8x1xf32> to vector<16x8x8xf32>
    %53 = arith.subf %49, %52 : vector<16x8x8xf32>
    %54 = math.exp %53 : vector<16x8x8xf32>
    %cst_12 = arith.constant dense<0.000000e+00> : vector<16x8xf32>
    %55 = vector.multi_reduction <add>, %54, %cst_12 [2] : vector<16x8x8xf32> to vector<16x8xf32>
    %56 = vector.shape_cast %55 : vector<16x8xf32> to vector<16x8x1xf32>
    %57 = tpu.reciprocal %56 {approx = true} : vector<16x8x1xf32> -> vector<16x8x1xf32>
    %58 = vector.broadcast %57 : vector<16x8x1xf32> to vector<16x8x8xf32>
    %59 = arith.mulf %54, %58 : vector<16x8x8xf32>
    %60 = arith.truncf %59 : vector<16x8x8xf32> to vector<16x8x8xbf16>
    "tpu.trace_start"() <{level = 10 : i32, message = "bqk,bkd->bqd"}> : () -> ()
    %cst_13 = arith.constant dense<0.000000e+00> : vector<16x8x8xf32>
    %61 = tpu.matmul %60, %48, %cst_13 {dimension_numbers = #tpu.dot_dimension_numbers<[2], [1], [1], [2], [0, 0, 0, 1, 1, 2], [0], [0]>} : vector<16x8x8xbf16>, vector<16x8x8xbf16>, vector<16x8x8xf32> -> vector<16x8x8xf32>
    "tpu.trace_stop"() : () -> ()
    %62 = vector.extract_strided_slice %61 {offsets = [0, 0, 0], sizes = [4, 8, 8], strides = [1, 1, 1]} : vector<16x8x8xf32> to vector<4x8x8xf32>
    %63 = vector.shape_cast %62 : vector<4x8x8xf32> to vector<32x8xf32>
    %64 = vector.extract_strided_slice %61 {offsets = [4, 0, 0], sizes = [4, 8, 8], strides = [1, 1, 1]} : vector<16x8x8xf32> to vector<4x8x8xf32>
    %65 = vector.shape_cast %64 : vector<4x8x8xf32> to vector<32x8xf32>
    %66 = vector.extract_strided_slice %61 {offsets = [8, 0, 0], sizes = [4, 8, 8], strides = [1, 1, 1]} : vector<16x8x8xf32> to vector<4x8x8xf32>
    %67 = vector.shape_cast %66 : vector<4x8x8xf32> to vector<32x8xf32>
    %68 = vector.extract_strided_slice %61 {offsets = [12, 0, 0], sizes = [4, 8, 8], strides = [1, 1, 1]} : vector<16x8x8xf32> to vector<4x8x8xf32>
    %69 = vector.shape_cast %68 : vector<4x8x8xf32> to vector<32x8xf32>
    %70 = tpu.concatenate %63, %65, %67, %69 in 1 : vector<32x8xf32>, vector<32x8xf32>, vector<32x8xf32>, vector<32x8xf32> -> vector<32x32xf32>
    %71 = arith.truncf %70 : vector<32x32xf32> to vector<32x32xbf16>
    %c0_14 = arith.constant 0 : index
    %c0_15 = arith.constant 0 : index
    %c0_16 = arith.constant 0 : index
    %72 = vector.load %arg4[%c0_14, %c0_15, %c0_16] : memref<2x32x32xbf16, #tpu.memory_space<vmem>>, vector<1x32x32xbf16>
    %73 = vector.shape_cast %72 : vector<1x32x32xbf16> to vector<32x32xbf16>
    %cst_17 = arith.constant dense<0.000000e+00> : vector<32x32xf32>
    %74 = tpu.matmul %71, %73, %cst_17 {dimension_numbers = #tpu.dot_dimension_numbers<[1], [0], [0], [1], [0, 0, 1, 1], [], []>} : vector<32x32xbf16>, vector<32x32xbf16>, vector<32x32xf32> -> vector<32x32xf32>
    %c0_18 = arith.constant 0 : index
    %c0_19 = arith.constant 0 : index
    %c0_20 = arith.constant 0 : index
    %75 = vector.load %arg5[%c0_18, %c0_19, %c0_20] : memref<2x1x32xf32, #tpu.memory_space<vmem>>, vector<1x1x32xf32>
    %76 = vector.shape_cast %75 : vector<1x1x32xf32> to vector<1x32xf32>
    %77 = vector.broadcast %76 : vector<1x32xf32> to vector<32x32xf32>
    %78 = arith.addf %74, %77 : vector<32x32xf32>
    %79 = arith.addf %7, %78 : vector<32x32xf32>
    %c0_21 = arith.constant 0 : index
    %c0_22 = arith.constant 0 : index
    %c0_23 = arith.constant 0 : index
    %80 = vector.load %arg6[%c0_21, %c0_22, %c0_23] : memref<2x1x32xf32, #tpu.memory_space<vmem>>, vector<1x1x32xf32>
    %81 = vector.shape_cast %80 : vector<1x1x32xf32> to vector<1x32xf32>
    %c0_24 = arith.constant 0 : index
    %c0_25 = arith.constant 0 : index
    %c0_26 = arith.constant 0 : index
    %82 = vector.load %arg7[%c0_24, %c0_25, %c0_26] : memref<2x1x32xf32, #tpu.memory_space<vmem>>, vector<1x1x32xf32>
    %83 = vector.shape_cast %82 : vector<1x1x32xf32> to vector<1x32xf32>
    %cst_27 = arith.constant dense<0.000000e+00> : vector<32xf32>
    %84 = vector.multi_reduction <add>, %79, %cst_27 [1] : vector<32x32xf32> to vector<32xf32>
    %85 = vector.shape_cast %84 : vector<32xf32> to vector<32x1xf32>
    %cst_28 = arith.constant 3.200000e+01 : f32
    %86 = vector.broadcast %cst_28 : f32 to vector<32x1xf32>
    %87 = arith.divf %85, %86 : vector<32x1xf32>
    %88 = vector.broadcast %87 : vector<32x1xf32> to vector<32x32xf32>
    %89 = arith.subf %79, %88 : vector<32x32xf32>
    %90 = arith.mulf %89, %89 : vector<32x32xf32>
    %cst_29 = arith.constant dense<0.000000e+00> : vector<32xf32>
    %91 = vector.multi_reduction <add>, %90, %cst_29 [1] : vector<32x32xf32> to vector<32xf32>
    %92 = vector.shape_cast %91 : vector<32xf32> to vector<32x1xf32>
    %cst_30 = arith.constant 3.200000e+01 : f32
    %93 = vector.broadcast %cst_30 : f32 to vector<32x1xf32>
    %94 = arith.divf %92, %93 : vector<32x1xf32>
    %95 = vector.broadcast %87 : vector<32x1xf32> to vector<32x32xf32>
    %96 = arith.subf %79, %95 : vector<32x32xf32>
    %cst_31 = arith.constant 9.99999974E-6 : f32
    %97 = vector.broadcast %cst_31 : f32 to vector<32x1xf32>
    %98 = arith.addf %94, %97 : vector<32x1xf32>
    %99 = math.rsqrt %98 : vector<32x1xf32>
    %100 = vector.broadcast %99 : vector<32x1xf32> to vector<32x32xf32>
    %101 = arith.mulf %96, %100 : vector<32x32xf32>
    %102 = vector.broadcast %81 : vector<1x32xf32> to vector<32x32xf32>
    %103 = arith.mulf %101, %102 : vector<32x32xf32>
    %104 = vector.broadcast %83 : vector<1x32xf32> to vector<32x32xf32>
    %105 = arith.addf %103, %104 : vector<32x32xf32>
    %106 = arith.truncf %105 : vector<32x32xf32> to vector<32x32xbf16>
    %c0_32 = arith.constant 0 : index
    %c0_33 = arith.constant 0 : index
    %c0_34 = arith.constant 0 : index
    %107 = vector.load %arg10[%c0_32, %c0_33, %c0_34] : memref<2x32x64xbf16, #tpu.memory_space<vmem>>, vector<1x32x64xbf16>
    %108 = vector.shape_cast %107 : vector<1x32x64xbf16> to vector<32x64xbf16>
    %cst_35 = arith.constant dense<0.000000e+00> : vector<32x64xf32>
    %109 = tpu.matmul %106, %108, %cst_35 {dimension_numbers = #tpu.dot_dimension_numbers<[1], [0], [0], [1], [0, 0, 1, 1], [], []>} : vector<32x32xbf16>, vector<32x64xbf16>, vector<32x64xf32> -> vector<32x64xf32>
    %c0_36 = arith.constant 0 : index
    %c0_37 = arith.constant 0 : index
    %c0_38 = arith.constant 0 : index
    %110 = vector.load %arg11[%c0_36, %c0_37, %c0_38] : memref<2x1x64xf32, #tpu.memory_space<vmem>>, vector<1x1x64xf32>
    %111 = vector.shape_cast %110 : vector<1x1x64xf32> to vector<1x64xf32>
    %112 = vector.broadcast %111 : vector<1x64xf32> to vector<32x64xf32>
    %113 = arith.addf %109, %112 : vector<32x64xf32>
    %cst_39 = arith.constant 0.000000e+00 : f32
    %114 = vector.broadcast %cst_39 : f32 to vector<32x64xf32>
    %115 = arith.maximumf %113, %114 : vector<32x64xf32>
    %116 = arith.truncf %115 : vector<32x64xf32> to vector<32x64xbf16>
    %c0_40 = arith.constant 0 : index
    %c0_41 = arith.constant 0 : index
    %c0_42 = arith.constant 0 : index
    %117 = vector.load %arg12[%c0_40, %c0_41, %c0_42] : memref<2x64x32xbf16, #tpu.memory_space<vmem>>, vector<1x64x32xbf16>
    %118 = vector.shape_cast %117 : vector<1x64x32xbf16> to vector<64x32xbf16>
    %cst_43 = arith.constant dense<0.000000e+00> : vector<32x32xf32>
    %119 = tpu.matmul %116, %118, %cst_43 {dimension_numbers = #tpu.dot_dimension_numbers<[1], [0], [0], [1], [0, 0, 1, 1], [], []>} : vector<32x64xbf16>, vector<64x32xbf16>, vector<32x32xf32> -> vector<32x32xf32>
    %c0_44 = arith.constant 0 : index
    %c0_45 = arith.constant 0 : index
    %c0_46 = arith.constant 0 : index
    %120 = vector.load %arg13[%c0_44, %c0_45, %c0_46] : memref<2x1x32xf32, #tpu.memory_space<vmem>>, vector<1x1x32xf32>
    %121 = vector.shape_cast %120 : vector<1x1x32xf32> to vector<1x32xf32>
    %122 = vector.broadcast %121 : vector<1x32xf32> to vector<32x32xf32>
    %123 = arith.addf %119, %122 : vector<32x32xf32>
    %124 = arith.addf %105, %123 : vector<32x32xf32>
    %c0_47 = arith.constant 0 : index
    %c0_48 = arith.constant 0 : index
    %c0_49 = arith.constant 0 : index
    %125 = vector.load %arg8[%c0_47, %c0_48, %c0_49] : memref<2x1x32xf32, #tpu.memory_space<vmem>>, vector<1x1x32xf32>
    %126 = vector.shape_cast %125 : vector<1x1x32xf32> to vector<1x32xf32>
    %c0_50 = arith.constant 0 : index
    %c0_51 = arith.constant 0 : index
    %c0_52 = arith.constant 0 : index
    %127 = vector.load %arg9[%c0_50, %c0_51, %c0_52] : memref<2x1x32xf32, #tpu.memory_space<vmem>>, vector<1x1x32xf32>
    %128 = vector.shape_cast %127 : vector<1x1x32xf32> to vector<1x32xf32>
    %cst_53 = arith.constant dense<0.000000e+00> : vector<32xf32>
    %129 = vector.multi_reduction <add>, %124, %cst_53 [1] : vector<32x32xf32> to vector<32xf32>
    %130 = vector.shape_cast %129 : vector<32xf32> to vector<32x1xf32>
    %cst_54 = arith.constant 3.200000e+01 : f32
    %131 = vector.broadcast %cst_54 : f32 to vector<32x1xf32>
    %132 = arith.divf %130, %131 : vector<32x1xf32>
    %133 = vector.broadcast %132 : vector<32x1xf32> to vector<32x32xf32>
    %134 = arith.subf %124, %133 : vector<32x32xf32>
    %135 = arith.mulf %134, %134 : vector<32x32xf32>
    %cst_55 = arith.constant dense<0.000000e+00> : vector<32xf32>
    %136 = vector.multi_reduction <add>, %135, %cst_55 [1] : vector<32x32xf32> to vector<32xf32>
    %137 = vector.shape_cast %136 : vector<32xf32> to vector<32x1xf32>
    %cst_56 = arith.constant 3.200000e+01 : f32
    %138 = vector.broadcast %cst_56 : f32 to vector<32x1xf32>
    %139 = arith.divf %137, %138 : vector<32x1xf32>
    %140 = vector.broadcast %132 : vector<32x1xf32> to vector<32x32xf32>
    %141 = arith.subf %124, %140 : vector<32x32xf32>
    %cst_57 = arith.constant 9.99999974E-6 : f32
    %142 = vector.broadcast %cst_57 : f32 to vector<32x1xf32>
    %143 = arith.addf %139, %142 : vector<32x1xf32>
    %144 = math.rsqrt %143 : vector<32x1xf32>
    %145 = vector.broadcast %144 : vector<32x1xf32> to vector<32x32xf32>
    %146 = arith.mulf %141, %145 : vector<32x32xf32>
    %147 = vector.broadcast %126 : vector<1x32xf32> to vector<32x32xf32>
    %148 = arith.mulf %146, %147 : vector<32x32xf32>
    %149 = vector.broadcast %128 : vector<1x32xf32> to vector<32x32xf32>
    %150 = arith.addf %148, %149 : vector<32x32xf32>
    %151 = arith.truncf %150 : vector<32x32xf32> to vector<32x32xbf16>
    %c1 = arith.constant 1 : index
    %c0_58 = arith.constant 0 : index
    %c0_59 = arith.constant 0 : index
    %152 = vector.load %arg2[%c1, %c0_58, %c0_59] : memref<2x32x96xbf16, #tpu.memory_space<vmem>>, vector<1x32x96xbf16>
    %153 = vector.shape_cast %152 : vector<1x32x96xbf16> to vector<32x96xbf16>
    %cst_60 = arith.constant dense<0.000000e+00> : vector<32x96xf32>
    %154 = tpu.matmul %151, %153, %cst_60 {dimension_numbers = #tpu.dot_dimension_numbers<[1], [0], [0], [1], [0, 0, 1, 1], [], []>} : vector<32x32xbf16>, vector<32x96xbf16>, vector<32x96xf32> -> vector<32x96xf32>
    %c1_61 = arith.constant 1 : index
    %c0_62 = arith.constant 0 : index
    %c0_63 = arith.constant 0 : index
    %155 = vector.load %arg3[%c1_61, %c0_62, %c0_63] : memref<2x1x96xf32, #tpu.memory_space<vmem>>, vector<1x1x96xf32>
    %156 = vector.shape_cast %155 : vector<1x1x96xf32> to vector<1x96xf32>
    %157 = vector.broadcast %156 : vector<1x96xf32> to vector<32x96xf32>
    %158 = arith.addf %154, %157 : vector<32x96xf32>
    %159 = vector.extract_strided_slice %158 {offsets = [0, 0], sizes = [32, 32], strides = [1, 1]} : vector<32x96xf32> to vector<32x32xf32>
    %160 = vector.extract_strided_slice %158 {offsets = [0, 32], sizes = [32, 32], strides = [1, 1]} : vector<32x96xf32> to vector<32x32xf32>
    %161 = vector.extract_strided_slice %158 {offsets = [0, 64], sizes = [32, 32], strides = [1, 1]} : vector<32x96xf32> to vector<32x32xf32>
    %162 = vector.extract_strided_slice %159 {offsets = [0, 0], sizes = [32, 8], strides = [1, 1]} : vector<32x32xf32> to vector<32x8xf32>
    %163 = vector.shape_cast %162 : vector<32x8xf32> to vector<4x8x8xf32>
    %164 = vector.extract_strided_slice %159 {offsets = [0, 8], sizes = [32, 8], strides = [1, 1]} : vector<32x32xf32> to vector<32x8xf32>
    %165 = vector.shape_cast %164 : vector<32x8xf32> to vector<4x8x8xf32>
    %166 = vector.extract_strided_slice %159 {offsets = [0, 16], sizes = [32, 8], strides = [1, 1]} : vector<32x32xf32> to vector<32x8xf32>
    %167 = vector.shape_cast %166 : vector<32x8xf32> to vector<4x8x8xf32>
    %168 = vector.extract_strided_slice %159 {offsets = [0, 24], sizes = [32, 8], strides = [1, 1]} : vector<32x32xf32> to vector<32x8xf32>
    %169 = vector.shape_cast %168 : vector<32x8xf32> to vector<4x8x8xf32>
    %170 = tpu.concatenate %163, %165, %167, %169 in 0 : vector<4x8x8xf32>, vector<4x8x8xf32>, vector<4x8x8xf32>, vector<4x8x8xf32> -> vector<16x8x8xf32>
    %171 = arith.truncf %170 : vector<16x8x8xf32> to vector<16x8x8xbf16>
    %172 = vector.extract_strided_slice %160 {offsets = [0, 0], sizes = [32, 8], strides = [1, 1]} : vector<32x32xf32> to vector<32x8xf32>
    %173 = vector.shape_cast %172 : vector<32x8xf32> to vector<4x8x8xf32>
    %174 = vector.extract_strided_slice %160 {offsets = [0, 8], sizes = [32, 8], strides = [1, 1]} : vector<32x32xf32> to vector<32x8xf32>
    %175 = vector.shape_cast %174 : vector<32x8xf32> to vector<4x8x8xf32>
    %176 = vector.extract_strided_slice %160 {offsets = [0, 16], sizes = [32, 8], strides = [1, 1]} : vector<32x32xf32> to vector<32x8xf32>
    %177 = vector.shape_cast %176 : vector<32x8xf32> to vector<4x8x8xf32>
    %178 = vector.extract_strided_slice %160 {offsets = [0, 24], sizes = [32, 8], strides = [1, 1]} : vector<32x32xf32> to vector<32x8xf32>
    %179 = vector.shape_cast %178 : vector<32x8xf32> to vector<4x8x8xf32>
    %180 = tpu.concatenate %173, %175, %177, %179 in 0 : vector<4x8x8xf32>, vector<4x8x8xf32>, vector<4x8x8xf32>, vector<4x8x8xf32> -> vector<16x8x8xf32>
    %181 = arith.truncf %180 : vector<16x8x8xf32> to vector<16x8x8xbf16>
    %182 = vector.extract_strided_slice %161 {offsets = [0, 0], sizes = [32, 8], strides = [1, 1]} : vector<32x32xf32> to vector<32x8xf32>
    %183 = vector.shape_cast %182 : vector<32x8xf32> to vector<4x8x8xf32>
    %184 = vector.extract_strided_slice %161 {offsets = [0, 8], sizes = [32, 8], strides = [1, 1]} : vector<32x32xf32> to vector<32x8xf32>
    %185 = vector.shape_cast %184 : vector<32x8xf32> to vector<4x8x8xf32>
    %186 = vector.extract_strided_slice %161 {offsets = [0, 16], sizes = [32, 8], strides = [1, 1]} : vector<32x32xf32> to vector<32x8xf32>
    %187 = vector.shape_cast %186 : vector<32x8xf32> to vector<4x8x8xf32>
    %188 = vector.extract_strided_slice %161 {offsets = [0, 24], sizes = [32, 8], strides = [1, 1]} : vector<32x32xf32> to vector<32x8xf32>
    %189 = vector.shape_cast %188 : vector<32x8xf32> to vector<4x8x8xf32>
    %190 = tpu.concatenate %183, %185, %187, %189 in 0 : vector<4x8x8xf32>, vector<4x8x8xf32>, vector<4x8x8xf32>, vector<4x8x8xf32> -> vector<16x8x8xf32>
    %191 = arith.truncf %190 : vector<16x8x8xf32> to vector<16x8x8xbf16>
    "tpu.trace_start"() <{level = 10 : i32, message = "bqd,bkd->bqk"}> : () -> ()
    %cst_64 = arith.constant dense<0.000000e+00> : vector<16x8x8xf32>
    %192 = tpu.matmul %171, %181, %cst_64 {dimension_numbers = #tpu.dot_dimension_numbers<[2], [2], [1], [1], [0, 0, 0, 1, 1, 1], [0], [0]>} : vector<16x8x8xbf16>, vector<16x8x8xbf16>, vector<16x8x8xf32> -> vector<16x8x8xf32>
    "tpu.trace_stop"() : () -> ()
    %cst_65 = arith.constant dense<0xFF800000> : vector<16x8xf32>
    %193 = vector.multi_reduction <maximumf>, %192, %cst_65 [2] : vector<16x8x8xf32> to vector<16x8xf32>
    %194 = vector.shape_cast %193 : vector<16x8xf32> to vector<16x8x1xf32>
    %195 = vector.broadcast %194 : vector<16x8x1xf32> to vector<16x8x8xf32>
    %196 = arith.subf %192, %195 : vector<16x8x8xf32>
    %197 = math.exp %196 : vector<16x8x8xf32>
    %cst_66 = arith.constant dense<0.000000e+00> : vector<16x8xf32>
    %198 = vector.multi_reduction <add>, %197, %cst_66 [2] : vector<16x8x8xf32> to vector<16x8xf32>
    %199 = vector.shape_cast %198 : vector<16x8xf32> to vector<16x8x1xf32>
    %200 = tpu.reciprocal %199 {approx = true} : vector<16x8x1xf32> -> vector<16x8x1xf32>
    %201 = vector.broadcast %200 : vector<16x8x1xf32> to vector<16x8x8xf32>
    %202 = arith.mulf %197, %201 : vector<16x8x8xf32>
    %203 = arith.truncf %202 : vector<16x8x8xf32> to vector<16x8x8xbf16>
    "tpu.trace_start"() <{level = 10 : i32, message = "bqk,bkd->bqd"}> : () -> ()
    %cst_67 = arith.constant dense<0.000000e+00> : vector<16x8x8xf32>
    %204 = tpu.matmul %203, %191, %cst_67 {dimension_numbers = #tpu.dot_dimension_numbers<[2], [1], [1], [2], [0, 0, 0, 1, 1, 2], [0], [0]>} : vector<16x8x8xbf16>, vector<16x8x8xbf16>, vector<16x8x8xf32> -> vector<16x8x8xf32>
    "tpu.trace_stop"() : () -> ()
    %205 = vector.extract_strided_slice %204 {offsets = [0, 0, 0], sizes = [4, 8, 8], strides = [1, 1, 1]} : vector<16x8x8xf32> to vector<4x8x8xf32>
    %206 = vector.shape_cast %205 : vector<4x8x8xf32> to vector<32x8xf32>
    %207 = vector.extract_strided_slice %204 {offsets = [4, 0, 0], sizes = [4, 8, 8], strides = [1, 1, 1]} : vector<16x8x8xf32> to vector<4x8x8xf32>
    %208 = vector.shape_cast %207 : vector<4x8x8xf32> to vector<32x8xf32>
    %209 = vector.extract_strided_slice %204 {offsets = [8, 0, 0], sizes = [4, 8, 8], strides = [1, 1, 1]} : vector<16x8x8xf32> to vector<4x8x8xf32>
    %210 = vector.shape_cast %209 : vector<4x8x8xf32> to vector<32x8xf32>
    %211 = vector.extract_strided_slice %204 {offsets = [12, 0, 0], sizes = [4, 8, 8], strides = [1, 1, 1]} : vector<16x8x8xf32> to vector<4x8x8xf32>
    %212 = vector.shape_cast %211 : vector<4x8x8xf32> to vector<32x8xf32>
    %213 = tpu.concatenate %206, %208, %210, %212 in 1 : vector<32x8xf32>, vector<32x8xf32>, vector<32x8xf32>, vector<32x8xf32> -> vector<32x32xf32>
    %214 = arith.truncf %213 : vector<32x32xf32> to vector<32x32xbf16>
    %c1_68 = arith.constant 1 : index
    %c0_69 = arith.constant 0 : index
    %c0_70 = arith.constant 0 : index
    %215 = vector.load %arg4[%c1_68, %c0_69, %c0_70] : memref<2x32x32xbf16, #tpu.memory_space<vmem>>, vector<1x32x32xbf16>
    %216 = vector.shape_cast %215 : vector<1x32x32xbf16> to vector<32x32xbf16>
    %cst_71 = arith.constant dense<0.000000e+00> : vector<32x32xf32>
    %217 = tpu.matmul %214, %216, %cst_71 {dimension_numbers = #tpu.dot_dimension_numbers<[1], [0], [0], [1], [0, 0, 1, 1], [], []>} : vector<32x32xbf16>, vector<32x32xbf16>, vector<32x32xf32> -> vector<32x32xf32>
    %c1_72 = arith.constant 1 : index
    %c0_73 = arith.constant 0 : index
    %c0_74 = arith.constant 0 : index
    %218 = vector.load %arg5[%c1_72, %c0_73, %c0_74] : memref<2x1x32xf32, #tpu.memory_space<vmem>>, vector<1x1x32xf32>
    %219 = vector.shape_cast %218 : vector<1x1x32xf32> to vector<1x32xf32>
    %220 = vector.broadcast %219 : vector<1x32xf32> to vector<32x32xf32>
    %221 = arith.addf %217, %220 : vector<32x32xf32>
    %222 = arith.addf %150, %221 : vector<32x32xf32>
    %c1_75 = arith.constant 1 : index
    %c0_76 = arith.constant 0 : index
    %c0_77 = arith.constant 0 : index
    %223 = vector.load %arg6[%c1_75, %c0_76, %c0_77] : memref<2x1x32xf32, #tpu.memory_space<vmem>>, vector<1x1x32xf32>
    %224 = vector.shape_cast %223 : vector<1x1x32xf32> to vector<1x32xf32>
    %c1_78 = arith.constant 1 : index
    %c0_79 = arith.constant 0 : index
    %c0_80 = arith.constant 0 : index
    %225 = vector.load %arg7[%c1_78, %c0_79, %c0_80] : memref<2x1x32xf32, #tpu.memory_space<vmem>>, vector<1x1x32xf32>
    %226 = vector.shape_cast %225 : vector<1x1x32xf32> to vector<1x32xf32>
    %cst_81 = arith.constant dense<0.000000e+00> : vector<32xf32>
    %227 = vector.multi_reduction <add>, %222, %cst_81 [1] : vector<32x32xf32> to vector<32xf32>
    %228 = vector.shape_cast %227 : vector<32xf32> to vector<32x1xf32>
    %cst_82 = arith.constant 3.200000e+01 : f32
    %229 = vector.broadcast %cst_82 : f32 to vector<32x1xf32>
    %230 = arith.divf %228, %229 : vector<32x1xf32>
    %231 = vector.broadcast %230 : vector<32x1xf32> to vector<32x32xf32>
    %232 = arith.subf %222, %231 : vector<32x32xf32>
    %233 = arith.mulf %232, %232 : vector<32x32xf32>
    %cst_83 = arith.constant dense<0.000000e+00> : vector<32xf32>
    %234 = vector.multi_reduction <add>, %233, %cst_83 [1] : vector<32x32xf32> to vector<32xf32>
    %235 = vector.shape_cast %234 : vector<32xf32> to vector<32x1xf32>
    %cst_84 = arith.constant 3.200000e+01 : f32
    %236 = vector.broadcast %cst_84 : f32 to vector<32x1xf32>
    %237 = arith.divf %235, %236 : vector<32x1xf32>
    %238 = vector.broadcast %230 : vector<32x1xf32> to vector<32x32xf32>
    %239 = arith.subf %222, %238 : vector<32x32xf32>
    %cst_85 = arith.constant 9.99999974E-6 : f32
    %240 = vector.broadcast %cst_85 : f32 to vector<32x1xf32>
    %241 = arith.addf %237, %240 : vector<32x1xf32>
    %242 = math.rsqrt %241 : vector<32x1xf32>
    %243 = vector.broadcast %242 : vector<32x1xf32> to vector<32x32xf32>
    %244 = arith.mulf %239, %243 : vector<32x32xf32>
    %245 = vector.broadcast %224 : vector<1x32xf32> to vector<32x32xf32>
    %246 = arith.mulf %244, %245 : vector<32x32xf32>
    %247 = vector.broadcast %226 : vector<1x32xf32> to vector<32x32xf32>
    %248 = arith.addf %246, %247 : vector<32x32xf32>
    %249 = arith.truncf %248 : vector<32x32xf32> to vector<32x32xbf16>
    %c1_86 = arith.constant 1 : index
    %c0_87 = arith.constant 0 : index
    %c0_88 = arith.constant 0 : index
    %250 = vector.load %arg10[%c1_86, %c0_87, %c0_88] : memref<2x32x64xbf16, #tpu.memory_space<vmem>>, vector<1x32x64xbf16>
    %251 = vector.shape_cast %250 : vector<1x32x64xbf16> to vector<32x64xbf16>
    %cst_89 = arith.constant dense<0.000000e+00> : vector<32x64xf32>
    %252 = tpu.matmul %249, %251, %cst_89 {dimension_numbers = #tpu.dot_dimension_numbers<[1], [0], [0], [1], [0, 0, 1, 1], [], []>} : vector<32x32xbf16>, vector<32x64xbf16>, vector<32x64xf32> -> vector<32x64xf32>
    %c1_90 = arith.constant 1 : index
    %c0_91 = arith.constant 0 : index
    %c0_92 = arith.constant 0 : index
    %253 = vector.load %arg11[%c1_90, %c0_91, %c0_92] : memref<2x1x64xf32, #tpu.memory_space<vmem>>, vector<1x1x64xf32>
    %254 = vector.shape_cast %253 : vector<1x1x64xf32> to vector<1x64xf32>
    %255 = vector.broadcast %254 : vector<1x64xf32> to vector<32x64xf32>
    %256 = arith.addf %252, %255 : vector<32x64xf32>
    %cst_93 = arith.constant 0.000000e+00 : f32
    %257 = vector.broadcast %cst_93 : f32 to vector<32x64xf32>
    %258 = arith.maximumf %256, %257 : vector<32x64xf32>
    %259 = arith.truncf %258 : vector<32x64xf32> to vector<32x64xbf16>
    %c1_94 = arith.constant 1 : index
    %c0_95 = arith.constant 0 : index
    %c0_96 = arith.constant 0 : index
    %260 = vector.load %arg12[%c1_94, %c0_95, %c0_96] : memref<2x64x32xbf16, #tpu.memory_space<vmem>>, vector<1x64x32xbf16>
    %261 = vector.shape_cast %260 : vector<1x64x32xbf16> to vector<64x32xbf16>
    %cst_97 = arith.constant dense<0.000000e+00> : vector<32x32xf32>
    %262 = tpu.matmul %259, %261, %cst_97 {dimension_numbers = #tpu.dot_dimension_numbers<[1], [0], [0], [1], [0, 0, 1, 1], [], []>} : vector<32x64xbf16>, vector<64x32xbf16>, vector<32x32xf32> -> vector<32x32xf32>
    %c1_98 = arith.constant 1 : index
    %c0_99 = arith.constant 0 : index
    %c0_100 = arith.constant 0 : index
    %263 = vector.load %arg13[%c1_98, %c0_99, %c0_100] : memref<2x1x32xf32, #tpu.memory_space<vmem>>, vector<1x1x32xf32>
    %264 = vector.shape_cast %263 : vector<1x1x32xf32> to vector<1x32xf32>
    %265 = vector.broadcast %264 : vector<1x32xf32> to vector<32x32xf32>
    %266 = arith.addf %262, %265 : vector<32x32xf32>
    %267 = arith.addf %248, %266 : vector<32x32xf32>
    %c1_101 = arith.constant 1 : index
    %c0_102 = arith.constant 0 : index
    %c0_103 = arith.constant 0 : index
    %268 = vector.load %arg8[%c1_101, %c0_102, %c0_103] : memref<2x1x32xf32, #tpu.memory_space<vmem>>, vector<1x1x32xf32>
    %269 = vector.shape_cast %268 : vector<1x1x32xf32> to vector<1x32xf32>
    %c1_104 = arith.constant 1 : index
    %c0_105 = arith.constant 0 : index
    %c0_106 = arith.constant 0 : index
    %270 = vector.load %arg9[%c1_104, %c0_105, %c0_106] : memref<2x1x32xf32, #tpu.memory_space<vmem>>, vector<1x1x32xf32>
    %271 = vector.shape_cast %270 : vector<1x1x32xf32> to vector<1x32xf32>
    %cst_107 = arith.constant dense<0.000000e+00> : vector<32xf32>
    %272 = vector.multi_reduction <add>, %267, %cst_107 [1] : vector<32x32xf32> to vector<32xf32>
    %273 = vector.shape_cast %272 : vector<32xf32> to vector<32x1xf32>
    %cst_108 = arith.constant 3.200000e+01 : f32
    %274 = vector.broadcast %cst_108 : f32 to vector<32x1xf32>
    %275 = arith.divf %273, %274 : vector<32x1xf32>
    %276 = vector.broadcast %275 : vector<32x1xf32> to vector<32x32xf32>
    %277 = arith.subf %267, %276 : vector<32x32xf32>
    %278 = arith.mulf %277, %277 : vector<32x32xf32>
    %cst_109 = arith.constant dense<0.000000e+00> : vector<32xf32>
    %279 = vector.multi_reduction <add>, %278, %cst_109 [1] : vector<32x32xf32> to vector<32xf32>
    %280 = vector.shape_cast %279 : vector<32xf32> to vector<32x1xf32>
    %cst_110 = arith.constant 3.200000e+01 : f32
    %281 = vector.broadcast %cst_110 : f32 to vector<32x1xf32>
    %282 = arith.divf %280, %281 : vector<32x1xf32>
    %283 = vector.broadcast %275 : vector<32x1xf32> to vector<32x32xf32>
    %284 = arith.subf %267, %283 : vector<32x32xf32>
    %cst_111 = arith.constant 9.99999974E-6 : f32
    %285 = vector.broadcast %cst_111 : f32 to vector<32x1xf32>
    %286 = arith.addf %282, %285 : vector<32x1xf32>
    %287 = math.rsqrt %286 : vector<32x1xf32>
    %288 = vector.broadcast %287 : vector<32x1xf32> to vector<32x32xf32>
    %289 = arith.mulf %284, %288 : vector<32x32xf32>
    %290 = vector.broadcast %269 : vector<1x32xf32> to vector<32x32xf32>
    %291 = arith.mulf %289, %290 : vector<32x32xf32>
    %292 = vector.broadcast %271 : vector<1x32xf32> to vector<32x32xf32>
    %293 = arith.addf %291, %292 : vector<32x32xf32>
    %c0_112 = arith.constant 0 : index
    %c0_113 = arith.constant 0 : index
    %294 = vector.load %arg14[%c0_112, %c0_113] : memref<1x32xf32, #tpu.memory_space<vmem>>, vector<1x32xf32>
    %c0_114 = arith.constant 0 : index
    %c0_115 = arith.constant 0 : index
    %295 = vector.load %arg15[%c0_114, %c0_115] : memref<1x32xf32, #tpu.memory_space<vmem>>, vector<1x32xf32>
    %cst_116 = arith.constant dense<0.000000e+00> : vector<32xf32>
    %296 = vector.multi_reduction <add>, %293, %cst_116 [1] : vector<32x32xf32> to vector<32xf32>
    %297 = vector.shape_cast %296 : vector<32xf32> to vector<32x1xf32>
    %cst_117 = arith.constant 3.200000e+01 : f32
    %298 = vector.broadcast %cst_117 : f32 to vector<32x1xf32>
    %299 = arith.divf %297, %298 : vector<32x1xf32>
    %300 = vector.broadcast %299 : vector<32x1xf32> to vector<32x32xf32>
    %301 = arith.subf %293, %300 : vector<32x32xf32>
    %302 = arith.mulf %301, %301 : vector<32x32xf32>
    %cst_118 = arith.constant dense<0.000000e+00> : vector<32xf32>
    %303 = vector.multi_reduction <add>, %302, %cst_118 [1] : vector<32x32xf32> to vector<32xf32>
    %304 = vector.shape_cast %303 : vector<32xf32> to vector<32x1xf32>
    %cst_119 = arith.constant 3.200000e+01 : f32
    %305 = vector.broadcast %cst_119 : f32 to vector<32x1xf32>
    %306 = arith.divf %304, %305 : vector<32x1xf32>
    %307 = vector.broadcast %299 : vector<32x1xf32> to vector<32x32xf32>
    %308 = arith.subf %293, %307 : vector<32x32xf32>
    %cst_120 = arith.constant 9.99999974E-6 : f32
    %309 = vector.broadcast %cst_120 : f32 to vector<32x1xf32>
    %310 = arith.addf %306, %309 : vector<32x1xf32>
    %311 = math.rsqrt %310 : vector<32x1xf32>
    %312 = vector.broadcast %311 : vector<32x1xf32> to vector<32x32xf32>
    %313 = arith.mulf %308, %312 : vector<32x32xf32>
    %314 = vector.broadcast %294 : vector<1x32xf32> to vector<32x32xf32>
    %315 = arith.mulf %313, %314 : vector<32x32xf32>
    %316 = vector.broadcast %295 : vector<1x32xf32> to vector<32x32xf32>
    %317 = arith.addf %315, %316 : vector<32x32xf32>
    %318 = vector.shape_cast %317 : vector<32x32xf32> to vector<4x8x32xf32>
    %319 = vector.extract_strided_slice %318 {offsets = [0, 0, 0], sizes = [4, 1, 32], strides = [1, 1, 1]} : vector<4x8x32xf32> to vector<4x1x32xf32>
    %320 = vector.shape_cast %319 : vector<4x1x32xf32> to vector<4x32xf32>
    %321 = vector.extract_strided_slice %318 {offsets = [0, 1, 0], sizes = [4, 1, 32], strides = [1, 1, 1]} : vector<4x8x32xf32> to vector<4x1x32xf32>
    %322 = vector.shape_cast %321 : vector<4x1x32xf32> to vector<4x32xf32>
    %323 = vector.extract_strided_slice %318 {offsets = [0, 2, 0], sizes = [4, 1, 32], strides = [1, 1, 1]} : vector<4x8x32xf32> to vector<4x1x32xf32>
    %324 = vector.shape_cast %323 : vector<4x1x32xf32> to vector<4x32xf32>
    %325 = vector.extract_strided_slice %318 {offsets = [0, 3, 0], sizes = [4, 1, 32], strides = [1, 1, 1]} : vector<4x8x32xf32> to vector<4x1x32xf32>
    %326 = vector.shape_cast %325 : vector<4x1x32xf32> to vector<4x32xf32>
    %327 = vector.extract_strided_slice %318 {offsets = [0, 4, 0], sizes = [4, 1, 32], strides = [1, 1, 1]} : vector<4x8x32xf32> to vector<4x1x32xf32>
    %328 = vector.shape_cast %327 : vector<4x1x32xf32> to vector<4x32xf32>
    %329 = vector.extract_strided_slice %318 {offsets = [0, 5, 0], sizes = [4, 1, 32], strides = [1, 1, 1]} : vector<4x8x32xf32> to vector<4x1x32xf32>
    %330 = vector.shape_cast %329 : vector<4x1x32xf32> to vector<4x32xf32>
    %331 = vector.extract_strided_slice %318 {offsets = [0, 6, 0], sizes = [4, 1, 32], strides = [1, 1, 1]} : vector<4x8x32xf32> to vector<4x1x32xf32>
    %332 = vector.shape_cast %331 : vector<4x1x32xf32> to vector<4x32xf32>
    %333 = vector.extract_strided_slice %318 {offsets = [0, 7, 0], sizes = [4, 1, 32], strides = [1, 1, 1]} : vector<4x8x32xf32> to vector<4x1x32xf32>
    %334 = vector.shape_cast %333 : vector<4x1x32xf32> to vector<4x32xf32>
    %335 = tpu.concatenate %320, %322, %324, %326, %328, %330, %332, %334 in 1 : vector<4x32xf32>, vector<4x32xf32>, vector<4x32xf32>, vector<4x32xf32>, vector<4x32xf32>, vector<4x32xf32>, vector<4x32xf32>, vector<4x32xf32> -> vector<4x256xf32>
    %336 = vector.extract_strided_slice %335 {offsets = [0, 0], sizes = [2, 256], strides = [1, 1]} : vector<4x256xf32> to vector<2x256xf32>
    %337 = vector.extract_strided_slice %335 {offsets = [2, 0], sizes = [2, 256], strides = [1, 1]} : vector<4x256xf32> to vector<2x256xf32>
    %338 = arith.subf %336, %337 : vector<2x256xf32>
    %339 = math.absf %338 : vector<2x256xf32>
    %340 = arith.mulf %336, %337 : vector<2x256xf32>
    %341 = tpu.concatenate %336, %337, %339, %340 in 1 : vector<2x256xf32>, vector<2x256xf32>, vector<2x256xf32>, vector<2x256xf32> -> vector<2x1024xf32>
    %342 = arith.truncf %341 : vector<2x1024xf32> to vector<2x1024xbf16>
    %c0_121 = arith.constant 0 : index
    %c0_122 = arith.constant 0 : index
    %343 = vector.load %arg16[%c0_121, %c0_122] : memref<1024x64xbf16, #tpu.memory_space<vmem>>, vector<1024x64xbf16>
    %cst_123 = arith.constant dense<0.000000e+00> : vector<2x64xf32>
    %344 = tpu.matmul %342, %343, %cst_123 {dimension_numbers = #tpu.dot_dimension_numbers<[1], [0], [0], [1], [0, 0, 1, 1], [], []>} : vector<2x1024xbf16>, vector<1024x64xbf16>, vector<2x64xf32> -> vector<2x64xf32>
    %c0_124 = arith.constant 0 : index
    %c0_125 = arith.constant 0 : index
    %345 = vector.load %arg17[%c0_124, %c0_125] : memref<1x64xf32, #tpu.memory_space<vmem>>, vector<1x64xf32>
    %346 = vector.broadcast %345 : vector<1x64xf32> to vector<2x64xf32>
    %347 = arith.addf %344, %346 : vector<2x64xf32>
    %cst_126 = arith.constant 0.000000e+00 : f32
    %348 = vector.broadcast %cst_126 : f32 to vector<2x64xf32>
    %349 = arith.maximumf %347, %348 : vector<2x64xf32>
    %350 = arith.truncf %349 : vector<2x64xf32> to vector<2x64xbf16>
    %c0_127 = arith.constant 0 : index
    %c0_128 = arith.constant 0 : index
    %351 = vector.load %arg18[%c0_127, %c0_128] : memref<64x32xbf16, #tpu.memory_space<vmem>>, vector<64x32xbf16>
    %cst_129 = arith.constant dense<0.000000e+00> : vector<2x32xf32>
    %352 = tpu.matmul %350, %351, %cst_129 {dimension_numbers = #tpu.dot_dimension_numbers<[1], [0], [0], [1], [0, 0, 1, 1], [], []>} : vector<2x64xbf16>, vector<64x32xbf16>, vector<2x32xf32> -> vector<2x32xf32>
    %c0_130 = arith.constant 0 : index
    %c0_131 = arith.constant 0 : index
    %353 = vector.load %arg19[%c0_130, %c0_131] : memref<1x32xf32, #tpu.memory_space<vmem>>, vector<1x32xf32>
    %354 = vector.broadcast %353 : vector<1x32xf32> to vector<2x32xf32>
    %355 = arith.addf %352, %354 : vector<2x32xf32>
    %cst_132 = arith.constant 0.000000e+00 : f32
    %356 = vector.broadcast %cst_132 : f32 to vector<2x32xf32>
    %357 = arith.maximumf %355, %356 : vector<2x32xf32>
    %358 = arith.truncf %357 : vector<2x32xf32> to vector<2x32xbf16>
    %c0_133 = arith.constant 0 : index
    %c0_134 = arith.constant 0 : index
    %359 = vector.load %arg20[%c0_133, %c0_134] : memref<32x3xbf16, #tpu.memory_space<vmem>>, vector<32x3xbf16>
    %cst_135 = arith.constant dense<0.000000e+00> : vector<2x3xf32>
    %360 = tpu.matmul %358, %359, %cst_135 {dimension_numbers = #tpu.dot_dimension_numbers<[1], [0], [0], [1], [0, 0, 1, 1], [], []>} : vector<2x32xbf16>, vector<32x3xbf16>, vector<2x3xf32> -> vector<2x3xf32>
    %c0_136 = arith.constant 0 : index
    %c0_137 = arith.constant 0 : index
    %361 = vector.load %arg21[%c0_136, %c0_137] : memref<1x3xf32, #tpu.memory_space<vmem>>, vector<1x3xf32>
    %362 = vector.broadcast %361 : vector<1x3xf32> to vector<2x3xf32>
    %363 = arith.addf %360, %362 : vector<2x3xf32>
    %c0_138 = arith.constant 0 : index
    %c0_139 = arith.constant 0 : index
    %364 = vector.load %arg22[%c0_138, %c0_139] : memref<2x3xf32, #tpu.memory_space<vmem>>, vector<2x3xf32>
    tpu.vector_store %arg22[%c0_138, %c0_139], %363 {strides = array<i32>} : memref<2x3xf32, #tpu.memory_space<vmem>>, vector<2x3xf32>,
    return
  }
}

</mosaic_0001>

<bundles_post_ra>
// kernel: pallas_forward.1
= control target key start
LH: loop header
LB: loop body
LE: loop exit
PB: predicated region body
PF: predicated region fallthrough
CT: control target
= control target key end

     0   :  { %s9109_s0 = inlined_call_operand.vmem [shape: s32[32,1], index: 0, kind: input, shape index: {}]   ;;  %s9110_s1 = inlined_call_operand.vmem [shape: f32[50,32], index: 1, kind: input, shape index: {}]   ;;  %s9111_s2 = inlined_call_operand.vmem [shape: bf16[2,32,96], index: 2, kind: input, shape index: {}]   ;;  %s9112_s3 = inlined_call_operand.vmem [shape: f32[2,1,96], index: 3, kind: input, shape index: {}]   ;;  %s9113_s4 = inlined_call_operand.vmem [shape: bf16[2,32,32], index: 4, kind: input, shape index: {}]   ;;  %s9114_s5 = inlined_call_operand.vmem [shape: f32[2,1,32], index: 5, kind: input, shape index: {}]   ;;  %s9115_s6 = inlined_call_operand.vmem [shape: f32[2,1,32], index: 6, kind: input, shape index: {}]   ;;  %s9116_s7 = inlined_call_operand.vmem [shape: f32[2,1,32], index: 7, kind: input, shape index: {}]   ;;  %s9117_s8 = inlined_call_operand.vmem [shape: f32[2,1,32], index: 8, kind: input, shape index: {}]   ;;  %s9118_s9 = inlined_call_operand.vmem [shape: f32[2,1,32], index: 9, kind: input, shape index: {}]   ;;  %s9119_s10 = inlined_call_operand.vmem [shape: bf16[2,32,64], index: 10, kind: input, shape index: {}]   ;;  %s9120_s11 = inlined_call_operand.vmem [shape: f32[2,1,64], index: 11, kind: input, shape index: {}]   ;;  %s9121_s12 = inlined_call_operand.vmem [shape: bf16[2,64,32], index: 12, kind: input, shape index: {}]   ;;  %s9122_s13 = inlined_call_operand.vmem [shape: f32[2,1,32], index: 13, kind: input, shape index: {}]   ;;  %s9123_s14 = inlined_call_operand.vmem [shape: f32[1,32], index: 14, kind: input, shape index: {}]   ;;  %s9124_s15 = inlined_call_operand.vmem [shape: f32[1,32], index: 15, kind: input, shape index: {}]   ;;  %s9125_s16 = inlined_call_operand.vmem [shape: bf16[1024,64], index: 16, kind: input, shape index: {}]   ;;  %s9126_s17 = inlined_call_operand.vmem [shape: f32[1,64], index: 17, kind: input, shape index: {}]   ;;  %s9127_s18 = inlined_call_operand.vmem [shape: bf16[64,32], index: 18, kind: input, shape index: {}]   ;;  %s9128_s19 = inlined_call_operand.vmem [shape: f32[1,32], index: 19, kind: input, shape index: {}]   ;;  %s9129_s20 = inlined_call_operand.vmem [shape: bf16[32,3], index: 20, kind: input, shape index: {}]   ;;  %s9130_s21 = inlined_call_operand.vmem [shape: f32[1,3], index: 21, kind: input, shape index: {}]   ;;  %s9131_s22 = inlined_call_operand.hbm [shape: f32[2,3], index: 22, kind: output, shape index: {}]  }
   0x1   :  { %9149 = sst [smem:[#allocation5_spill]] %s9109_s0 }
   0x2   :  { %9150 = sst [smem:[#allocation6_spill]] %s9110_s1 }
   0x3   :  { %9151 = sst [smem:[#allocation7_spill]] %s9111_s2 }
   0x4   :  { %9152 = sst [smem:[#allocation8_spill]] %s9112_s3 }
   0x5   :  { %9153 = sst [smem:[#allocation9_spill]] %s9113_s4 }
   0x6   :  { %9154 = sst [smem:[#allocation10_spill]] %s9114_s5 }
   0x7   :  { %9155 = sst [smem:[#allocation11_spill]] %s9115_s6 }
   0x8   :  { %s9156_s29 = sld [smem:[#allocation5_spill]]  ;;  %v7396_v2 = vmov 0   ;;  %s9157_s25 = sld [smem:[#allocation6_spill]]  ;;  %vm123_vm0 = vcmask 1041408   ;;  %v7397_v15 = vmov 0.0  }
   0x9   :  { %6993 = vset.pattern.permute.xlu1 %v7396_v2  ;;  %6992 = vset.pattern.permute.xlu0 %v7396_v2 }
   0xe   :  { %v75_v0 = vld [vmem:[%s9156_s29 + $0x10] sm:$0xff]  ;;  %v73_v1 = vld [vmem:[%s9156_s29] sm:$0xff]  ;;  %v76_v3 = vld [vmem:[%s9156_s29 + $0x18] sm:$0xff] }
   0xf   :  { %v74_v4 = vld [vmem:[%s9156_s29 + $0x8] sm:$0xff]  ;;  %v103_v5 = vld [vmem:[%s9157_s25] sm:$0xff]  ;;  %86 = vperm.xlu1 %6993, %v75_v0   ;;  %80 = vperm.xlu0 %6992, %v73_v1   ;;  %v105_v8 = vld [vmem:[%s9157_s25 + $0x10] sm:$0xff] }
  0x10   :  { %v104_v6 = vld [vmem:[%s9157_s25 + $0x8] sm:$0xff]  ;;  %v106_v9 = vld [vmem:[%s9157_s25 + $0x18] sm:$0xff]  ;;  %v107_v10 = vld [vmem:[%s9157_s25 + $0x20] sm:$0xff] }
  0x11   :  { %v6967_v7 = vpack.c.bf16 %v104_v6, %v103_v5  ;;  %v6971_v11 = vpack.c.bf16 %v106_v9, %v105_v8  ;;  %v108_v12 = vld [vmem:[%s9157_s25 + $0x28] sm:$0xff]  ;;  %v109_v14 = vld [vmem:[%s9157_s25 + $0x30] sm:$0x3] }
  0x12   :  { %v6975_v13 = vpack.c.bf16 %v108_v12, %v107_v10 }
  0x13   :  { %6968 = vmatprep.subr.bf16.mxu0 %v6967_v7  ;;  %89 = vperm.xlu1 %6993, %v76_v3  }
  0x14   :  { %6970 = vmatpush3.bf16.msra.mxu0 %v6967_v7  ;;  %83 = vperm.xlu0 %6992, %v74_v4  }
  0x15   :  { %6972 = vmatprep.subr.bf16.mxu0 %v6971_v11 }
  0x18   :  { %6974 = vmatpush3.bf16.msra.mxu0 %v6971_v11 }
  0x19   :  { %6976 = vmatprep.subr.bf16.mxu0 %v6975_v13 }
  0x1c   :  { %6978 = vmatpush3.bf16.msra.mxu0 %v6975_v13 }
  0x1d   :  { %6483 = vmatprep.subr.msk.mxu0 %vm123_vm0, %v109_v14 }
  0x20   :  { %6484 = vmatpush3.msk.msra.mxu0 %vm123_vm0, %v109_v14 }
  0x21   :  { %6505 = vmatprep.subr.bf16.mxu0 %v7397_v15 }
  0x22   :  { %27 = vsyncpa [#allocation3], 0  ;;  %v77_v16 = vlaneseq  ;;  %vm110_vm1 = vcmask 408576   ;;  %s9158_s25 = sld [smem:[#allocation7_spill]]  ;;  %vm237_vm6 = vcmask 261120   ;;  %s9159_s28 = sld [smem:[#allocation8_spill]] }
  0x23   :  { %s7398_s30 = smov 120   ;;  %s7399_s29 = smov 112   ;;  %vm7400_vm7 = vmmov 0   ;;  %vm352_vm8 = vcmask 64512   ;;  %vm1331_vm9 = vcmask 1043456   ;;  %vm2147_vm10 = vcmask 130048  }
  0x24   :  { %v78_v17 = vand.u32 127, %v77_v16  ;;  %s7401_s4 = smov 104   ;;  %s9147_s0 = smov 96   ;;  %vm2152_vm11 = vcmask 195584   ;;  %vm2441_vm12 = vcmask 523264   ;;  %vm5022_vm13 = vcmask 1041409  }
  0x25   :  { %s9145_s23 = smov 64   ;;  %s9143_s1 = smov 8   ;;  %vm5025_vm14 = vcmask 1042434   ;;  %vm5028_vm15 = vcmask 1043459   ;;  %vm5098_vm0 = vcmask 785408  }
  0x26   :  { %s9141_s5 = smov 16   ;;  %s9160_s26 = sld [smem:[#allocation9_spill]] }
  0x27   :  { %s9139_s3 = smov 24   ;;  %s9161_s2 = sld [smem:[#allocation10_spill]] }
  0x28   :  { %v7114_v26 = vld [vmem:[%s9158_s25] sm:$0xff]   ;;  %v7115_v27 = vld [vmem:[%s9158_s25 + $0x8] sm:$0xff]  }
  0x29   :  { %6491 = vmatprep.subr.bf16.mxu1 %v7114_v26  ;;  %v5979_v35 = vld [vmem:[%s9159_s28] ss:$0 sm:$0xff] }
  0x2a   :  { %6492 = vmatpush3.bf16.msra.mxu1 %v7114_v26 }
  0x2b   :  { %6493 = vmatprep.subr.bf16.mxu1 %v7115_v27 }
  0x2e   :  { %6494 = vmatpush3.bf16.msra.mxu1 %v7115_v27 }
  0x2f   :  { %6499 = vmatprep.subr.bf16.mxu1 %v7397_v15 }
  0x8e   :  { %v87_v18 = vpop.permute.xlu1 %86  ;;  %v81_v19 = vpop.permute.xlu0 %80 }
  0x8f   :  { %vm91_vm2 = vcmp.eq.s32.totalorder %v81_v19, %v78_v17  ;;  %vm93_vm3 = vcmp.eq.s32.totalorder %v87_v18, %v78_v17 }
  0x90   :  { %v5970_v20 = vsel %vm91_vm2, 1.0, %v7397_v15  ;;  %v5972_v23 = vsel %vm93_vm3, 1.0, %v7397_v15 }
  0x91   :  { %6485 = vmatprep.mubr.msk.f32.mxu0 %vm110_vm1, %v5970_v20 }
  0x92   :  { %v90_v21 = vpop.permute.xlu1 %89 }
  0x93   :  { %v84_v22 = vpop.permute.xlu0 %83  ;;  %vm94_vm5 = vcmp.eq.s32.totalorder %v90_v21, %v78_v17 }
  0x94   :  { %vm92_vm4 = vcmp.eq.s32.totalorder %v84_v22, %v78_v17  ;;  %v5973_v25 = vsel %vm94_vm5, 1.0, %v7397_v15 }
  0x95   :  { %v5971_v24 = vsel %vm92_vm4, 1.0, %v7397_v15 }
  0x96   :  { %6486 = vmatmul.mubr.msk.f32.vlgmr.msra.gmra.mrb[0].mxu0 %vm110_vm1, %v5971_v24 }
  0x97   :  { %6488 = vmatprep.mubr.msk.f32.mxu0 %vm110_vm1, %v5972_v23 }
  0x9a   :  { %6489 = vmatmul.mubr.msk.f32.gmra.mrb[2].mxu0 %vm110_vm1, %v5973_v25  ;;  %vm5954_vm1 = vcmask 17408  }
  0x9b   :  { %6507 = vmatprep.mubr.msk.bf16.mxu0 %vm7400_vm7, %v7397_v15 }
 0x169   :  { %v7569_v28 = vpop.f32.mrb[0].mxu0 }
 0x16a   :  { %v7571_v29 = vpop.f32.mrb[1].mxu0 }
 0x16b   :  { %v212_v30 = vpack.c.bf16 %v7569_v28, %v7571_v29 }
 0x16d   :  { %v7575_v31 = vpop.f32.mrb[2].mxu0  ;;  %6495 = vmatprep.mubr.msk.bf16.mxu1 %vm237_vm6, %v212_v30 }
 0x16e   :  { %v7578_v32 = vpop.f32.mrb[3].mxu0 }
 0x16f   :  { %v213_v33 = vpack.c.bf16 %v7575_v31, %v7578_v32 }
 0x171   :  { %6496 = vmatmul.mubr.msk.bf16.vlgmr.msra.gmra.mrb[0].mxu1 %vm237_vm6, %v213_v33 }
 0x172   :  { %6501 = vmatprep.mubr.msk.bf16.mxu1 %vm7400_vm7, %v7397_v15 }
 0x244   :  { %v6497_v34 = vpop.f32.mrb[0].mxu1 }
 0x245   :  { %v278_v36 = vpop.f32.mrb[1].mxu1  ;;  %v287_v38 = vadd.f32 %v6497_v34, %v5979_v35 }
 0x246   :  { %v6498_v37 = vpop.f32.mrb[2].mxu1  ;;  %v279_v41 = vadd.f32 %v5979_v35, %v278_v36 }
 0x247   :  { %v290_v39 = vadd.f32 %v6498_v37, %v5979_v35  ;;  %v281_v40 = vpop.f32.mrb[3].mxu1  ;;  %v7606_v48 = vpack.c.bf16 %v287_v38, %v287_v38 }
 0x248   :  { %v282_v42 = vadd.f32 %v5979_v35, %v281_v40  ;;  %v7598_v46 = vpack.c.bf16 %v279_v41, %v279_v41 }
 0x249   :  { %v6999_v43 = vpack.i.bf16 %v290_v39, %v287_v38  ;;  %v7604_v47 = vpack.c.bf16 %v290_v39, %v290_v39 }
 0x24a   :  { %v6994_v44 = vpack.i.bf16 %v282_v42, %v279_v41  ;;  %v7596_v45 = vpack.c.bf16 %v282_v42, %v282_v42 }
 0x24b   :  { %7000 = vrot.lane.b32.xlu1 %v6999_v43, %s7398_s30 }
 0x24c   :  { %6995 = vrot.lane.b32.xlu0 %v6994_v44, %s7398_s30 }
 0x24f   :  { %7010 = vrot.lane.b32.xlu1 %v6999_v43, %s7399_s29 }
 0x250   :  { %7005 = vrot.lane.b32.xlu0 %v6994_v44, %s7399_s29 }
 0x253   :  { %7020 = vrot.lane.b32.xlu1 %v6999_v43, %s7401_s4 }
 0x254   :  { %7015 = vrot.lane.b32.xlu0 %v6994_v44, %s7401_s4 }
 0x257   :  { %400 = vrot.lane.b32.xlu1 %v7596_v45, %s9147_s0 }
 0x258   :  { %350 = vrot.lane.b32.xlu0 %v7598_v46, %s9147_s0 }
 0x25b   :  { %498 = vrot.lane.b32.xlu1 %v7604_v47, %s9147_s0 }
 0x25c   :  { %449 = vrot.lane.b32.xlu0 %v7606_v48, %s9147_s0 }
 0x2bd   :  { %v7001_v49 = vpop.permute.xlu1 %7000 }
 0x2be   :  { %v6996_v50 = vpop.permute.xlu0 %6995  ;;  %v7003_v53 = vunpack.i.h.bf16 %v7001_v49  ;;  %v7002_v54 = vunpack.i.l.bf16 %v7001_v49 }
 0x2bf   :  { %v6998_v51 = vunpack.i.h.bf16 %v6996_v50  ;;  %v6997_v52 = vunpack.i.l.bf16 %v6996_v50 }
 0x2c0   :  { %v7620_v61 = vpack.c.bf16 %v7003_v53, %v7003_v53  ;;  %v7622_v62 = vpack.c.bf16 %v7002_v54, %v7002_v54 }
 0x2c1   :  { %v7011_v55 = vpop.permute.xlu1 %7010  ;;  %v7612_v56 = vpack.c.bf16 %v6998_v51, %v6998_v51  ;;  %v7614_v57 = vpack.c.bf16 %v6997_v52, %v6997_v52 }
 0x2c2   :  { %v7006_v58 = vpop.permute.xlu0 %7005  ;;  %v7013_v1 = vunpack.i.h.bf16 %v7011_v55  ;;  %v7012_v4 = vunpack.i.l.bf16 %v7011_v55 }
 0x2c3   :  { %596 = vrot.lane.b32.xlu1 %v7612_v56, %s9147_s0  ;;  %547 = vrot.lane.b32.xlu0 %v7614_v57, %s9147_s0  ;;  %v7008_v59 = vunpack.i.h.bf16 %v7006_v58  ;;  %v7007_v63 = vunpack.i.l.bf16 %v7006_v58 }
 0x2c4   :  { %v7638_v10 = vpack.c.bf16 %v7013_v1, %v7013_v1  ;;  %v7642_v12 = vpack.c.bf16 %v7012_v4, %v7012_v4 }
 0x2c5   :  { %v7021_v60 = vpop.permute.xlu1 %7020  ;;  %v7628_v3 = vpack.c.bf16 %v7008_v59, %v7008_v59  ;;  %v7631_v7 = vpack.c.bf16 %v7007_v63, %v7007_v63 }
 0x2c6   :  { %v7016_v0 = vpop.permute.xlu0 %7015  ;;  %v7023_v14 = vunpack.i.h.bf16 %v7021_v60  ;;  %v7022_v18 = vunpack.i.l.bf16 %v7021_v60 }
 0x2c7   :  { %694 = vrot.lane.b32.xlu1 %v7620_v61, %s9147_s0  ;;  %645 = vrot.lane.b32.xlu0 %v7622_v62, %s9147_s0  ;;  %v7018_v9 = vunpack.i.h.bf16 %v7016_v0  ;;  %v7017_v11 = vunpack.i.l.bf16 %v7016_v0 }
 0x2c8   :  { %v7662_v22 = vpack.c.bf16 %v7023_v14, %v7023_v14  ;;  %v7666_v23 = vpack.c.bf16 %v7022_v18, %v7022_v18 }
 0x2c9   :  { %v401_v2 = vpop.permute.xlu1 %400  ;;  %v7648_v17 = vpack.c.bf16 %v7018_v9, %v7018_v9  ;;  %v7653_v20 = vpack.c.bf16 %v7017_v11, %v7017_v11 }
 0x2ca   :  { %v406_v5 = vsel %vm352_vm8, %v401_v2, 0  ;;  %v351_v6 = vpop.permute.xlu0 %350 }
 0x2cb   :  { %v357_v8 = vsel %vm352_vm8, %v351_v6, 0  ;;  %6506 = vmatpush3.bf16.xpose.msra.mxu0 %v406_v5  ;;  %792 = vrot.lane.b32.xlu1 %v7628_v3, %s9147_s0 }
 0x2cc   :  { %743 = vrot.lane.b32.xlu0 %v7631_v7, %s9147_s0  ;;  %6500 = vmatpush3.bf16.xpose.msra.mxu1 %v357_v8 }
 0x2cd   :  { %6517 = vmatprep.subr.bf16.mxu0 %v7397_v15  ;;  %6511 = vmatprep.subr.bf16.mxu1 %v7397_v15  ;;  %v499_v13 = vpop.permute.xlu1 %498 }
 0x2ce   :  { %v450_v16 = vpop.permute.xlu0 %449  ;;  %v504_v19 = vsel %vm352_vm8, %v499_v13, 0 }
 0x2cf   :  { %890 = vrot.lane.b32.xlu1 %v7638_v10, %s9147_s0  ;;  %v455_v21 = vsel %vm352_vm8, %v450_v16, 0 }
 0x2d0   :  { %841 = vrot.lane.b32.xlu0 %v7642_v12, %s9147_s0 }
 0x2d2   :  { %6508 = vmatmul.mubr.msk.bf16.vlgmr.msra.gmra.mrb[4].mxu0 %vm352_vm8, %v7596_v45 }
 0x2d3   :  { %6518 = vmatpush3.bf16.xpose.msra.mxu0 %v504_v19  ;;  %988 = vrot.lane.b32.xlu1 %v7648_v17, %s9147_s0 }
 0x2d4   :  { %939 = vrot.lane.b32.xlu0 %v7653_v20, %s9147_s0  ;;  %6502 = vmatmul.mubr.msk.bf16.vlgmr.msra.gmra.mrb[4].mxu1 %vm352_vm8, %v7598_v46 }
 0x2d5   :  { %6512 = vmatpush3.bf16.xpose.msra.mxu1 %v455_v21  ;;  %6519 = vmatprep.mubr.msk.bf16.mxu0 %vm7400_vm7, %v7397_v15 }
 0x2d6   :  { %6513 = vmatprep.mubr.msk.bf16.mxu1 %vm7400_vm7, %v7397_v15  ;;  %6523 = vmatprep.subr.bf16.mxu1 %v7397_v15 }
 0x2d7   :  { %1086 = vrot.lane.b32.xlu1 %v7662_v22, %s9147_s0  ;;  %6529 = vmatprep.subr.bf16.mxu0 %v7397_v15 }
 0x2d8   :  { %1037 = vrot.lane.b32.xlu0 %v7666_v23, %s9147_s0 }
 0x2da   :  { %6520 = vmatmul.mubr.msk.bf16.vlgmr.msra.gmra.mrb[8].mxu0 %vm352_vm8, %v7604_v47 }
 0x2db   :  { %1326 = vrot.lane.b32.xlu1 %v7598_v46, %s9145_s23  ;;  %6531 = vmatprep.mubr.msk.bf16.mxu0 %vm7400_vm7, %v7397_v15 }
 0x2dc   :  { %1375 = vrot.lane.b32.xlu0 %v7596_v45, %s9145_s23  ;;  %6514 = vmatmul.mubr.msk.bf16.vlgmr.msra.gmra.mrb[8].mxu1 %vm352_vm8, %v7606_v48 }
 0x2dd   :  { %6525 = vmatprep.mubr.msk.bf16.mxu1 %vm7400_vm7, %v7397_v15 }
 0x2df   :  { %1423 = vrot.lane.b32.xlu1 %v7606_v48, %s9145_s23 }
 0x2e0   :  { %1471 = vrot.lane.b32.xlu0 %v7604_v47, %s9145_s23 }
 0x2e3   :  { %1519 = vrot.lane.b32.xlu1 %v7614_v57, %s9145_s23 }
 0x2e4   :  { %1663 = vrot.lane.b32.xlu0 %v7620_v61, %s9145_s23 }
 0x2e7   :  { %1615 = vrot.lane.b32.xlu1 %v7622_v62, %s9145_s23 }
 0x2e8   :  { %1567 = vrot.lane.b32.xlu0 %v7612_v56, %s9145_s23 }
 0x2eb   :  { %1711 = vrot.lane.b32.xlu1 %v7631_v7, %s9145_s23 }
 0x335   :  { %v597_v24 = vpop.permute.xlu1 %596  ;;  %v548_v25 = vpop.permute.xlu0 %547 }
 0x336   :  { %v602_v26 = vsel %vm352_vm8, %v597_v24, 0  ;;  %v553_v27 = vsel %vm352_vm8, %v548_v25, 0 }
 0x337   :  { %6524 = vmatpush3.bf16.xpose.msra.mxu1 %v553_v27  ;;  %6530 = vmatpush3.bf16.xpose.msra.mxu0 %v602_v26 }
 0x338   :  { %6535 = vmatprep.subr.bf16.mxu1 %v7397_v15  ;;  %6541 = vmatprep.subr.bf16.mxu0 %v7397_v15 }
 0x339   :  { %v695_v30 = vpop.permute.xlu1 %694  ;;  %v646_v33 = vpop.permute.xlu0 %645 }
 0x33a   :  { %v700_v34 = vsel %vm352_vm8, %v695_v30, 0  ;;  %v651_v35 = vsel %vm352_vm8, %v646_v33, 0 }
 0x33d   :  { %v793_v36 = vpop.permute.xlu1 %792 }
 0x33e   :  { %6526 = vmatmul.mubr.msk.bf16.vlgmr.msra.gmra.mrb[12].mxu1 %vm352_vm8, %v7614_v57  ;;  %6532 = vmatmul.mubr.msk.bf16.vlgmr.msra.gmra.mrb[12].mxu0 %vm352_vm8, %v7612_v56  ;;  %v744_v37 = vpop.permute.xlu0 %743  ;;  %v798_v38 = vsel %vm352_vm8, %v793_v36, 0 }
 0x33f   :  { %6536 = vmatpush3.bf16.xpose.msra.mxu1 %v651_v35  ;;  %6542 = vmatpush3.bf16.xpose.msra.mxu0 %v700_v34  ;;  %v749_v39 = vsel %vm352_vm8, %v744_v37, 0 }
 0x340   :  { %6543 = vmatprep.mubr.msk.bf16.mxu0 %vm7400_vm7, %v7397_v15  ;;  %6537 = vmatprep.mubr.msk.bf16.mxu1 %vm7400_vm7, %v7397_v15 }
 0x341   :  { %6547 = vmatprep.subr.bf16.mxu1 %v7397_v15  ;;  %6553 = vmatprep.subr.bf16.mxu0 %v7397_v15  ;;  %v891_v40 = vpop.permute.xlu1 %890 }
 0x342   :  { %v842_v41 = vpop.permute.xlu0 %841  ;;  %v896_v42 = vsel %vm352_vm8, %v891_v40, 0 }
 0x343   :  { %v847_v43 = vsel %vm352_vm8, %v842_v41, 0 }
 0x345   :  { %v989_v44 = vpop.permute.xlu1 %988 }
 0x346   :  { %6538 = vmatmul.mubr.msk.bf16.vlgmr.msra.gmra.mrb[16].mxu1 %vm352_vm8, %v7622_v62  ;;  %6544 = vmatmul.mubr.msk.bf16.vlgmr.msra.gmra.mrb[16].mxu0 %vm352_vm8, %v7620_v61  ;;  %v940_v45 = vpop.permute.xlu0 %939  ;;  %v994_v46 = vsel %vm352_vm8, %v989_v44, 0 }
 0x347   :  { %6548 = vmatpush3.bf16.xpose.msra.mxu1 %v749_v39  ;;  %6554 = vmatpush3.bf16.xpose.msra.mxu0 %v798_v38  ;;  %v945_v47 = vsel %vm352_vm8, %v940_v45, 0 }
 0x348   :  { %6555 = vmatprep.mubr.msk.bf16.mxu0 %vm7400_vm7, %v7397_v15  ;;  %6549 = vmatprep.mubr.msk.bf16.mxu1 %vm7400_vm7, %v7397_v15 }
 0x349   :  { %6559 = vmatprep.subr.bf16.mxu1 %v7397_v15  ;;  %6565 = vmatprep.subr.bf16.mxu0 %v7397_v15  ;;  %v1087_v48 = vpop.permute.xlu1 %1086 }
 0x34a   :  { %v1038_v49 = vpop.permute.xlu0 %1037  ;;  %v1092_v50 = vsel %vm352_vm8, %v1087_v48, 0 }
 0x34b   :  { %v1043_v51 = vsel %vm352_vm8, %v1038_v49, 0 }
 0x34d   :  { %v1327_v52 = vpop.permute.xlu1 %1326 }
 0x34e   :  { %6550 = vmatmul.mubr.msk.bf16.vlgmr.msra.gmra.mrb[20].mxu1 %vm352_vm8, %v7631_v7  ;;  %6556 = vmatmul.mubr.msk.bf16.vlgmr.msra.gmra.mrb[20].mxu0 %vm352_vm8, %v7628_v3  ;;  %v1376_v53 = vpop.permute.xlu0 %1375  ;;  %v1333_v54 = vsel %vm1331_vm9, %v1327_v52, 0 }
 0x34f   :  { %6560 = vmatpush3.bf16.xpose.msra.mxu1 %v847_v43  ;;  %6566 = vmatpush3.bf16.xpose.msra.mxu0 %v896_v42  ;;  %v1381_v55 = vsel %vm1331_vm9, %v1376_v53, 0 }
 0x350   :  { %6567 = vmatprep.mubr.msk.bf16.mxu0 %vm7400_vm7, %v7397_v15  ;;  %6561 = vmatprep.mubr.msk.bf16.mxu1 %vm7400_vm7, %v7397_v15 }
 0x351   :  { %6571 = vmatprep.subr.bf16.mxu1 %v7397_v15  ;;  %6577 = vmatprep.subr.bf16.mxu0 %v7397_v15 }
 0x356   :  { %6562 = vmatmul.mubr.msk.bf16.vlgmr.msra.gmra.mrb[24].mxu1 %vm352_vm8, %v7642_v12  ;;  %6568 = vmatmul.mubr.msk.bf16.vlgmr.msra.gmra.mrb[24].mxu0 %vm352_vm8, %v7638_v10 }
 0x357   :  { %6572 = vmatpush3.bf16.xpose.msra.mxu1 %v945_v47  ;;  %6578 = vmatpush3.bf16.xpose.msra.mxu0 %v994_v46 }
 0x358   :  { %6579 = vmatprep.mubr.msk.bf16.mxu0 %vm7400_vm7, %v7397_v15  ;;  %6573 = vmatprep.mubr.msk.bf16.mxu1 %vm7400_vm7, %v7397_v15 }
 0x359   :  { %6583 = vmatprep.subr.bf16.mxu1 %v7397_v15  ;;  %6589 = vmatprep.subr.bf16.mxu0 %v7397_v15 }
 0x35e   :  { %6574 = vmatmul.mubr.msk.bf16.vlgmr.msra.gmra.mrb[28].mxu1 %vm352_vm8, %v7653_v20  ;;  %6580 = vmatmul.mubr.msk.bf16.vlgmr.msra.gmra.mrb[28].mxu0 %vm352_vm8, %v7648_v17 }
 0x35f   :  { %6584 = vmatpush3.bf16.xpose.msra.mxu1 %v1043_v51  ;;  %6590 = vmatpush3.bf16.xpose.msra.mxu0 %v1092_v50 }
 0x360   :  { %6585 = vmatprep.mubr.msk.bf16.mxu1 %vm7400_vm7, %v7397_v15  ;;  %6591 = vmatprep.mubr.msk.bf16.mxu0 %vm7400_vm7, %v7397_v15 }
 0x361   :  { %6595 = vmatprep.subr.bf16.mxu1 %v7397_v15  ;;  %6601 = vmatprep.subr.bf16.mxu0 %v7397_v15 }
 0x366   :  { %6586 = vmatmul.mubr.msk.bf16.vlgmr.msra.gmra.mrb[32].mxu1 %vm352_vm8, %v7666_v23  ;;  %6592 = vmatmul.mubr.msk.bf16.vlgmr.msra.gmra.mrb[32].mxu0 %vm352_vm8, %v7662_v22 }
 0x367   :  { %6596 = vmatpush3.bf16.msra.mxu1 %v1333_v54  ;;  %6602 = vmatpush3.bf16.msra.mxu0 %v1381_v55 }
 0x368   :  { %6603 = vmatprep.mubr.msk.bf16.mxu0 %vm7400_vm7, %v7397_v15  ;;  %6613 = vmatprep.subr.bf16.mxu0 %v7397_v15 }
 0x369   :  { %6597 = vmatprep.mubr.msk.bf16.mxu1 %vm7400_vm7, %v7397_v15  ;;  %6607 = vmatprep.subr.bf16.mxu1 %v7397_v15 }
 0x3a5   :  { %v7778_v56 = vpop.f32.mrb[4].mxu0 }
 0x3a6   :  { %v6509_v57 = vpop.f32.mrb[5].mxu0  ;;  %v1137_v58 = vsel %vm352_vm8, %v7778_v56, -inf }
 0x3a7   :  { %v7782_v59 = vpop.f32.mrb[4].mxu1  ;;  %v445_v60 = vpop.f32.mrb[6].mxu0  ;;  %1138 = vmax.xlane.f32.xlu1 %v1137_v58 }
 0x3a8   :  { %v6503_v61 = vpop.f32.mrb[5].mxu1  ;;  %v6510_v62 = vpop.f32.mrb[7].mxu0  ;;  %v1134_v63 = vsel %vm352_vm8, %v7782_v59, -inf }
 0x3a9   :  { %1135 = vmax.xlane.f32.xlu0 %v1134_v63  ;;  %v396_v0 = vpop.f32.mrb[6].mxu1 }
 0x3aa   :  { %v6504_v1 = vpop.f32.mrb[7].mxu1 }
 0x3ad   :  { %v7786_v2 = vpop.f32.mrb[8].mxu0 }
 0x3ae   :  { %v6521_v4 = vpop.f32.mrb[9].mxu0  ;;  %v1143_v14 = vsel %vm352_vm8, %v7786_v2, -inf }
 0x3af   :  { %v7788_v5 = vpop.f32.mrb[8].mxu1  ;;  %v543_v6 = vpop.f32.mrb[10].mxu0 }
 0x3b0   :  { %v6515_v7 = vpop.f32.mrb[9].mxu1  ;;  %v6522_v8 = vpop.f32.mrb[11].mxu0  ;;  %v1140_v9 = vsel %vm352_vm8, %v7788_v5, -inf }
 0x3b1   :  { %1141 = vmax.xlane.f32.xlu0 %v1140_v9  ;;  %v494_v11 = vpop.f32.mrb[10].mxu1 }
 0x3b2   :  { %v6516_v13 = vpop.f32.mrb[11].mxu1 }
 0x3b5   :  { %1144 = vmax.xlane.f32.xlu0 %v1143_v14 }
 0x411   :  { %v7794_v16 = vpop.f32.mrb[12].mxu1  ;;  %v7796_v18 = vpop.f32.mrb[12].mxu0 }
 0x412   :  { %v6527_v19 = vpop.f32.mrb[13].mxu1  ;;  %v6533_v21 = vpop.f32.mrb[13].mxu0  ;;  %v1149_v24 = vsel %vm352_vm8, %v7796_v18, -inf  ;;  %v1146_v25 = vsel %vm352_vm8, %v7794_v16, -inf }
 0x413   :  { %v641_v26 = vpop.f32.mrb[14].mxu0  ;;  %1150 = vmax.xlane.f32.xlu0 %v1149_v24  ;;  %1147 = vmax.xlane.f32.xlu1 %v1146_v25  ;;  %v592_v27 = vpop.f32.mrb[14].mxu1 }
 0x414   :  { %v6528_v30 = vpop.f32.mrb[15].mxu1  ;;  %v6534_v33 = vpop.f32.mrb[15].mxu0 }
 0x419   :  { %v7802_v34 = vpop.f32.mrb[16].mxu1  ;;  %v7804_v35 = vpop.f32.mrb[16].mxu0 }
 0x41a   :  { %v6539_v36 = vpop.f32.mrb[17].mxu1  ;;  %v6545_v37 = vpop.f32.mrb[17].mxu0  ;;  %v1155_v38 = vsel %vm352_vm8, %v7804_v35, -inf  ;;  %v1152_v39 = vsel %vm352_vm8, %v7802_v34, -inf }
 0x41b   :  { %v739_v40 = vpop.f32.mrb[18].mxu0  ;;  %1156 = vmax.xlane.f32.xlu0 %v1155_v38  ;;  %1153 = vmax.xlane.f32.xlu1 %v1152_v39  ;;  %v690_v41 = vpop.f32.mrb[18].mxu1 }
 0x41c   :  { %v6540_v42 = vpop.f32.mrb[19].mxu1  ;;  %v6546_v43 = vpop.f32.mrb[19].mxu0 }
 0x41d   :  { %v7842_v40 = vpop.permute.xlu1 %1423  ;;  %v7844_v41 = vpop.permute.xlu0 %1471 }
 0x421   :  { %v7810_v44 = vpop.f32.mrb[20].mxu1  ;;  %v7812_v45 = vpop.f32.mrb[20].mxu0 }
 0x422   :  { %v6551_v46 = vpop.f32.mrb[21].mxu1  ;;  %v6557_v47 = vpop.f32.mrb[21].mxu0  ;;  %v1161_v48 = vsel %vm352_vm8, %v7812_v45, -inf  ;;  %v1158_v49 = vsel %vm352_vm8, %v7810_v44, -inf }
 0x423   :  { %v837_v50 = vpop.f32.mrb[22].mxu0  ;;  %1162 = vmax.xlane.f32.xlu0 %v1161_v48  ;;  %1159 = vmax.xlane.f32.xlu1 %v1158_v49  ;;  %v788_v51 = vpop.f32.mrb[22].mxu1 }
 0x424   :  { %v6552_v52 = vpop.f32.mrb[23].mxu1  ;;  %v6558_v53 = vpop.f32.mrb[23].mxu0 }
 0x425   :  { %v7846_v42 = vpop.permute.xlu1 %1519  ;;  %v7848_v43 = vpop.permute.xlu0 %1663 }
 0x429   :  { %v7818_v54 = vpop.f32.mrb[24].mxu1  ;;  %v7820_v55 = vpop.f32.mrb[24].mxu0 }
 0x42a   :  { %v6563_v57 = vpop.f32.mrb[25].mxu1  ;;  %v6569_v58 = vpop.f32.mrb[25].mxu0  ;;  %v1167_v60 = vsel %vm352_vm8, %v7820_v55, -inf  ;;  %v1164_v61 = vsel %vm352_vm8, %v7818_v54, -inf }
 0x42b   :  { %v935_v62 = vpop.f32.mrb[26].mxu0  ;;  %1168 = vmax.xlane.f32.xlu0 %v1167_v60  ;;  %1165 = vmax.xlane.f32.xlu1 %v1164_v61  ;;  %v886_v63 = vpop.f32.mrb[26].mxu1 }
 0x42c   :  { %v6564_v0 = vpop.f32.mrb[27].mxu1  ;;  %v6570_v1 = vpop.f32.mrb[27].mxu0 }
 0x42d   :  { %v7852_v46 = vpop.permute.xlu1 %1615  ;;  %v7854_v47 = vpop.permute.xlu0 %1567 }
 0x431   :  { %v7826_v4 = vpop.f32.mrb[28].mxu1  ;;  %v7828_v6 = vpop.f32.mrb[28].mxu0 }
 0x432   :  { %v6575_v7 = vpop.f32.mrb[29].mxu1  ;;  %v6581_v8 = vpop.f32.mrb[29].mxu0  ;;  %v1173_v9 = vsel %vm352_vm8, %v7828_v6, -inf  ;;  %v1170_v11 = vsel %vm352_vm8, %v7826_v4, -inf }
 0x433   :  { %v1033_v13 = vpop.f32.mrb[30].mxu0  ;;  %1174 = vmax.xlane.f32.xlu0 %v1173_v9  ;;  %1171 = vmax.xlane.f32.xlu1 %v1170_v11  ;;  %v984_v14 = vpop.f32.mrb[30].mxu1 }
 0x434   :  { %v6582_v19 = vpop.f32.mrb[31].mxu0  ;;  %v6576_v21 = vpop.f32.mrb[31].mxu1 }
 0x435   :  { %v7860_v49 = vpop.permute.xlu1 %1711 }
 0x436   :  { %v1136_v48 = vpop.xlane.xlu0 %1135 }
 0x439   :  { %v7834_v24 = vpop.f32.mrb[32].mxu1  ;;  %v7836_v25 = vpop.f32.mrb[32].mxu0 }
 0x43a   :  { %v6587_v26 = vpop.f32.mrb[33].mxu1  ;;  %v6593_v27 = vpop.f32.mrb[33].mxu0  ;;  %v1179_v30 = vsel %vm352_vm8, %v7836_v25, -inf  ;;  %v1176_v33 = vsel %vm352_vm8, %v7834_v24, -inf }
 0x43b   :  { %v1131_v36 = vpop.f32.mrb[34].mxu0  ;;  %1180 = vmax.xlane.f32.xlu0 %v1179_v30  ;;  %1177 = vmax.xlane.f32.xlu1 %v1176_v33  ;;  %v1082_v37 = vpop.f32.mrb[34].mxu1 }
 0x43c   :  { %v6588_v38 = vpop.f32.mrb[35].mxu1  ;;  %v6594_v39 = vpop.f32.mrb[35].mxu0 }
 0x43d   :  { %v1139_v51 = vpop.xlane.xlu1 %1138 }
 0x43e   :  { %v1142_v50 = vpop.xlane.xlu0 %1141  ;;  %v1183_v52 = vsub.f32 %v7778_v56, %v1139_v51 }
 0x440   :  { %v1200_v57 = vmul.f32 1.442695, %v1183_v52 }
 0x442   :  { %v1145_v53 = vpop.xlane.xlu0 %1144  ;;  %7204 = vpow2.f32 %v1200_v57 }
 0x443   :  { %v1185_v58 = vsub.f32 %v7786_v2, %v1145_v53 }
 0x445   :  { %v1204_v61 = vmul.f32 1.442695, %v1185_v58 }
 0x44c   :  { %1807 = vrot.lane.b32.xlu1 %v7642_v12, %s9145_s23  ;;  %v1182_v12 = vsub.f32 %v7782_v59, %v1136_v48 }
 0x44e   :  { %v1198_v60 = vmul.f32 1.442695, %v1182_v12 }
 0x450   :  { %1855 = vrot.lane.b32.xlu1 %v7638_v10, %s9145_s23  ;;  %v1184_v10 = vsub.f32 %v7788_v5, %v1142_v50  ;;  %7206 = vpow2.f32 %v1198_v60 }
 0x451   :  { %1759 = vrot.lane.b32.xlu0 %v7628_v3, %s9145_s23  ;;  %7208 = vpow2.f32 %v1204_v61  ;;  %v7866_v3 = vpop.eup %7204 }
 0x452   :  { %v1202_v62 = vmul.f32 1.442695, %v1184_v10  ;;  %v1233_v56 = vsel %vm352_vm8, %v7866_v3, 0.0 }
 0x454   :  { %7210 = vpow2.f32 %v1202_v62 }
 0x45a   :  { %v7868_v63 = vpop.eup %7206 }
 0x45b   :  { %v7872_v59 = vpop.eup %7208  ;;  %v1230_v2 = vsel %vm352_vm8, %v7868_v63, 0.0 }
 0x45c   :  { %v1239_v5 = vsel %vm352_vm8, %v7872_v59, 0.0 }
 0x45e   :  { %v7878_v0 = vpop.eup %7210 }
 0x45f   :  { %v1236_v1 = vsel %vm352_vm8, %v7878_v0, 0.0 }
 0x470   :  { %1234 = vadd.xlane.f32.xlu0 %v1233_v56 }
 0x474   :  { %1231 = vadd.xlane.f32.xlu1 %v1230_v2  ;;  %1240 = vadd.xlane.f32.xlu0 %v1239_v5 }
 0x478   :  { %1237 = vadd.xlane.f32.xlu1 %v1236_v1 }
 0x4a0   :  { %v1148_v7 = vpop.xlane.xlu1 %1147  ;;  %v1151_v8 = vpop.xlane.xlu0 %1150 }
 0x4a1   :  { %v1186_v9 = vsub.f32 %v7794_v16, %v1148_v7  ;;  %v1187_v11 = vsub.f32 %v7796_v18, %v1151_v8 }
 0x4a3   :  { %v1206_v13 = vmul.f32 1.442695, %v1186_v9  ;;  %v1208_v14 = vmul.f32 1.442695, %v1187_v11 }
 0x4a5   :  { %7212 = vpow2.f32 %v1206_v13 }
 0x4a6   :  { %7214 = vpow2.f32 %v1208_v14 }
 0x4a8   :  { %v1154_v19 = vpop.xlane.xlu1 %1153  ;;  %v1157_v21 = vpop.xlane.xlu0 %1156 }
 0x4a9   :  { %v1188_v26 = vsub.f32 %v7802_v34, %v1154_v19  ;;  %v1189_v27 = vsub.f32 %v7804_v35, %v1157_v21 }
 0x4ab   :  { %v1210_v30 = vmul.f32 1.442695, %v1188_v26  ;;  %v1212_v33 = vmul.f32 1.442695, %v1189_v27 }
 0x4ad   :  { %7216 = vpow2.f32 %v1210_v30 }
 0x4ae   :  { %7218 = vpow2.f32 %v1212_v33 }
 0x4af   :  { %v7886_v36 = vpop.eup %7212 }
 0x4b0   :  { %v7888_v37 = vpop.eup %7214  ;;  %v1160_v16 = vpop.xlane.xlu1 %1159  ;;  %v1242_v38 = vsel %vm352_vm8, %v7886_v36, 0.0 }
 0x4b1   :  { %v1163_v18 = vpop.xlane.xlu0 %1162  ;;  %v1190_v39 = vsub.f32 %v7810_v44, %v1160_v16  ;;  %1243 = vadd.xlane.f32.xlu1 %v1242_v38  ;;  %v1245_v34 = vsel %vm352_vm8, %v7888_v37, 0.0 }
 0x4b2   :  { %v1191_v48 = vsub.f32 %v7812_v45, %v1163_v18  ;;  %1246 = vadd.xlane.f32.xlu0 %v1245_v34 }
 0x4b3   :  { %v1214_v35 = vmul.f32 1.442695, %v1190_v39 }
 0x4b4   :  { %v1216_v50 = vmul.f32 1.442695, %v1191_v48 }
 0x4b5   :  { %7220 = vpow2.f32 %v1214_v35 }
 0x4b6   :  { %7222 = vpow2.f32 %v1216_v50 }
 0x4b7   :  { %v7896_v51 = vpop.eup %7216 }
 0x4b8   :  { %v7898_v52 = vpop.eup %7218  ;;  %v1166_v53 = vpop.xlane.xlu1 %1165  ;;  %v1248_v44 = vsel %vm352_vm8, %v7896_v51, 0.0 }
 0x4b9   :  { %v1169_v12 = vpop.xlane.xlu0 %1168  ;;  %v1192_v45 = vsub.f32 %v7818_v54, %v1166_v53  ;;  %1249 = vadd.xlane.f32.xlu1 %v1248_v44  ;;  %v1251_v58 = vsel %vm352_vm8, %v7898_v52, 0.0 }
 0x4ba   :  { %v1193_v57 = vsub.f32 %v7820_v55, %v1169_v12  ;;  %1252 = vadd.xlane.f32.xlu0 %v1251_v58 }
 0x4bb   :  { %v1218_v60 = vmul.f32 1.442695, %v1192_v45 }
 0x4bc   :  { %v1220_v10 = vmul.f32 1.442695, %v1193_v57 }
 0x4bd   :  { %7224 = vpow2.f32 %v1218_v60  ;;  %v1477_v60 = vsel %vm1331_vm9, %v7844_v41, 0 }
 0x4be   :  { %7226 = vpow2.f32 %v1220_v10 }
 0x4bf   :  { %v7906_v61 = vpop.eup %7220 }
 0x4c0   :  { %v7908_v62 = vpop.eup %7222  ;;  %v1254_v56 = vsel %vm352_vm8, %v7906_v61, 0.0  ;;  %v1172_v7 = vpop.xlane.xlu1 %1171 }
 0x4c1   :  { %1255 = vadd.xlane.f32.xlu1 %v1254_v56  ;;  %v1257_v54 = vsel %vm352_vm8, %v7908_v62, 0.0  ;;  %v1175_v8 = vpop.xlane.xlu0 %1174  ;;  %v1194_v9 = vsub.f32 %v7826_v4, %v1172_v7 }
 0x4c2   :  { %1258 = vadd.xlane.f32.xlu0 %v1257_v54  ;;  %v1195_v11 = vsub.f32 %v7828_v6, %v1175_v8 }
 0x4c3   :  { %v1222_v19 = vmul.f32 1.442695, %v1194_v9 }
 0x4c4   :  { %v1224_v26 = vmul.f32 1.442695, %v1195_v11 }
 0x4c5   :  { %7228 = vpow2.f32 %v1222_v19 }
 0x4c6   :  { %7230 = vpow2.f32 %v1224_v26 }
 0x4c7   :  { %v7914_v55 = vpop.eup %7224 }
 0x4c8   :  { %v7916_v2 = vpop.eup %7226  ;;  %v1260_v5 = vsel %vm352_vm8, %v7914_v55, 0.0  ;;  %v1178_v13 = vpop.xlane.xlu1 %1177 }
 0x4c9   :  { %1261 = vadd.xlane.f32.xlu1 %v1260_v5  ;;  %v1263_v1 = vsel %vm352_vm8, %v7916_v2, 0.0  ;;  %v1181_v14 = vpop.xlane.xlu0 %1180  ;;  %v1196_v21 = vsub.f32 %v7834_v24, %v1178_v13  ;;  %v1429_v5 = vsel %vm1331_vm9, %v7842_v40, 0 }
 0x4ca   :  { %1264 = vadd.xlane.f32.xlu0 %v1263_v1  ;;  %v1197_v27 = vsub.f32 %v7836_v25, %v1181_v14  ;;  %v1621_v14 = vsel %vm1331_vm9, %v7852_v46, 0 }
 0x4cb   :  { %v1226_v30 = vmul.f32 1.442695, %v1196_v21  ;;  %v1669_v21 = vsel %vm1331_vm9, %v7848_v43, 0 }
 0x4cd   :  { %7232 = vpow2.f32 %v1226_v30  ;;  %v7932_v33 = vpop.permute.xlu0 %1759 }
 0x4cf   :  { %v7934_v4 = vpop.eup %7228 }
 0x4d0   :  { %v7936_v6 = vpop.eup %7230  ;;  %v1266_v25 = vsel %vm352_vm8, %v7934_v4, 0.0 }
 0x4d1   :  { %v1269_v38 = vsel %vm352_vm8, %v7936_v6, 0.0 }
 0x4d7   :  { %v7942_v18 = vpop.eup %7232 }
 0x4d8   :  { %v1272_v35 = vsel %vm352_vm8, %v7942_v18, 0.0 }
 0x4da   :  { %1951 = vrot.lane.b32.xlu1 %v7648_v17, %s9145_s23  ;;  %v1228_v17 = vmul.f32 1.442695, %v1197_v27 }
 0x4dc   :  { %7234 = vpow2.f32 %v1228_v17  ;;  %v1717_v17 = vsel %vm1331_vm9, %v7860_v49, 0 }
 0x4e0   :  { %1903 = vrot.lane.b32.xlu0 %v7653_v20, %s9145_s23  ;;  %v7930_v20 = vpop.permute.xlu1 %1807 }
 0x4e4   :  { %v7938_v16 = vpop.permute.xlu1 %1855 }
 0x4e6   :  { %v7946_v39 = vpop.eup %7234 }
 0x4e7   :  { %v1275_v50 = vsel %vm352_vm8, %v7946_v39, 0.0 }
 0x4fd   :  { %v1235_v24 = vpop.xlane.xlu0 %1234 }
 0x4fe   :  { %7236 = vrcp.f32 %v1235_v24  ;;  %1267 = vadd.xlane.f32.xlu1 %v1266_v25  ;;  %v1765_v25 = vsel %vm1331_vm9, %v7932_v33, 0 }
 0x4ff   :  { %1270 = vadd.xlane.f32.xlu0 %v1269_v38 }
 0x501   :  { %v1232_v48 = vpop.xlane.xlu1 %1231  ;;  %v1241_v34 = vpop.xlane.xlu0 %1240 }
 0x502   :  { %7238 = vrcp.f32 %v1232_v48  ;;  %1273 = vadd.xlane.f32.xlu1 %v1272_v35  ;;  %v1813_v35 = vsel %vm1331_vm9, %v7930_v20, 0 }
 0x503   :  { %7240 = vrcp.f32 %v1241_v34  ;;  %1276 = vadd.xlane.f32.xlu0 %v1275_v50  ;;  %v1861_v50 = vsel %vm1331_vm9, %v7938_v16, 0 }
 0x505   :  { %v1238_v53 = vpop.xlane.xlu1 %1237 }
 0x506   :  { %7242 = vrcp.f32 %v1238_v53 }
 0x508   :  { %v7237_v12 = vpop.eup %7236 }
 0x509   :  { %v1295_v44 = vmul.f32 %v7237_v12, %v7866_v3 }
 0x50b   :  { %v1311_v45 = vpack.c.bf16 %v1295_v44, %v1295_v44 }
 0x50c   :  { %v7239_v57 = vpop.eup %7238 }
 0x50d   :  { %v7241_v58 = vpop.eup %7240  ;;  %6604 = vmatmul.mubr.msk.bf16.vlgmr.msra.gmra.mrb[36].mxu0 %vm352_vm8, %v1311_v45  ;;  %v1294_v10 = vmul.f32 %v7239_v57, %v7868_v63 }
 0x50e   :  { %6614 = vmatpush3.bf16.msra.mxu0 %v1477_v60  ;;  %6615 = vmatprep.mubr.msk.bf16.mxu0 %vm7400_vm7, %v7397_v15  ;;  %v1297_v54 = vmul.f32 %v7241_v58, %v7872_v59  ;;  %v1573_v59 = vsel %vm1331_vm9, %v7854_v47, 0 }
 0x50f   :  { %v1310_v56 = vpack.c.bf16 %v1294_v10, %v1294_v10  ;;  %6625 = vmatprep.subr.bf16.mxu0 %v7397_v15 }
 0x510   :  { %v7243_v3 = vpop.eup %7242  ;;  %v1313_v41 = vpack.c.bf16 %v1297_v54, %v1297_v54 }
 0x511   :  { %6598 = vmatmul.mubr.msk.bf16.vlgmr.msra.gmra.mrb[36].mxu1 %vm352_vm8, %v1310_v56  ;;  %v1296_v63 = vmul.f32 %v7243_v3, %v7878_v0 }
 0x512   :  { %6608 = vmatpush3.bf16.msra.mxu1 %v1429_v5  ;;  %6609 = vmatprep.mubr.msk.bf16.mxu1 %vm7400_vm7, %v7397_v15 }
 0x513   :  { %2047 = vrot.lane.b32.xlu1 %v7662_v22, %s9145_s23  ;;  %6619 = vmatprep.subr.bf16.mxu1 %v7397_v15  ;;  %v1312_v40 = vpack.c.bf16 %v1296_v63, %v1296_v63  ;;  %v1525_v22 = vsel %vm1331_vm9, %v7846_v42, 0 }
 0x515   :  { %6616 = vmatmul.mubr.msk.bf16.vlgmr.msra.gmra.mrb[40].mxu0 %vm352_vm8, %v1313_v41 }
 0x516   :  { %6626 = vmatpush3.bf16.msra.mxu0 %v1573_v59  ;;  %6627 = vmatprep.mubr.msk.bf16.mxu0 %vm7400_vm7, %v7397_v15 }
 0x517   :  { %6637 = vmatprep.subr.bf16.mxu0 %v7397_v15 }
 0x519   :  { %1999 = vrot.lane.b32.xlu0 %v7666_v23, %s9145_s23  ;;  %6610 = vmatmul.mubr.msk.bf16.vlgmr.msra.gmra.mrb[40].mxu1 %vm352_vm8, %v1312_v40  ;;  %s7407_s23 = smov 32  }
 0x51a   :  { %6620 = vmatpush3.bf16.msra.mxu1 %v1525_v22  ;;  %6621 = vmatprep.mubr.msk.bf16.mxu1 %vm7400_vm7, %v7397_v15 }
 0x51b   :  { %6631 = vmatprep.subr.bf16.mxu1 %v7397_v15 }
 0x53e   :  { %v1244_v47 = vpop.xlane.xlu1 %1243 }
 0x53f   :  { %7244 = vrcp.f32 %v1244_v47  ;;  %v1247_v0 = vpop.xlane.xlu0 %1246 }
 0x540   :  { %7246 = vrcp.f32 %v1247_v0 }
 0x546   :  { %v1250_v1 = vpop.xlane.xlu1 %1249 }
 0x547   :  { %7248 = vrcp.f32 %v1250_v1  ;;  %v1253_v7 = vpop.xlane.xlu0 %1252 }
 0x548   :  { %7250 = vrcp.f32 %v1253_v7 }
 0x549   :  { %v7245_v42 = vpop.eup %7244 }
 0x54a   :  { %v7247_v8 = vpop.eup %7246  ;;  %v1298_v23 = vmul.f32 %v7245_v42, %v7886_v36 }
 0x54b   :  { %v1299_v9 = vmul.f32 %v7247_v8, %v7888_v37 }
 0x54c   :  { %v1314_v11 = vpack.c.bf16 %v1298_v23, %v1298_v23 }
 0x54d   :  { %v1315_v13 = vpack.c.bf16 %v1299_v9, %v1299_v9 }
 0x54e   :  { %6622 = vmatmul.mubr.msk.bf16.vlgmr.msra.gmra.mrb[44].mxu1 %vm352_vm8, %v1314_v11  ;;  %v1256_v19 = vpop.xlane.xlu1 %1255 }
 0x54f   :  { %6632 = vmatpush3.bf16.msra.mxu1 %v1621_v14  ;;  %7252 = vrcp.f32 %v1256_v19  ;;  %6628 = vmatmul.mubr.msk.bf16.vlgmr.msra.gmra.mrb[44].mxu0 %vm352_vm8, %v1315_v13  ;;  %v1259_v26 = vpop.xlane.xlu0 %1258 }
 0x550   :  { %6638 = vmatpush3.bf16.msra.mxu0 %v1669_v21  ;;  %7254 = vrcp.f32 %v1259_v26  ;;  %6633 = vmatprep.mubr.msk.bf16.mxu1 %vm7400_vm7, %v7397_v15 }
 0x551   :  { %v7249_v36 = vpop.eup %7248  ;;  %6639 = vmatprep.mubr.msk.bf16.mxu0 %vm7400_vm7, %v7397_v15  ;;  %6643 = vmatprep.subr.bf16.mxu1 %v7397_v15 }
 0x552   :  { %v7251_v46 = vpop.eup %7250  ;;  %6649 = vmatprep.subr.bf16.mxu0 %v7397_v15  ;;  %v1300_v43 = vmul.f32 %v7249_v36, %v7896_v51 }
 0x553   :  { %v1301_v37 = vmul.f32 %v7251_v46, %v7898_v52 }
 0x554   :  { %v1316_v27 = vpack.c.bf16 %v1300_v43, %v1300_v43 }
 0x555   :  { %v1317_v30 = vpack.c.bf16 %v1301_v37, %v1301_v37 }
 0x556   :  { %6634 = vmatmul.mubr.msk.bf16.vlgmr.msra.gmra.mrb[48].mxu1 %vm352_vm8, %v1316_v27  ;;  %v1262_v24 = vpop.xlane.xlu1 %1261 }
 0x557   :  { %6644 = vmatpush3.bf16.msra.mxu1 %v1717_v17  ;;  %7256 = vrcp.f32 %v1262_v24  ;;  %6640 = vmatmul.mubr.msk.bf16.vlgmr.msra.gmra.mrb[48].mxu0 %vm352_vm8, %v1317_v30  ;;  %v1265_v38 = vpop.xlane.xlu0 %1264 }
 0x558   :  { %6650 = vmatpush3.bf16.msra.mxu0 %v1765_v25  ;;  %7258 = vrcp.f32 %v1265_v38  ;;  %6645 = vmatprep.mubr.msk.bf16.mxu1 %vm7400_vm7, %v7397_v15 }
 0x559   :  { %v7253_v51 = vpop.eup %7252  ;;  %6651 = vmatprep.mubr.msk.bf16.mxu0 %vm7400_vm7, %v7397_v15  ;;  %6655 = vmatprep.subr.bf16.mxu1 %v7397_v15 }
 0x55a   :  { %v7255_v49 = vpop.eup %7254  ;;  %6661 = vmatprep.subr.bf16.mxu0 %v7397_v15  ;;  %v1302_v52 = vmul.f32 %v7253_v51, %v7906_v61  ;;  %v1952_v12 = vpop.permute.xlu1 %1951 }
 0x55b   :  { %v1303_v33 = vmul.f32 %v7255_v49, %v7908_v62  ;;  %v1904_v53 = vpop.permute.xlu0 %1903  ;;  %v1957_v58 = vsel %vm1331_vm9, %v1952_v12, 0 }
 0x55c   :  { %v1318_v48 = vpack.c.bf16 %v1302_v52, %v1302_v52  ;;  %v1909_v57 = vsel %vm1331_vm9, %v1904_v53, 0 }
 0x55d   :  { %v1319_v34 = vpack.c.bf16 %v1303_v33, %v1303_v33 }
 0x55e   :  { %6646 = vmatmul.mubr.msk.bf16.vlgmr.msra.gmra.mrb[52].mxu1 %vm352_vm8, %v1318_v48 }
 0x55f   :  { %6652 = vmatmul.mubr.msk.bf16.vlgmr.msra.gmra.mrb[52].mxu0 %vm352_vm8, %v1319_v34  ;;  %6656 = vmatpush3.bf16.msra.mxu1 %v1813_v35 }
 0x560   :  { %6662 = vmatpush3.bf16.msra.mxu0 %v1861_v50  ;;  %6657 = vmatprep.mubr.msk.bf16.mxu1 %vm7400_vm7, %v7397_v15 }
 0x561   :  { %v7257_v61 = vpop.eup %7256  ;;  %6663 = vmatprep.mubr.msk.bf16.mxu0 %vm7400_vm7, %v7397_v15  ;;  %6667 = vmatprep.subr.bf16.mxu1 %v7397_v15 }
 0x562   :  { %v7259_v62 = vpop.eup %7258  ;;  %6673 = vmatprep.subr.bf16.mxu0 %v7397_v15  ;;  %v1304_v20 = vmul.f32 %v7257_v61, %v7914_v55 }
 0x563   :  { %v1305_v16 = vmul.f32 %v7259_v62, %v7916_v2 }
 0x564   :  { %v1320_v44 = vpack.c.bf16 %v1304_v20, %v1304_v20 }
 0x565   :  { %v1321_v45 = vpack.c.bf16 %v1305_v16, %v1305_v16 }
 0x566   :  { %6658 = vmatmul.mubr.msk.bf16.vlgmr.msra.gmra.mrb[56].mxu1 %vm352_vm8, %v1320_v44 }
 0x567   :  { %6664 = vmatmul.mubr.msk.bf16.vlgmr.msra.gmra.mrb[56].mxu0 %vm352_vm8, %v1321_v45  ;;  %6668 = vmatpush3.bf16.msra.mxu1 %v1909_v57 }
 0x568   :  { %6674 = vmatpush3.bf16.msra.mxu0 %v1957_v58  ;;  %6669 = vmatprep.mubr.msk.bf16.mxu1 %vm7400_vm7, %v7397_v15 }
 0x569   :  { %6675 = vmatprep.mubr.msk.bf16.mxu0 %vm7400_vm7, %v7397_v15  ;;  %6679 = vmatprep.subr.bf16.mxu1 %v7397_v15 }
 0x56a   :  { %6685 = vmatprep.subr.bf16.mxu0 %v7397_v15 }
 0x58b   :  { %v1268_v55 = vpop.xlane.xlu1 %1267 }
 0x58c   :  { %7260 = vrcp.f32 %v1268_v55  ;;  %v1271_v2 = vpop.xlane.xlu0 %1270 }
 0x58d   :  { %7262 = vrcp.f32 %v1271_v2 }
 0x58f   :  { %v1274_v60 = vpop.xlane.xlu1 %1273 }
 0x590   :  { %7264 = vrcp.f32 %v1274_v60  ;;  %v1277_v10 = vpop.xlane.xlu0 %1276 }
 0x591   :  { %7266 = vrcp.f32 %v1277_v10 }
 0x593   :  { %v2048_v63 = vpop.permute.xlu1 %2047 }
 0x594   :  { %v2000_v5 = vpop.permute.xlu0 %1999  ;;  %v2053_v1 = vsel %vm1331_vm9, %v2048_v63, 0 }
 0x595   :  { %v2005_v0 = vsel %vm1331_vm9, %v2000_v5, 0 }
 0x596   :  { %v7261_v56 = vpop.eup %7260 }
 0x597   :  { %v7263_v54 = vpop.eup %7262  ;;  %v1306_v3 = vmul.f32 %v7261_v56, %v7934_v4 }
 0x598   :  { %v1307_v41 = vmul.f32 %v7263_v54, %v7936_v6 }
 0x599   :  { %v1322_v59 = vpack.c.bf16 %v1306_v3, %v1306_v3 }
 0x59a   :  { %v7265_v40 = vpop.eup %7264  ;;  %v1323_v22 = vpack.c.bf16 %v1307_v41, %v1307_v41 }
 0x59b   :  { %v7267_v47 = vpop.eup %7266  ;;  %6670 = vmatmul.mubr.msk.bf16.vlgmr.msra.gmra.mrb[60].mxu1 %vm352_vm8, %v1322_v59  ;;  %v1308_v4 = vmul.f32 %v7265_v40, %v7942_v18 }
 0x59c   :  { %6676 = vmatmul.mubr.msk.bf16.vlgmr.msra.gmra.mrb[60].mxu0 %vm352_vm8, %v1323_v22  ;;  %6680 = vmatpush3.bf16.msra.mxu1 %v2005_v0  ;;  %v1309_v6 = vmul.f32 %v7267_v47, %v7946_v39  ;;  %v7116_v47 = vld [vmem:[%s9160_s26] sm:$0xff]   ;;  %v7117_v0 = vld [vmem:[%s9160_s26 + $0x8] sm:$0xff]  }
 0x59d   :  { %6686 = vmatpush3.bf16.msra.mxu0 %v2053_v1  ;;  %6681 = vmatprep.mubr.msk.bf16.mxu1 %vm7400_vm7, %v7397_v15  ;;  %v1324_v7 = vpack.c.bf16 %v1308_v4, %v1308_v4 }
 0x59e   :  { %6687 = vmatprep.mubr.msk.bf16.mxu0 %vm7400_vm7, %v7397_v15  ;;  %v1325_v42 = vpack.c.bf16 %v1309_v6, %v1309_v6  ;;  %6691 = vmatprep.subr.bf16.mxu1 %v7116_v47 }
 0x5a3   :  { %6682 = vmatmul.mubr.msk.bf16.vlgmr.msra.gmra.mrb[64].mxu1 %vm352_vm8, %v1324_v7 }
 0x5a4   :  { %6688 = vmatmul.mubr.msk.bf16.vlgmr.msra.gmra.mrb[64].mxu0 %vm352_vm8, %v1325_v42  ;;  %6692 = vmatpush3.bf16.msra.mxu1 %v7116_v47 }
 0x5a5   :  { %6693 = vmatprep.subr.bf16.mxu1 %v7117_v0 }
 0x5a8   :  { %6694 = vmatpush3.bf16.msra.mxu1 %v7117_v0 }
 0x5e0   :  { %v8052_v8 = vpop.f32.mrb[36].mxu0 }
 0x5e1   :  { %v6605_v23 = vpop.f32.mrb[37].mxu0 }
 0x5e2   :  { %v1420_v9 = vpop.f32.mrb[38].mxu0 }
 0x5e3   :  { %v6606_v11 = vpop.f32.mrb[39].mxu0 }
 0x5e4   :  { %v8054_v13 = vpop.f32.mrb[36].mxu1 }
 0x5e5   :  { %v6599_v14 = vpop.f32.mrb[37].mxu1 }
 0x5e6   :  { %v1372_v18 = vpop.f32.mrb[38].mxu1 }
 0x5e7   :  { %v6600_v19 = vpop.f32.mrb[39].mxu1 }
 0x5e8   :  { %v8056_v21 = vpop.f32.mrb[40].mxu0 }
 0x5e9   :  { %v6617_v26 = vpop.f32.mrb[41].mxu0 }
 0x5ea   :  { %v1516_v39 = vpop.f32.mrb[42].mxu0 }
 0x5eb   :  { %v6618_v36 = vpop.f32.mrb[43].mxu0 }
 0x5ec   :  { %v8058_v46 = vpop.f32.mrb[40].mxu1 }
 0x5ed   :  { %v6611_v43 = vpop.f32.mrb[41].mxu1 }
 0x5ee   :  { %v1468_v37 = vpop.f32.mrb[42].mxu1 }
 0x5ef   :  { %v6612_v27 = vpop.f32.mrb[43].mxu1 }
 0x621   :  { %v1561_v30 = vpop.f32.mrb[44].mxu1 }
 0x622   :  { %v1609_v17 = vpop.f32.mrb[44].mxu0  ;;  %v6623_v24 = vpop.f32.mrb[45].mxu1 }
 0x623   :  { %v7024_v25 = vpack.i.bf16 %v1609_v17, %v1561_v30  ;;  %v6629_v38 = vpop.f32.mrb[45].mxu0  ;;  %v1564_v51 = vpop.f32.mrb[46].mxu1 }
 0x624   :  { %v1612_v49 = vpop.f32.mrb[46].mxu0  ;;  %v6624_v52 = vpop.f32.mrb[47].mxu1 }
 0x625   :  { %7025 = vrot.lane.b32.xlu0 %v7024_v25, %s9143_s1  ;;  %v6630_v33 = vpop.f32.mrb[47].mxu0 }
 0x629   :  { %v1657_v48 = vpop.f32.mrb[48].mxu1 }
 0x62a   :  { %v1705_v34 = vpop.f32.mrb[48].mxu0  ;;  %v6635_v35 = vpop.f32.mrb[49].mxu1 }
 0x62b   :  { %v7029_v50 = vpack.i.bf16 %v1705_v34, %v1657_v48  ;;  %v6641_v61 = vpop.f32.mrb[49].mxu0  ;;  %v1660_v62 = vpop.f32.mrb[50].mxu1 }
 0x62c   :  { %v1708_v20 = vpop.f32.mrb[50].mxu0  ;;  %v6636_v53 = vpop.f32.mrb[51].mxu1 }
 0x62d   :  { %7030 = vrot.lane.b32.xlu1 %v7029_v50, %s9143_s1  ;;  %v6642_v16 = vpop.f32.mrb[51].mxu0  ;;  %s9162_s1 = sld [smem:[#allocation11_spill]] }
 0x631   :  { %v1753_v12 = vpop.f32.mrb[52].mxu1 }
 0x632   :  { %v1801_v44 = vpop.f32.mrb[52].mxu0  ;;  %v6647_v45 = vpop.f32.mrb[53].mxu1 }
 0x633   :  { %v7034_v57 = vpack.i.bf16 %v1801_v44, %v1753_v12  ;;  %v6653_v58 = vpop.f32.mrb[53].mxu0  ;;  %v1756_v55 = vpop.f32.mrb[54].mxu1 }
 0x634   :  { %v1804_v2 = vpop.f32.mrb[54].mxu0  ;;  %v6648_v60 = vpop.f32.mrb[55].mxu1 }
 0x635   :  { %7035 = vrot.lane.b32.xlu0 %v7034_v57, %s9141_s5  ;;  %v6654_v10 = vpop.f32.mrb[55].mxu0 }
 0x639   :  { %v1849_v56 = vpop.f32.mrb[56].mxu1 }
 0x63a   :  { %v1897_v54 = vpop.f32.mrb[56].mxu0  ;;  %v6659_v3 = vpop.f32.mrb[57].mxu1 }
 0x63b   :  { %v7039_v5 = vpack.i.bf16 %v1897_v54, %v1849_v56  ;;  %v6665_v41 = vpop.f32.mrb[57].mxu0  ;;  %v1852_v63 = vpop.f32.mrb[58].mxu1 }
 0x63c   :  { %v1900_v59 = vpop.f32.mrb[58].mxu0  ;;  %v6660_v40 = vpop.f32.mrb[59].mxu1 }
 0x63d   :  { %7040 = vrot.lane.b32.xlu1 %v7039_v5, %s9141_s5  ;;  %v6666_v22 = vpop.f32.mrb[59].mxu0 }
 0x66e   :  { %v1945_v1 = vpop.f32.mrb[60].mxu1 }
 0x66f   :  { %v1993_v4 = vpop.f32.mrb[60].mxu0  ;;  %v6671_v6 = vpop.f32.mrb[61].mxu1 }
 0x670   :  { %v7044_v7 = vpack.i.bf16 %v1993_v4, %v1945_v1  ;;  %v6677_v42 = vpop.f32.mrb[61].mxu0  ;;  %v1948_v23 = vpop.f32.mrb[62].mxu1 }
 0x671   :  { %v1996_v9 = vpop.f32.mrb[62].mxu0  ;;  %v6672_v11 = vpop.f32.mrb[63].mxu1 }
 0x672   :  { %7045 = vrot.lane.b32.xlu0 %v7044_v7, %s9139_s3  ;;  %v6678_v14 = vpop.f32.mrb[63].mxu0 }
 0x676   :  { %v2041_v18 = vpop.f32.mrb[64].mxu1 }
 0x677   :  { %v2089_v19 = vpop.f32.mrb[64].mxu0  ;;  %v6683_v26 = vpop.f32.mrb[65].mxu1 }
 0x678   :  { %v7049_v39 = vpack.i.bf16 %v2089_v19, %v2041_v18  ;;  %v6689_v36 = vpop.f32.mrb[65].mxu0  ;;  %v2044_v43 = vpop.f32.mrb[66].mxu1 }
 0x679   :  { %v2092_v37 = vpop.f32.mrb[66].mxu0  ;;  %v6684_v27 = vpop.f32.mrb[67].mxu1 }
 0x67a   :  { %v6690_v30 = vpop.f32.mrb[67].mxu0  ;;  %7050 = vrot.lane.b32.xlu1 %v7049_v39, %s9139_s3  ;;  %s9167_s3 = smov 24  }
 0x697   :  { %v7026_v17 = vpop.permute.xlu0 %7025 }
 0x698   :  { %v7028_v25 = vunpack.i.h.bf16 %v7026_v17  ;;  %v7027_v38 = vunpack.i.l.bf16 %v7026_v17 }
 0x69a   :  { %v2144_v48 = vsel %vm352_vm8, %v8052_v8, %v7028_v25  ;;  %v2143_v34 = vsel %vm352_vm8, %v8054_v13, %v7027_v38 }
 0x69f   :  { %v7031_v52 = vpop.permute.xlu1 %7030 }
 0x6a0   :  { %v7033_v44 = vunpack.i.h.bf16 %v7031_v52  ;;  %v7032_v45 = vunpack.i.l.bf16 %v7031_v52  ;;  %v7118_v52 = vld [vmem:[%s9119_s10] sm:$0xff]  }
 0x6a1   :  { %6699 = vmatprep.subr.bf16.mxu0 %v7118_v52 }
 0x6a2   :  { %v2146_v13 = vsel %vm352_vm8, %v8056_v21, %v7033_v44  ;;  %v2145_v55 = vsel %vm352_vm8, %v8058_v46, %v7032_v45  ;;  %v6016_v21 = vld [vmem:[%s9161_s2] ss:$0 sm:$0xff]  ;;  %6700 = vmatpush3.bf16.msra.mxu0 %v7118_v52 }
 0x6a7   :  { %v7036_v24 = vpop.permute.xlu0 %7035 }
 0x6a8   :  { %v7038_v51 = vunpack.i.h.bf16 %v7036_v24  ;;  %v7037_v49 = vunpack.i.l.bf16 %v7036_v24 }
 0x6aa   :  { %v2148_v61 = vsel %vm2147_vm10, %v2143_v34, %v7037_v49  ;;  %v2149_v62 = vsel %vm2147_vm10, %v2144_v48, %v7038_v51  ;;  %v7120_v48 = vld [vmem:[%s9121_s12] sm:$0xff]   ;;  %v7121_v34 = vld [vmem:[%s9121_s12 + $0x8] sm:$0xff]  }
 0x6ab   :  { %6707 = vmatprep.subr.bf16.mxu1 %v7120_v48 }
 0x6af   :  { %v7041_v20 = vpop.permute.xlu1 %7040 }
 0x6b0   :  { %v7043_v57 = vunpack.i.h.bf16 %v7041_v20  ;;  %v7042_v58 = vunpack.i.l.bf16 %v7041_v20 }
 0x6b2   :  { %v2151_v10 = vsel %vm2147_vm10, %v2146_v13, %v7043_v57  ;;  %v2150_v56 = vsel %vm2147_vm10, %v2145_v55, %v7042_v58  ;;  %v6021_v13 = vld [vmem:[%s9162_s1] ss:$0 sm:$0xff] }
 0x6e4   :  { %v7046_v33 = vpop.permute.xlu0 %7045 }
 0x6e5   :  { %v7048_v35 = vunpack.i.h.bf16 %v7046_v33  ;;  %v7047_v50 = vunpack.i.l.bf16 %v7046_v33  ;;  %v7119_v33 = vld [vmem:[%s9119_s10 + $0x8] sm:$0xff]  }
 0x6e6   :  { %6701 = vmatprep.subr.bf16.mxu0 %v7119_v33 }
 0x6e7   :  { %v2153_v53 = vsel %vm2152_vm11, %v2148_v61, %v7047_v50  ;;  %v2154_v16 = vsel %vm2152_vm11, %v2149_v62, %v7048_v35  ;;  %6702 = vmatpush3.bf16.msra.mxu0 %v7119_v33 }
 0x6e8   :  { %v2157_v12 = vpack.c.bf16 %v2154_v16, %v2153_v53 }
 0x6ea   :  { %6695 = vmatprep.mubr.msk.bf16.mxu1 %vm237_vm6, %v2157_v12 }
 0x6ec   :  { %v7051_v8 = vpop.permute.xlu1 %7050 }
 0x6ed   :  { %v7053_v2 = vunpack.i.h.bf16 %v7051_v8  ;;  %v7052_v60 = vunpack.i.l.bf16 %v7051_v8 }
 0x6ef   :  { %v2156_v54 = vsel %vm2152_vm11, %v2151_v10, %v7053_v2  ;;  %v2155_v3 = vsel %vm2152_vm11, %v2150_v56, %v7052_v60 }
 0x6f0   :  { %v2158_v5 = vpack.c.bf16 %v2156_v54, %v2155_v3  ;;  %v6022_v54 = vld [vmem:[%s9116_s7] ss:$0 sm:$0xff] }
 0x6f2   :  { %6696 = vmatmul.mubr.msk.bf16.vlgmr.msra.gmra.mrb[68].mxu1 %vm237_vm6, %v2158_v5 }
 0x6f3   :  { %6708 = vmatpush3.bf16.msra.mxu1 %v7120_v48 }
 0x6f4   :  { %6709 = vmatprep.subr.bf16.mxu1 %v7121_v34 }
 0x6f7   :  { %6710 = vmatpush3.bf16.msra.mxu1 %v7121_v34 }
 0x7c5   :  { %v6697_v41 = vpop.f32.mrb[68].mxu1 }
 0x7c6   :  { %v2231_v63 = vadd.f32 %v6697_v41, %v6016_v21  ;;  %v2222_v46 = vpop.f32.mrb[69].mxu1 }
 0x7c7   :  { %v2223_v59 = vadd.f32 %v6016_v21, %v2222_v46  ;;  %v6698_v40 = vpop.f32.mrb[70].mxu1 }
 0x7c8   :  { %v2234_v22 = vadd.f32 %v6698_v40, %v6016_v21  ;;  %v2225_v47 = vpop.f32.mrb[71].mxu1  ;;  %v2239_v0 = vadd.f32 %v2231_v63, %v7578_v32 }
 0x7c9   :  { %v2226_v1 = vadd.f32 %v6016_v21, %v2225_v47  ;;  %v2237_v4 = vadd.f32 %v2223_v59, %v7571_v29 }
 0x7ca   :  { %v2240_v6 = vadd.f32 %v7575_v31, %v2234_v22  ;;  %v2249_v9 = vsel %vm237_vm6, %v2239_v0, 0.0 }
 0x7cb   :  { %v2243_v7 = vsel %vm237_vm6, %v2237_v4, 0.0  ;;  %v2238_v42 = vadd.f32 %v7569_v28, %v2226_v1 }
 0x7cc   :  { %2244 = vadd.xlane.f32.xlu0 %v2243_v7  ;;  %v2252_v11 = vsel %vm237_vm6, %v2240_v6, 0.0  ;;  %v6023_v7 = vld [vmem:[%s9120_s11] ss:$0 sm:$0xff] }
 0x7cd   :  { %v2246_v23 = vsel %vm237_vm6, %v2238_v42, 0.0 }
 0x7ce   :  { %2247 = vadd.xlane.f32.xlu1 %v2246_v23 }
 0x7d0   :  { %2250 = vadd.xlane.f32.xlu0 %v2249_v9 }
 0x7d4   :  { %2253 = vadd.xlane.f32.xlu0 %v2252_v11 }
 0x859   :  { %v2245_v32 = vpop.xlane.xlu0 %2244 }
 0x85a   :  { %v2256_v14 = vmul.f32 0.03125, %v2245_v32 }
 0x85b   :  { %v2248_v18 = vpop.xlane.xlu1 %2247 }
 0x85c   :  { %v2260_v29 = vsub.f32 %v2237_v4, %v2256_v14  ;;  %v2257_v19 = vmul.f32 0.03125, %v2248_v18  ;;  %v7122_v4 = vld [vmem:[%s9121_s12 + $0x10] sm:$0xff]  }
 0x85d   :  { %v2251_v31 = vpop.xlane.xlu0 %2250  ;;  %6711 = vmatprep.subr.bf16.mxu1 %v7122_v4 }
 0x85e   :  { %v2261_v26 = vsub.f32 %v2238_v42, %v2257_v19  ;;  %v2258_v39 = vmul.f32 0.03125, %v2251_v31  ;;  %v2264_v36 = vmul.f32 %v2260_v29, %v2260_v29  ;;  %6712 = vmatpush3.bf16.msra.mxu1 %v7122_v4 }
 0x860   :  { %v2262_v28 = vsub.f32 %v2239_v0, %v2258_v39  ;;  %v2268_v43 = vsel %vm237_vm6, %v2264_v36, 0.0  ;;  %v2265_v37 = vmul.f32 %v2261_v26, %v2261_v26 }
 0x861   :  { %2269 = vadd.xlane.f32.xlu1 %v2268_v43  ;;  %v2254_v27 = vpop.xlane.xlu0 %2253  ;;  %v6028_v43 = vld [vmem:[%s9122_s13] ss:$0 sm:$0xff] }
 0x862   :  { %v2259_v30 = vmul.f32 0.03125, %v2254_v27  ;;  %v2271_v17 = vsel %vm237_vm6, %v2265_v37, 0.0  ;;  %v2266_v24 = vmul.f32 %v2262_v28, %v2262_v28 }
 0x863   :  { %2272 = vadd.xlane.f32.xlu0 %v2271_v17 }
 0x864   :  { %v2263_v25 = vsub.f32 %v2240_v6, %v2259_v30  ;;  %v2274_v38 = vsel %vm237_vm6, %v2266_v24, 0.0  ;;  %v7123_v6 = vld [vmem:[%s9121_s12 + $0x18] sm:$0xff]  }
 0x865   :  { %2275 = vadd.xlane.f32.xlu1 %v2274_v38  ;;  %6713 = vmatprep.subr.bf16.mxu1 %v7123_v6 }
 0x866   :  { %v2267_v51 = vmul.f32 %v2263_v25, %v2263_v25  ;;  %6714 = vmatpush3.bf16.msra.mxu1 %v7123_v6 }
 0x867   :  { %6733 = vmatprep.subr.bf16.mxu1 %v7397_v15 }
 0x868   :  { %v2277_v49 = vsel %vm237_vm6, %v2267_v51, 0.0 }
 0x869   :  { %2278 = vadd.xlane.f32.xlu0 %v2277_v49 }
 0x8ee   :  { %v2270_v35 = vpop.xlane.xlu1 %2269 }
 0x8ef   :  { %v2280_v50 = vmul.f32 0.03125, %v2270_v35 }
 0x8f0   :  { %v2273_v61 = vpop.xlane.xlu0 %2272 }
 0x8f1   :  { %v2284_v62 = vadd.f32 1e-05, %v2280_v50  ;;  %v2281_v20 = vmul.f32 0.03125, %v2273_v61 }
 0x8f2   :  { %v2276_v53 = vpop.xlane.xlu1 %2275 }
 0x8f3   :  { %7268 = vrsqrt.f32 %v2284_v62  ;;  %v2285_v16 = vadd.f32 1e-05, %v2281_v20  ;;  %v2282_v12 = vmul.f32 0.03125, %v2276_v53 }
 0x8f5   :  { %7270 = vrsqrt.f32 %v2285_v16  ;;  %v2286_v44 = vadd.f32 1e-05, %v2282_v12 }
 0x8f6   :  { %v2279_v45 = vpop.xlane.xlu0 %2278 }
 0x8f7   :  { %7272 = vrsqrt.f32 %v2286_v44  ;;  %v2283_v57 = vmul.f32 0.03125, %v2279_v45 }
 0x8f9   :  { %v2287_v58 = vadd.f32 1e-05, %v2283_v57 }
 0x8fb   :  { %7274 = vrsqrt.f32 %v2287_v58 }
 0x8fd   :  { %v7269_v8 = vpop.eup %7268 }
 0x8fe   :  { %v2292_v55 = vmul.f32 %v7269_v8, %v2260_v29 }
 0x8ff   :  { %v7271_v2 = vpop.eup %7270 }
 0x900   :  { %v2293_v60 = vmul.f32 %v7271_v2, %v2261_v26  ;;  %v2302_v10 = vmul.f32 %v6021_v13, %v2292_v55 }
 0x901   :  { %v7273_v56 = vpop.eup %7272 }
 0x902   :  { %v2294_v3 = vmul.f32 %v7273_v56, %v2262_v28  ;;  %v2303_v5 = vmul.f32 %v6021_v13, %v2293_v60  ;;  %v2312_v21 = vadd.f32 %v6022_v54, %v2302_v10 }
 0x904   :  { %v2313_v41 = vadd.f32 %v6022_v54, %v2303_v5  ;;  %v2304_v40 = vmul.f32 %v6021_v13, %v2294_v3 }
 0x905   :  { %v7275_v63 = vpop.eup %7274 }
 0x906   :  { %v2295_v46 = vmul.f32 %v7275_v63, %v2263_v25  ;;  %v2316_v59 = vpack.c.bf16 %v2313_v41, %v2312_v21  ;;  %v2314_v47 = vadd.f32 %v6022_v54, %v2304_v40  ;;  %v7125_v63 = vld [vmem:[%s9158_s25 + $0x18] sm:$0xff]  }
 0x908   :  { %6703 = vmatprep.mubr.msk.bf16.mxu0 %vm237_vm6, %v2316_v59  ;;  %v2305_v22 = vmul.f32 %v6021_v13, %v2295_v46 }
 0x90a   :  { %v2315_v0 = vadd.f32 %v6022_v54, %v2305_v22 }
 0x90c   :  { %v2317_v1 = vpack.c.bf16 %v2315_v0, %v2314_v47 }
 0x90e   :  { %6704 = vmatmul.mubr.msk.bf16.vlgmr.msra.gmra.mrb[68].mxu0 %vm237_vm6, %v2317_v1 }
 0x9e1   :  { %v6705_v42 = vpop.f32.mrb[68].mxu0 }
 0x9e2   :  { %v2390_v23 = vadd.f32 %v6705_v42, %v6023_v7  ;;  %v2381_v9 = vpop.f32.mrb[69].mxu0 }
 0x9e3   :  { %v2382_v11 = vadd.f32 %v6023_v7, %v2381_v9  ;;  %v6706_v32 = vpop.f32.mrb[70].mxu0 }
 0x9e4   :  { %v2393_v14 = vadd.f32 %v6706_v32, %v6023_v7  ;;  %v2384_v18 = vpop.f32.mrb[71].mxu0  ;;  %v2398_v19 = vmax.f32 %v2390_v23, 0.0 }
 0x9e5   :  { %v2385_v29 = vadd.f32 %v6023_v7, %v2384_v18  ;;  %v2396_v26 = vmax.f32 %v2382_v11, 0.0  ;;  %v6035_v11 = vld [vmem:[%s9117_s8] ss:$0 sm:$0xff] }
 0x9e6   :  { %v2399_v31 = vmax.f32 %v2393_v14, 0.0 }
 0x9e7   :  { %v2397_v39 = vmax.f32 %v2385_v29, 0.0 }
 0x9e8   :  { %v2401_v36 = vpack.c.bf16 %v2399_v31, %v2398_v19  ;;  %v6036_v31 = vld [vmem:[%s9118_s9] ss:$0 sm:$0xff] }
 0x9e9   :  { %v2400_v28 = vpack.c.bf16 %v2397_v39, %v2396_v26 }
 0x9eb   :  { %6715 = vmatprep.mubr.msk.bf16.mxu1 %vm2441_vm12, %v2400_v28 }
 0x9ec   :  { %6716 = vmatmul.mubr.msk.bf16.vlgmr.msra.gmra.mrb[72].mxu1 %vm2441_vm12, %v2401_v36 }
 0x9ed   :  { %6735 = vmatprep.mubr.msk.bf16.mxu1 %vm7400_vm7, %v7397_v15 }
 0xabf   :  { %v6717_v37 = vpop.f32.mrb[72].mxu1 }
 0xac0   :  { %v2482_v27 = vpop.f32.mrb[73].mxu1  ;;  %v2491_v30 = vadd.f32 %v6717_v37, %v6028_v43 }
 0xac1   :  { %v2483_v17 = vadd.f32 %v6028_v43, %v2482_v27  ;;  %v6718_v24 = vpop.f32.mrb[74].mxu1 }
 0xac2   :  { %v2485_v25 = vpop.f32.mrb[75].mxu1  ;;  %v2494_v38 = vadd.f32 %v6718_v24, %v6028_v43  ;;  %v2499_v48 = vadd.f32 %v2491_v30, %v2314_v47 }
 0xac3   :  { %v2486_v51 = vadd.f32 %v6028_v43, %v2485_v25  ;;  %v2497_v49 = vadd.f32 %v2483_v17, %v2312_v21 }
 0xac4   :  { %v2500_v35 = vadd.f32 %v2494_v38, %v2315_v0  ;;  %v2509_v50 = vsel %vm237_vm6, %v2499_v48, 0.0 }
 0xac5   :  { %v2503_v52 = vsel %vm237_vm6, %v2497_v49, 0.0  ;;  %v2498_v33 = vadd.f32 %v2486_v51, %v2313_v41  ;;  %v7124_v41 = vld [vmem:[%s9158_s25 + $0x10] sm:$0xff]  }
 0xac6   :  { %2504 = vadd.xlane.f32.xlu1 %v2503_v52  ;;  %v2512_v61 = vsel %vm237_vm6, %v2500_v35, 0.0  ;;  %6719 = vmatprep.subr.bf16.mxu0 %v7124_v41 }
 0xac7   :  { %v2506_v34 = vsel %vm237_vm6, %v2498_v33, 0.0  ;;  %6720 = vmatpush3.bf16.msra.mxu0 %v7124_v41 }
 0xac8   :  { %2507 = vadd.xlane.f32.xlu0 %v2506_v34  ;;  %6721 = vmatprep.subr.bf16.mxu0 %v7125_v63 }
 0xaca   :  { %2510 = vadd.xlane.f32.xlu1 %v2509_v50 }
 0xacb   :  { %6722 = vmatpush3.bf16.msra.mxu0 %v7125_v63 }
 0xacc   :  { %2513 = vadd.xlane.f32.xlu0 %v2512_v61  ;;  %6727 = vmatprep.subr.bf16.mxu0 %v7397_v15 }
 0xb53   :  { %v2505_v62 = vpop.xlane.xlu1 %2504 }
 0xb54   :  { %v2515_v20 = vmul.f32 0.03125, %v2505_v62 }
 0xb55   :  { %v2508_v53 = vpop.xlane.xlu0 %2507 }
 0xb56   :  { %v2519_v16 = vsub.f32 %v2497_v49, %v2515_v20  ;;  %v2516_v12 = vmul.f32 0.03125, %v2508_v53  ;;  %v6042_v49 = vld [vmem:[%s9159_s28 + $0x1] ss:$0 sm:$0xff]  ;;  %s9163_s28 = smov 96  }
 0xb57   :  { %v2511_v44 = vpop.xlane.xlu1 %2510 }
 0xb58   :  { %v2520_v45 = vsub.f32 %v2498_v33, %v2516_v12  ;;  %v2517_v57 = vmul.f32 0.03125, %v2511_v44  ;;  %v2523_v58 = vmul.f32 %v2519_v16, %v2519_v16 }
 0xb59   :  { %v2514_v8 = vpop.xlane.xlu0 %2513 }
 0xb5a   :  { %v2521_v13 = vsub.f32 %v2499_v48, %v2517_v57  ;;  %v2518_v55 = vmul.f32 0.03125, %v2514_v8  ;;  %v2527_v2 = vsel %vm237_vm6, %v2523_v58, 0.0  ;;  %v2524_v60 = vmul.f32 %v2520_v45, %v2520_v45 }
 0xb5b   :  { %2528 = vadd.xlane.f32.xlu1 %v2527_v2 }
 0xb5c   :  { %v2522_v10 = vsub.f32 %v2500_v35, %v2518_v55  ;;  %v2530_v56 = vsel %vm237_vm6, %v2524_v60, 0.0  ;;  %v2525_v54 = vmul.f32 %v2521_v13, %v2521_v13 }
 0xb5d   :  { %2531 = vadd.xlane.f32.xlu0 %v2530_v56 }
 0xb5e   :  { %v2533_v3 = vsel %vm237_vm6, %v2525_v54, 0.0  ;;  %v2526_v5 = vmul.f32 %v2522_v10, %v2522_v10 }
 0xb5f   :  { %2534 = vadd.xlane.f32.xlu1 %v2533_v3 }
 0xb60   :  { %v2536_v21 = vsel %vm237_vm6, %v2526_v5, 0.0 }
 0xb61   :  { %2537 = vadd.xlane.f32.xlu0 %v2536_v21 }
 0xbe8   :  { %v2529_v46 = vpop.xlane.xlu1 %2528 }
 0xbe9   :  { %v2539_v59 = vmul.f32 0.03125, %v2529_v46 }
 0xbea   :  { %v2532_v40 = vpop.xlane.xlu0 %2531 }
 0xbeb   :  { %v2543_v22 = vadd.f32 1e-05, %v2539_v59  ;;  %v2540_v47 = vmul.f32 0.03125, %v2532_v40 }
 0xbec   :  { %v2535_v0 = vpop.xlane.xlu1 %2534 }
 0xbed   :  { %7276 = vrsqrt.f32 %v2543_v22  ;;  %v2544_v1 = vadd.f32 1e-05, %v2540_v47  ;;  %v2541_v4 = vmul.f32 0.03125, %v2535_v0 }
 0xbee   :  { %v2538_v6 = vpop.xlane.xlu0 %2537 }
 0xbef   :  { %7278 = vrsqrt.f32 %v2544_v1  ;;  %v2545_v7 = vadd.f32 1e-05, %v2541_v4  ;;  %v2542_v42 = vmul.f32 0.03125, %v2538_v6 }
 0xbf1   :  { %7280 = vrsqrt.f32 %v2545_v7  ;;  %v2546_v23 = vadd.f32 1e-05, %v2542_v42 }
 0xbf3   :  { %7282 = vrsqrt.f32 %v2546_v23 }
 0xbf7   :  { %v7277_v9 = vpop.eup %7276 }
 0xbf8   :  { %v2551_v32 = vmul.f32 %v7277_v9, %v2519_v16 }
 0xbf9   :  { %v7279_v14 = vpop.eup %7278 }
 0xbfa   :  { %v2552_v18 = vmul.f32 %v7279_v14, %v2520_v45  ;;  %v2561_v29 = vmul.f32 %v6035_v11, %v2551_v32 }
 0xbfb   :  { %v7281_v19 = vpop.eup %7280 }
 0xbfc   :  { %v2553_v26 = vmul.f32 %v7281_v19, %v2521_v13  ;;  %v2562_v39 = vmul.f32 %v6035_v11, %v2552_v18  ;;  %v8163_v43 = vadd.f32 %v6036_v31, %v2561_v29 }
 0xbfd   :  { %v7283_v36 = vpop.eup %7282 }
 0xbfe   :  { %v2554_v28 = vmul.f32 %v7283_v36, %v2522_v10  ;;  %v8165_v37 = vadd.f32 %v6036_v31, %v2562_v39  ;;  %v2563_v27 = vmul.f32 %v6035_v11, %v2553_v26 }
 0xc00   :  { %v2575_v30 = vpack.c.bf16 %v8165_v37, %v8163_v43  ;;  %v2564_v17 = vmul.f32 %v6035_v11, %v2554_v28  ;;  %v8170_v24 = vadd.f32 %v6036_v31, %v2563_v27 }
 0xc02   :  { %6723 = vmatprep.mubr.msk.bf16.mxu0 %vm237_vm6, %v2575_v30  ;;  %v8172_v25 = vadd.f32 %v6036_v31, %v2564_v17 }
 0xc04   :  { %v2576_v38 = vpack.c.bf16 %v8172_v25, %v8170_v24 }
 0xc06   :  { %6724 = vmatmul.mubr.msk.bf16.vlgmr.msra.gmra.mrb[72].mxu0 %vm237_vm6, %v2576_v38 }
 0xc07   :  { %6729 = vmatprep.mubr.msk.bf16.mxu0 %vm7400_vm7, %v7397_v15 }
 0xcd9   :  { %v6725_v51 = vpop.f32.mrb[72].mxu0 }
 0xcda   :  { %v2642_v52 = vpop.f32.mrb[73].mxu0  ;;  %v2651_v48 = vadd.f32 %v6725_v51, %v6042_v49 }
 0xcdb   :  { %v6726_v33 = vpop.f32.mrb[74].mxu0  ;;  %v2643_v50 = vadd.f32 %v6042_v49, %v2642_v52 }
 0xcdc   :  { %v2654_v34 = vadd.f32 %v6726_v33, %v6042_v49  ;;  %v2645_v35 = vpop.f32.mrb[75].mxu0  ;;  %v8191_v16 = vpack.c.bf16 %v2651_v48, %v2651_v48 }
 0xcdd   :  { %v2646_v61 = vadd.f32 %v6042_v49, %v2645_v35  ;;  %v8186_v53 = vpack.c.bf16 %v2643_v50, %v2643_v50 }
 0xcde   :  { %v7059_v62 = vpack.i.bf16 %v2654_v34, %v2651_v48  ;;  %v8200_v44 = vpack.c.bf16 %v2654_v34, %v2654_v34 }
 0xcdf   :  { %v7054_v20 = vpack.i.bf16 %v2646_v61, %v2643_v50  ;;  %v8196_v12 = vpack.c.bf16 %v2646_v61, %v2646_v61 }
 0xce0   :  { %7060 = vrot.lane.b32.xlu0 %v7059_v62, %s7398_s30 }
 0xce1   :  { %7055 = vrot.lane.b32.xlu1 %v7054_v20, %s7398_s30  ;;  %s9164_s30 = smov 64  }
 0xce4   :  { %7075 = vrot.lane.b32.xlu0 %v7054_v20, %s7401_s4 }
 0xce5   :  { %7065 = vrot.lane.b32.xlu1 %v7054_v20, %s7399_s29 }
 0xce8   :  { %2714 = vrot.lane.b32.xlu0 %v8186_v53, %s9163_s28 }
 0xce9   :  { %7070 = vrot.lane.b32.xlu1 %v7059_v62, %s7399_s29  ;;  %s9165_s29 = smov 8  }
 0xcec   :  { %2812 = vrot.lane.b32.xlu0 %v8191_v16, %s9163_s28 }
 0xced   :  { %7080 = vrot.lane.b32.xlu1 %v7059_v62, %s7401_s4  ;;  %s9166_s4 = smov 16  }
 0xcf1   :  { %2763 = vrot.lane.b32.xlu1 %v8196_v12, %s9163_s28 }
 0xcf5   :  { %2861 = vrot.lane.b32.xlu1 %v8200_v44, %s9163_s28 }
 0xd52   :  { %v7061_v45 = vpop.permute.xlu0 %7060 }
 0xd53   :  { %v7056_v57 = vpop.permute.xlu1 %7055  ;;  %v7063_v13 = vunpack.i.h.bf16 %v7061_v45  ;;  %v7062_v55 = vunpack.i.l.bf16 %v7061_v45 }
 0xd54   :  { %v7058_v58 = vunpack.i.h.bf16 %v7056_v57  ;;  %v7057_v8 = vunpack.i.l.bf16 %v7056_v57 }
 0xd55   :  { %v8212_v54 = vpack.c.bf16 %v7063_v13, %v7063_v13  ;;  %v8214_v3 = vpack.c.bf16 %v7062_v55, %v7062_v55 }
 0xd56   :  { %v8204_v2 = vpack.c.bf16 %v7058_v58, %v7058_v58  ;;  %v8206_v60 = vpack.c.bf16 %v7057_v8, %v7057_v8  ;;  %v7076_v10 = vpop.permute.xlu0 %7075 }
 0xd57   :  { %v7066_v56 = vpop.permute.xlu1 %7065  ;;  %v7078_v4 = vunpack.i.h.bf16 %v7076_v10  ;;  %v7077_v7 = vunpack.i.l.bf16 %v7076_v10 }
 0xd58   :  { %2959 = vrot.lane.b32.xlu1 %v8204_v2, %s9163_s28  ;;  %2910 = vrot.lane.b32.xlu0 %v8206_v60, %s9163_s28  ;;  %v7068_v5 = vunpack.i.h.bf16 %v7066_v56  ;;  %v7067_v21 = vunpack.i.l.bf16 %v7066_v56 }
 0xd59   :  { %v8242_v32 = vpack.c.bf16 %v7078_v4, %v7078_v4  ;;  %v8246_v18 = vpack.c.bf16 %v7077_v7, %v7077_v7 }
 0xd5a   :  { %v2715_v41 = vpop.permute.xlu0 %2714  ;;  %v8221_v59 = vpack.c.bf16 %v7068_v5, %v7068_v5  ;;  %v8223_v40 = vpack.c.bf16 %v7067_v21, %v7067_v21 }
 0xd5b   :  { %v2720_v63 = vsel %vm352_vm8, %v2715_v41, 0  ;;  %v7071_v46 = vpop.permute.xlu1 %7070 }
 0xd5c   :  { %3057 = vrot.lane.b32.xlu1 %v8212_v54, %s9163_s28  ;;  %3008 = vrot.lane.b32.xlu0 %v8214_v3, %s9163_s28  ;;  %v7073_v22 = vunpack.i.h.bf16 %v7071_v46  ;;  %v7072_v47 = vunpack.i.l.bf16 %v7071_v46 }
 0xd5d   :  { %6728 = vmatpush3.bf16.xpose.msra.mxu0 %v2720_v63 }
 0xd5e   :  { %6739 = vmatprep.subr.bf16.mxu0 %v7397_v15  ;;  %v2813_v1 = vpop.permute.xlu0 %2812  ;;  %v8230_v6 = vpack.c.bf16 %v7073_v22, %v7073_v22  ;;  %v8232_v42 = vpack.c.bf16 %v7072_v47, %v7072_v47 }
 0xd5f   :  { %v7081_v0 = vpop.permute.xlu1 %7080  ;;  %v2818_v9 = vsel %vm352_vm8, %v2813_v1, 0 }
 0xd60   :  { %3155 = vrot.lane.b32.xlu1 %v8221_v59, %s9163_s28  ;;  %3106 = vrot.lane.b32.xlu0 %v8223_v40, %s9163_s28  ;;  %v7083_v14 = vunpack.i.h.bf16 %v7081_v0  ;;  %v7082_v29 = vunpack.i.l.bf16 %v7081_v0 }
 0xd62   :  { %v8254_v19 = vpack.c.bf16 %v7083_v14, %v7083_v14  ;;  %v8256_v26 = vpack.c.bf16 %v7082_v29, %v7082_v29 }
 0xd63   :  { %v2764_v23 = vpop.permute.xlu1 %2763 }
 0xd64   :  { %v2769_v11 = vsel %vm352_vm8, %v2764_v23, 0  ;;  %6730 = vmatmul.mubr.msk.bf16.vlgmr.msra.gmra.mrb[76].mxu0 %vm352_vm8, %v8186_v53  ;;  %3253 = vrot.lane.b32.xlu1 %v8230_v6, %s9163_s28 }
 0xd65   :  { %3204 = vrot.lane.b32.xlu0 %v8232_v42, %s9163_s28  ;;  %6740 = vmatpush3.bf16.xpose.msra.mxu0 %v2818_v9 }
 0xd66   :  { %6734 = vmatpush3.bf16.xpose.msra.mxu1 %v2769_v11  ;;  %6741 = vmatprep.mubr.msk.bf16.mxu0 %vm7400_vm7, %v7397_v15 }
 0xd67   :  { %6745 = vmatprep.subr.bf16.mxu1 %v7397_v15  ;;  %6751 = vmatprep.subr.bf16.mxu0 %v7397_v15  ;;  %v2862_v31 = vpop.permute.xlu1 %2861 }
 0xd68   :  { %3351 = vrot.lane.b32.xlu1 %v8242_v32, %s9163_s28  ;;  %v2867_v39 = vsel %vm352_vm8, %v2862_v31, 0 }
 0xd69   :  { %3302 = vrot.lane.b32.xlu0 %v8246_v18, %s9163_s28 }
 0xd6c   :  { %6742 = vmatmul.mubr.msk.bf16.vlgmr.msra.gmra.mrb[80].mxu0 %vm352_vm8, %v8191_v16  ;;  %3449 = vrot.lane.b32.xlu1 %v8254_v19, %s9163_s28 }
 0xd6d   :  { %6736 = vmatmul.mubr.msk.bf16.vlgmr.msra.gmra.mrb[76].mxu1 %vm352_vm8, %v8196_v12  ;;  %3400 = vrot.lane.b32.xlu0 %v8256_v26, %s9163_s28 }
 0xd6e   :  { %6746 = vmatpush3.bf16.xpose.msra.mxu1 %v2867_v39  ;;  %6747 = vmatprep.mubr.msk.bf16.mxu1 %vm7400_vm7, %v7397_v15 }
 0xd6f   :  { %6757 = vmatprep.subr.bf16.mxu1 %v7397_v15  ;;  %6753 = vmatprep.mubr.msk.bf16.mxu0 %vm7400_vm7, %v7397_v15 }
 0xd70   :  { %3689 = vrot.lane.b32.xlu1 %v8186_v53, %s9164_s30 }
 0xd71   :  { %3737 = vrot.lane.b32.xlu0 %v8196_v12, %s9164_s30 }
 0xd74   :  { %3785 = vrot.lane.b32.xlu1 %v8191_v16, %s9164_s30 }
 0xd75   :  { %6748 = vmatmul.mubr.msk.bf16.vlgmr.msra.gmra.mrb[80].mxu1 %vm352_vm8, %v8200_v44  ;;  %3833 = vrot.lane.b32.xlu0 %v8200_v44, %s9164_s30 }
 0xd76   :  { %6759 = vmatprep.mubr.msk.bf16.mxu1 %vm7400_vm7, %v7397_v15 }
 0xd78   :  { %3881 = vrot.lane.b32.xlu1 %v8206_v60, %s9164_s30 }
 0xd79   :  { %4025 = vrot.lane.b32.xlu0 %v8212_v54, %s9164_s30 }
 0xd7c   :  { %3977 = vrot.lane.b32.xlu1 %v8214_v3, %s9164_s30 }
 0xd7d   :  { %3929 = vrot.lane.b32.xlu0 %v8204_v2, %s9164_s30 }
 0xd80   :  { %4073 = vrot.lane.b32.xlu1 %v8223_v40, %s9164_s30 }
 0xdca   :  { %v2960_v36 = vpop.permute.xlu1 %2959  ;;  %v2911_v28 = vpop.permute.xlu0 %2910 }
 0xdcb   :  { %v2965_v27 = vsel %vm352_vm8, %v2960_v36, 0  ;;  %v2916_v30 = vsel %vm352_vm8, %v2911_v28, 0 }
 0xdcc   :  { %6752 = vmatpush3.bf16.xpose.msra.mxu0 %v2916_v30  ;;  %6758 = vmatpush3.bf16.xpose.msra.mxu1 %v2965_v27 }
 0xdcd   :  { %6763 = vmatprep.subr.bf16.mxu0 %v7397_v15  ;;  %6769 = vmatprep.subr.bf16.mxu1 %v7397_v15 }
 0xdce   :  { %v3058_v17 = vpop.permute.xlu1 %3057  ;;  %v3009_v38 = vpop.permute.xlu0 %3008 }
 0xdcf   :  { %v3063_v51 = vsel %vm352_vm8, %v3058_v17, 0  ;;  %v3014_v49 = vsel %vm352_vm8, %v3009_v38, 0 }
 0xdd2   :  { %v3156_v52 = vpop.permute.xlu1 %3155  ;;  %v3107_v33 = vpop.permute.xlu0 %3106 }
 0xdd3   :  { %6754 = vmatmul.mubr.msk.bf16.vlgmr.msra.gmra.mrb[84].mxu0 %vm352_vm8, %v8206_v60  ;;  %6760 = vmatmul.mubr.msk.bf16.vlgmr.msra.gmra.mrb[84].mxu1 %vm352_vm8, %v8204_v2  ;;  %v3161_v48 = vsel %vm352_vm8, %v3156_v52, 0  ;;  %v3112_v34 = vsel %vm352_vm8, %v3107_v33, 0 }
 0xdd4   :  { %6764 = vmatpush3.bf16.xpose.msra.mxu0 %v3014_v49  ;;  %6770 = vmatpush3.bf16.xpose.msra.mxu1 %v3063_v51 }
 0xdd5   :  { %6771 = vmatprep.mubr.msk.bf16.mxu1 %vm7400_vm7, %v7397_v15  ;;  %6765 = vmatprep.mubr.msk.bf16.mxu0 %vm7400_vm7, %v7397_v15 }
 0xdd6   :  { %6775 = vmatprep.subr.bf16.mxu0 %v7397_v15  ;;  %6781 = vmatprep.subr.bf16.mxu1 %v7397_v15  ;;  %v3254_v35 = vpop.permute.xlu1 %3253 }
 0xdd7   :  { %v3205_v50 = vpop.permute.xlu0 %3204  ;;  %v3259_v61 = vsel %vm352_vm8, %v3254_v35, 0 }
 0xdd8   :  { %v3210_v62 = vsel %vm352_vm8, %v3205_v50, 0 }
 0xdda   :  { %v3352_v20 = vpop.permute.xlu1 %3351 }
 0xddb   :  { %6766 = vmatmul.mubr.msk.bf16.vlgmr.msra.gmra.mrb[88].mxu0 %vm352_vm8, %v8214_v3  ;;  %6772 = vmatmul.mubr.msk.bf16.vlgmr.msra.gmra.mrb[88].mxu1 %vm352_vm8, %v8212_v54  ;;  %v3303_v53 = vpop.permute.xlu0 %3302  ;;  %v3357_v16 = vsel %vm352_vm8, %v3352_v20, 0 }
 0xddc   :  { %6776 = vmatpush3.bf16.xpose.msra.mxu0 %v3112_v34  ;;  %6782 = vmatpush3.bf16.xpose.msra.mxu1 %v3161_v48  ;;  %v3308_v12 = vsel %vm352_vm8, %v3303_v53, 0 }
 0xddd   :  { %6783 = vmatprep.mubr.msk.bf16.mxu1 %vm7400_vm7, %v7397_v15  ;;  %6777 = vmatprep.mubr.msk.bf16.mxu0 %vm7400_vm7, %v7397_v15 }
 0xdde   :  { %6787 = vmatprep.subr.bf16.mxu0 %v7397_v15  ;;  %6793 = vmatprep.subr.bf16.mxu1 %v7397_v15  ;;  %v3450_v44 = vpop.permute.xlu1 %3449 }
 0xddf   :  { %v3401_v45 = vpop.permute.xlu0 %3400  ;;  %v3455_v57 = vsel %vm352_vm8, %v3450_v44, 0 }
 0xde0   :  { %v3406_v58 = vsel %vm352_vm8, %v3401_v45, 0 }
 0xde2   :  { %v3690_v8 = vpop.permute.xlu1 %3689 }
 0xde3   :  { %6778 = vmatmul.mubr.msk.bf16.vlgmr.msra.gmra.mrb[92].mxu0 %vm352_vm8, %v8223_v40  ;;  %6784 = vmatmul.mubr.msk.bf16.vlgmr.msra.gmra.mrb[92].mxu1 %vm352_vm8, %v8221_v59  ;;  %v3738_v13 = vpop.permute.xlu0 %3737  ;;  %v3695_v55 = vsel %vm1331_vm9, %v3690_v8, 0 }
 0xde4   :  { %6788 = vmatpush3.bf16.xpose.msra.mxu0 %v3210_v62  ;;  %6794 = vmatpush3.bf16.xpose.msra.mxu1 %v3259_v61  ;;  %v3743_v2 = vsel %vm1331_vm9, %v3738_v13, 0 }
 0xde5   :  { %6795 = vmatprep.mubr.msk.bf16.mxu1 %vm7400_vm7, %v7397_v15  ;;  %6789 = vmatprep.mubr.msk.bf16.mxu0 %vm7400_vm7, %v7397_v15 }
 0xde6   :  { %6799 = vmatprep.subr.bf16.mxu0 %v7397_v15  ;;  %6805 = vmatprep.subr.bf16.mxu1 %v7397_v15 }
 0xdeb   :  { %6790 = vmatmul.mubr.msk.bf16.vlgmr.msra.gmra.mrb[96].mxu0 %vm352_vm8, %v8232_v42  ;;  %6796 = vmatmul.mubr.msk.bf16.vlgmr.msra.gmra.mrb[96].mxu1 %vm352_vm8, %v8230_v6 }
 0xdec   :  { %6800 = vmatpush3.bf16.xpose.msra.mxu0 %v3308_v12  ;;  %6806 = vmatpush3.bf16.xpose.msra.mxu1 %v3357_v16 }
 0xded   :  { %6807 = vmatprep.mubr.msk.bf16.mxu1 %vm7400_vm7, %v7397_v15  ;;  %6801 = vmatprep.mubr.msk.bf16.mxu0 %vm7400_vm7, %v7397_v15 }
 0xdee   :  { %6811 = vmatprep.subr.bf16.mxu0 %v7397_v15  ;;  %6817 = vmatprep.subr.bf16.mxu1 %v7397_v15 }
 0xdf3   :  { %6802 = vmatmul.mubr.msk.bf16.vlgmr.msra.gmra.mrb[100].mxu0 %vm352_vm8, %v8246_v18  ;;  %6808 = vmatmul.mubr.msk.bf16.vlgmr.msra.gmra.mrb[100].mxu1 %vm352_vm8, %v8242_v32 }
 0xdf4   :  { %6812 = vmatpush3.bf16.xpose.msra.mxu0 %v3406_v58  ;;  %6818 = vmatpush3.bf16.xpose.msra.mxu1 %v3455_v57 }
 0xdf5   :  { %6813 = vmatprep.mubr.msk.bf16.mxu0 %vm7400_vm7, %v7397_v15  ;;  %6819 = vmatprep.mubr.msk.bf16.mxu1 %vm7400_vm7, %v7397_v15 }
 0xdf6   :  { %6823 = vmatprep.subr.bf16.mxu0 %v7397_v15  ;;  %6829 = vmatprep.subr.bf16.mxu1 %v7397_v15 }
 0xdfb   :  { %6814 = vmatmul.mubr.msk.bf16.vlgmr.msra.gmra.mrb[104].mxu0 %vm352_vm8, %v8256_v26  ;;  %6820 = vmatmul.mubr.msk.bf16.vlgmr.msra.gmra.mrb[104].mxu1 %vm352_vm8, %v8254_v19 }
 0xdfc   :  { %6824 = vmatpush3.bf16.msra.mxu0 %v3695_v55  ;;  %6830 = vmatpush3.bf16.msra.mxu1 %v3743_v2 }
 0xdfd   :  { %6831 = vmatprep.mubr.msk.bf16.mxu1 %vm7400_vm7, %v7397_v15  ;;  %6841 = vmatprep.subr.bf16.mxu1 %v7397_v15 }
 0xdfe   :  { %6825 = vmatprep.mubr.msk.bf16.mxu0 %vm7400_vm7, %v7397_v15  ;;  %6835 = vmatprep.subr.bf16.mxu0 %v7397_v15 }
 0xe37   :  { %v8370_v60 = vpop.f32.mrb[76].mxu0 }
 0xe38   :  { %v6731_v10 = vpop.f32.mrb[77].mxu0  ;;  %v3497_v56 = vsel %vm352_vm8, %v8370_v60, -inf }
 0xe39   :  { %3498 = vmax.xlane.f32.xlu0 %v3497_v56  ;;  %v2759_v54 = vpop.f32.mrb[78].mxu0 }
 0xe3a   :  { %v6732_v3 = vpop.f32.mrb[79].mxu0 }
 0xe3f   :  { %v8374_v5 = vpop.f32.mrb[80].mxu0 }
 0xe40   :  { %v8376_v21 = vpop.f32.mrb[76].mxu1  ;;  %v6743_v41 = vpop.f32.mrb[81].mxu0  ;;  %v3503_v63 = vsel %vm352_vm8, %v8374_v5, -inf }
 0xe41   :  { %v6737_v46 = vpop.f32.mrb[77].mxu1  ;;  %3504 = vmax.xlane.f32.xlu0 %v3503_v63  ;;  %v2857_v40 = vpop.f32.mrb[82].mxu0  ;;  %v3500_v22 = vsel %vm352_vm8, %v8376_v21, -inf }
 0xe42   :  { %v2808_v47 = vpop.f32.mrb[78].mxu1  ;;  %3501 = vmax.xlane.f32.xlu1 %v3500_v22  ;;  %v6744_v0 = vpop.f32.mrb[83].mxu0 }
 0xe43   :  { %v6738_v1 = vpop.f32.mrb[79].mxu1 }
 0xe48   :  { %v8382_v4 = vpop.f32.mrb[80].mxu1 }
 0xe49   :  { %v6749_v7 = vpop.f32.mrb[81].mxu1  ;;  %v3506_v23 = vsel %vm352_vm8, %v8382_v4, -inf }
 0xe4a   :  { %v2906_v9 = vpop.f32.mrb[82].mxu1  ;;  %3507 = vmax.xlane.f32.xlu0 %v3506_v23 }
 0xe4b   :  { %v6750_v11 = vpop.f32.mrb[83].mxu1 }
 0xea6   :  { %v8386_v14 = vpop.f32.mrb[84].mxu0  ;;  %v8388_v29 = vpop.f32.mrb[84].mxu1 }
 0xea7   :  { %v6755_v31 = vpop.f32.mrb[85].mxu0  ;;  %v6761_v39 = vpop.f32.mrb[85].mxu1  ;;  %v3512_v36 = vsel %vm352_vm8, %v8388_v29, -inf  ;;  %v3509_v28 = vsel %vm352_vm8, %v8386_v14, -inf }
 0xea8   :  { %v3004_v27 = vpop.f32.mrb[86].mxu1  ;;  %3513 = vmax.xlane.f32.xlu0 %v3512_v36  ;;  %3510 = vmax.xlane.f32.xlu1 %v3509_v28  ;;  %v2955_v30 = vpop.f32.mrb[86].mxu0 }
 0xea9   :  { %v6756_v17 = vpop.f32.mrb[87].mxu0  ;;  %v6762_v38 = vpop.f32.mrb[87].mxu1 }
 0xeae   :  { %v8394_v51 = vpop.f32.mrb[88].mxu0  ;;  %v8396_v49 = vpop.f32.mrb[88].mxu1 }
 0xeaf   :  { %v6767_v52 = vpop.f32.mrb[89].mxu0  ;;  %v6773_v33 = vpop.f32.mrb[89].mxu1  ;;  %v3518_v48 = vsel %vm352_vm8, %v8396_v49, -inf  ;;  %v3515_v34 = vsel %vm352_vm8, %v8394_v51, -inf }
 0xeb0   :  { %v3102_v35 = vpop.f32.mrb[90].mxu1  ;;  %3519 = vmax.xlane.f32.xlu0 %v3518_v48  ;;  %3516 = vmax.xlane.f32.xlu1 %v3515_v34  ;;  %v3053_v50 = vpop.f32.mrb[90].mxu0 }
 0xeb1   :  { %v6768_v61 = vpop.f32.mrb[91].mxu0  ;;  %v6774_v62 = vpop.f32.mrb[91].mxu1 }
 0xeb2   :  { %v8434_v35 = vpop.permute.xlu1 %3785  ;;  %v8436_v50 = vpop.permute.xlu0 %3833 }
 0xeb6   :  { %v8402_v20 = vpop.f32.mrb[92].mxu0  ;;  %v8404_v53 = vpop.f32.mrb[92].mxu1 }
 0xeb7   :  { %v6779_v16 = vpop.f32.mrb[93].mxu0  ;;  %v6785_v12 = vpop.f32.mrb[93].mxu1  ;;  %v3524_v44 = vsel %vm352_vm8, %v8404_v53, -inf  ;;  %v3521_v45 = vsel %vm352_vm8, %v8402_v20, -inf }
 0xeb8   :  { %v3200_v57 = vpop.f32.mrb[94].mxu1  ;;  %3525 = vmax.xlane.f32.xlu0 %v3524_v44  ;;  %3522 = vmax.xlane.f32.xlu1 %v3521_v45  ;;  %v3151_v58 = vpop.f32.mrb[94].mxu0 }
 0xeb9   :  { %v6780_v8 = vpop.f32.mrb[95].mxu0  ;;  %v6786_v13 = vpop.f32.mrb[95].mxu1 }
 0xeba   :  { %v8438_v61 = vpop.permute.xlu1 %3881  ;;  %v8440_v62 = vpop.permute.xlu0 %4025 }
 0xebe   :  { %v8410_v55 = vpop.f32.mrb[96].mxu0  ;;  %v8412_v2 = vpop.f32.mrb[96].mxu1 }
 0xebf   :  { %v6791_v10 = vpop.f32.mrb[97].mxu0  ;;  %v6797_v56 = vpop.f32.mrb[97].mxu1  ;;  %v3530_v54 = vsel %vm352_vm8, %v8412_v2, -inf  ;;  %v3527_v3 = vsel %vm352_vm8, %v8410_v55, -inf }
 0xec0   :  { %v3298_v41 = vpop.f32.mrb[98].mxu1  ;;  %3531 = vmax.xlane.f32.xlu0 %v3530_v54  ;;  %3528 = vmax.xlane.f32.xlu1 %v3527_v3  ;;  %v3249_v63 = vpop.f32.mrb[98].mxu0 }
 0xec1   :  { %v6792_v46 = vpop.f32.mrb[99].mxu0  ;;  %v6798_v40 = vpop.f32.mrb[99].mxu1 }
 0xec2   :  { %v8442_v16 = vpop.permute.xlu1 %3977  ;;  %v8446_v12 = vpop.permute.xlu0 %3929 }
 0xec6   :  { %v8418_v22 = vpop.f32.mrb[100].mxu0  ;;  %v8420_v47 = vpop.f32.mrb[100].mxu1 }
 0xec7   :  { %v6803_v0 = vpop.f32.mrb[101].mxu0  ;;  %v3533_v1 = vsel %vm352_vm8, %v8418_v22, -inf  ;;  %v6809_v7 = vpop.f32.mrb[101].mxu1  ;;  %v3536_v23 = vsel %vm352_vm8, %v8420_v47, -inf }
 0xec8   :  { %3534 = vmax.xlane.f32.xlu1 %v3533_v1  ;;  %v3347_v9 = vpop.f32.mrb[102].mxu0  ;;  %v3396_v11 = vpop.f32.mrb[102].mxu1  ;;  %3537 = vmax.xlane.f32.xlu0 %v3536_v23 }
 0xec9   :  { %v6804_v31 = vpop.f32.mrb[103].mxu0  ;;  %v6810_v39 = vpop.f32.mrb[103].mxu1 }
 0xeca   :  { %v8452_v44 = vpop.permute.xlu1 %4073  ;;  %v3499_v45 = vpop.xlane.xlu0 %3498 }
 0xece   :  { %v8426_v36 = vpop.f32.mrb[104].mxu1  ;;  %v8428_v28 = vpop.f32.mrb[104].mxu0 }
 0xecf   :  { %v3542_v27 = vsel %vm352_vm8, %v8426_v36, -inf  ;;  %v6815_v30 = vpop.f32.mrb[105].mxu0  ;;  %v6821_v17 = vpop.f32.mrb[105].mxu1  ;;  %v3539_v38 = vsel %vm352_vm8, %v8428_v28, -inf }
 0xed0   :  { %3543 = vmax.xlane.f32.xlu0 %v3542_v27  ;;  %v3494_v52 = vpop.f32.mrb[106].mxu1  ;;  %3540 = vmax.xlane.f32.xlu1 %v3539_v38  ;;  %v3445_v33 = vpop.f32.mrb[106].mxu0 }
 0xed1   :  { %v6816_v48 = vpop.f32.mrb[107].mxu0  ;;  %v6822_v34 = vpop.f32.mrb[107].mxu1 }
 0xed2   :  { %v3505_v57 = vpop.xlane.xlu0 %3504  ;;  %v3502_v58 = vpop.xlane.xlu1 %3501 }
 0xed3   :  { %v3546_v8 = vsub.f32 %v8376_v21, %v3502_v58 }
 0xed5   :  { %v3563_v10 = vmul.f32 1.442695, %v3546_v8 }
 0xed7   :  { %v3508_v13 = vpop.xlane.xlu0 %3507  ;;  %7284 = vpow2.f32 %v3563_v10 }
 0xed8   :  { %v3548_v56 = vsub.f32 %v8382_v4, %v3508_v13 }
 0xeda   :  { %v3567_v54 = vmul.f32 1.442695, %v3548_v56 }
 0xedc   :  { %7286 = vpow2.f32 %v3567_v54 }
 0xee1   :  { %4169 = vrot.lane.b32.xlu1 %v8232_v42, %s9164_s30  ;;  %v3545_v42 = vsub.f32 %v8370_v60, %v3499_v45  ;;  %v8458_v41 = vpop.eup %7284 }
 0xee2   :  { %v3596_v21 = vsel %vm352_vm8, %v8458_v41, 0.0 }
 0xee3   :  { %v3561_v3 = vmul.f32 1.442695, %v3545_v42 }
 0xee5   :  { %4217 = vrot.lane.b32.xlu1 %v8230_v6, %s9164_s30  ;;  %v3547_v6 = vsub.f32 %v8374_v5, %v3505_v57  ;;  %7288 = vpow2.f32 %v3561_v3 }
 0xee6   :  { %4121 = vrot.lane.b32.xlu0 %v8221_v59, %s9164_s30  ;;  %v8462_v63 = vpop.eup %7286 }
 0xee7   :  { %v3565_v59 = vmul.f32 1.442695, %v3547_v6  ;;  %v3602_v60 = vsel %vm352_vm8, %v8462_v63, 0.0 }
 0xee9   :  { %7290 = vpow2.f32 %v3565_v59 }
 0xeef   :  { %v8464_v4 = vpop.eup %7288 }
 0xef0   :  { %v3593_v5 = vsel %vm352_vm8, %v8464_v4, 0.0 }
 0xef3   :  { %v8470_v46 = vpop.eup %7290 }
 0xef4   :  { %v3599_v40 = vsel %vm352_vm8, %v8470_v46, 0.0 }
 0xf05   :  { %3597 = vadd.xlane.f32.xlu0 %v3596_v21 }
 0xf09   :  { %3603 = vadd.xlane.f32.xlu0 %v3602_v60  ;;  %3594 = vadd.xlane.f32.xlu1 %v3593_v5 }
 0xf0d   :  { %3600 = vadd.xlane.f32.xlu1 %v3599_v40 }
 0xf35   :  { %v3511_v0 = vpop.xlane.xlu1 %3510  ;;  %v3514_v1 = vpop.xlane.xlu0 %3513 }
 0xf36   :  { %v3549_v7 = vsub.f32 %v8386_v14, %v3511_v0  ;;  %v3550_v23 = vsub.f32 %v8388_v29, %v3514_v1 }
 0xf38   :  { %v3569_v9 = vmul.f32 1.442695, %v3549_v7  ;;  %v3571_v11 = vmul.f32 1.442695, %v3550_v23 }
 0xf3a   :  { %7292 = vpow2.f32 %v3569_v9 }
 0xf3b   :  { %7294 = vpow2.f32 %v3571_v11 }
 0xf3d   :  { %v3517_v31 = vpop.xlane.xlu1 %3516  ;;  %v3520_v39 = vpop.xlane.xlu0 %3519 }
 0xf3e   :  { %v3551_v27 = vsub.f32 %v8394_v51, %v3517_v31  ;;  %v3552_v30 = vsub.f32 %v8396_v49, %v3520_v39 }
 0xf40   :  { %v3573_v17 = vmul.f32 1.442695, %v3551_v27  ;;  %v3575_v38 = vmul.f32 1.442695, %v3552_v30 }
 0xf42   :  { %7296 = vpow2.f32 %v3573_v17 }
 0xf43   :  { %7298 = vpow2.f32 %v3575_v38 }
 0xf44   :  { %v8478_v52 = vpop.eup %7292 }
 0xf45   :  { %v8480_v33 = vpop.eup %7294  ;;  %v3523_v14 = vpop.xlane.xlu1 %3522  ;;  %v3605_v48 = vsel %vm352_vm8, %v8478_v52, 0.0 }
 0xf46   :  { %v3526_v29 = vpop.xlane.xlu0 %3525  ;;  %v3553_v34 = vsub.f32 %v8402_v20, %v3523_v14  ;;  %3606 = vadd.xlane.f32.xlu1 %v3605_v48  ;;  %v3608_v51 = vsel %vm352_vm8, %v8480_v33, 0.0 }
 0xf47   :  { %v3554_v45 = vsub.f32 %v8404_v53, %v3526_v29  ;;  %3609 = vadd.xlane.f32.xlu0 %v3608_v51 }
 0xf48   :  { %v3577_v49 = vmul.f32 1.442695, %v3553_v34 }
 0xf49   :  { %v3579_v57 = vmul.f32 1.442695, %v3554_v45 }
 0xf4a   :  { %7300 = vpow2.f32 %v3577_v49 }
 0xf4b   :  { %7302 = vpow2.f32 %v3579_v57 }
 0xf4c   :  { %v8488_v58 = vpop.eup %7296 }
 0xf4d   :  { %v8490_v8 = vpop.eup %7298  ;;  %v3529_v13 = vpop.xlane.xlu1 %3528  ;;  %v3611_v20 = vsel %vm352_vm8, %v8488_v58, 0.0 }
 0xf4e   :  { %v3532_v10 = vpop.xlane.xlu0 %3531  ;;  %v3555_v53 = vsub.f32 %v8410_v55, %v3529_v13  ;;  %3612 = vadd.xlane.f32.xlu1 %v3611_v20  ;;  %v3614_v42 = vsel %vm352_vm8, %v8490_v8, 0.0 }
 0xf4f   :  { %v3556_v56 = vsub.f32 %v8412_v2, %v3532_v10  ;;  %3615 = vadd.xlane.f32.xlu0 %v3614_v42 }
 0xf50   :  { %v3581_v54 = vmul.f32 1.442695, %v3555_v53 }
 0xf51   :  { %v3583_v3 = vmul.f32 1.442695, %v3556_v56 }
 0xf52   :  { %7304 = vpow2.f32 %v3581_v54  ;;  %v3839_v54 = vsel %vm1331_vm9, %v8436_v50, 0 }
 0xf53   :  { %7306 = vpow2.f32 %v3583_v3 }
 0xf54   :  { %v8498_v6 = vpop.eup %7300 }
 0xf55   :  { %v8500_v59 = vpop.eup %7302  ;;  %v3617_v21 = vsel %vm352_vm8, %v8498_v6, 0.0  ;;  %v3535_v0 = vpop.xlane.xlu1 %3534 }
 0xf56   :  { %3618 = vadd.xlane.f32.xlu1 %v3617_v21  ;;  %v3620_v55 = vsel %vm352_vm8, %v8500_v59, 0.0  ;;  %v3538_v1 = vpop.xlane.xlu0 %3537  ;;  %v3557_v7 = vsub.f32 %v8418_v22, %v3535_v0 }
 0xf57   :  { %3621 = vadd.xlane.f32.xlu0 %v3620_v55  ;;  %v3558_v23 = vsub.f32 %v8420_v47, %v3538_v1 }
 0xf58   :  { %v3585_v31 = vmul.f32 1.442695, %v3557_v7 }
 0xf59   :  { %v3587_v27 = vmul.f32 1.442695, %v3558_v23 }
 0xf5a   :  { %7308 = vpow2.f32 %v3585_v31 }
 0xf5b   :  { %7310 = vpow2.f32 %v3587_v27 }
 0xf5c   :  { %v8506_v2 = vpop.eup %7304 }
 0xf5d   :  { %v8508_v60 = vpop.eup %7306  ;;  %v3623_v5 = vsel %vm352_vm8, %v8506_v2, 0.0  ;;  %v3541_v9 = vpop.xlane.xlu1 %3540 }
 0xf5e   :  { %3624 = vadd.xlane.f32.xlu1 %v3623_v5  ;;  %v3626_v40 = vsel %vm352_vm8, %v8508_v60, 0.0  ;;  %v3544_v11 = vpop.xlane.xlu0 %3543  ;;  %v3559_v39 = vsub.f32 %v8428_v28, %v3541_v9  ;;  %v3791_v5 = vsel %vm1331_vm9, %v8434_v35, 0  ;;  %v3887_v35 = vsel %vm1331_vm9, %v8438_v61, 0 }
 0xf5f   :  { %3627 = vadd.xlane.f32.xlu0 %v3626_v40  ;;  %v3560_v30 = vsub.f32 %v8426_v36, %v3544_v11  ;;  %v3983_v11 = vsel %vm1331_vm9, %v8442_v16, 0 }
 0xf60   :  { %v3589_v17 = vmul.f32 1.442695, %v3559_v39  ;;  %v4031_v39 = vsel %vm1331_vm9, %v8440_v62, 0 }
 0xf62   :  { %7312 = vpow2.f32 %v3589_v17  ;;  %v8524_v38 = vpop.permute.xlu0 %4121 }
 0xf64   :  { %v8526_v22 = vpop.eup %7308 }
 0xf65   :  { %v8528_v47 = vpop.eup %7310  ;;  %v3629_v28 = vsel %vm352_vm8, %v8526_v22, 0.0 }
 0xf66   :  { %v3632_v48 = vsel %vm352_vm8, %v8528_v47, 0.0 }
 0xf6c   :  { %v8532_v29 = vpop.eup %7312 }
 0xf6d   :  { %v3635_v51 = vsel %vm352_vm8, %v8532_v29, 0.0 }
 0xf6f   :  { %4313 = vrot.lane.b32.xlu1 %v8242_v32, %s9164_s30  ;;  %v3591_v32 = vmul.f32 1.442695, %v3560_v30 }
 0xf71   :  { %7314 = vpow2.f32 %v3591_v32  ;;  %v4079_v32 = vsel %vm1331_vm9, %v8452_v44, 0 }
 0xf75   :  { %4265 = vrot.lane.b32.xlu0 %v8246_v18, %s9164_s30  ;;  %v8522_v18 = vpop.permute.xlu1 %4169 }
 0xf79   :  { %v8534_v36 = vpop.permute.xlu1 %4217 }
 0xf7b   :  { %v8538_v34 = vpop.eup %7314 }
 0xf7c   :  { %v3638_v57 = vsel %vm352_vm8, %v8538_v34, 0.0 }
 0xf92   :  { %v3598_v14 = vpop.xlane.xlu0 %3597 }
 0xf93   :  { %7316 = vrcp.f32 %v3598_v14  ;;  %3630 = vadd.xlane.f32.xlu1 %v3629_v28  ;;  %v4127_v28 = vsel %vm1331_vm9, %v8524_v38, 0 }
 0xf94   :  { %3633 = vadd.xlane.f32.xlu0 %v3632_v48 }
 0xf96   :  { %v3604_v45 = vpop.xlane.xlu0 %3603  ;;  %v3595_v49 = vpop.xlane.xlu1 %3594 }
 0xf97   :  { %7318 = vrcp.f32 %v3604_v45  ;;  %3636 = vadd.xlane.f32.xlu1 %v3635_v51 }
 0xf98   :  { %7320 = vrcp.f32 %v3595_v49  ;;  %3639 = vadd.xlane.f32.xlu0 %v3638_v57  ;;  %v4175_v49 = vsel %vm1331_vm9, %v8522_v18, 0  ;;  %v4223_v57 = vsel %vm1331_vm9, %v8534_v36, 0 }
 0xf9a   :  { %v3601_v13 = vpop.xlane.xlu1 %3600 }
 0xf9b   :  { %7322 = vrcp.f32 %v3601_v13 }
 0xf9d   :  { %v7317_v10 = vpop.eup %7316 }
 0xf9e   :  { %v3658_v20 = vmul.f32 %v7317_v10, %v8458_v41 }
 0xfa0   :  { %v3674_v53 = vpack.c.bf16 %v3658_v20, %v3658_v20 }
 0xfa1   :  { %v7319_v56 = vpop.eup %7318 }
 0xfa2   :  { %v7321_v42 = vpop.eup %7320  ;;  %6832 = vmatmul.mubr.msk.bf16.vlgmr.msra.gmra.mrb[108].mxu1 %vm352_vm8, %v3674_v53  ;;  %v3660_v21 = vmul.f32 %v7319_v56, %v8462_v63  ;;  %v3935_v63 = vsel %vm1331_vm9, %v8446_v12, 0 }
 0xfa3   :  { %v3657_v3 = vmul.f32 %v7321_v42, %v8464_v4  ;;  %6842 = vmatpush3.bf16.msra.mxu1 %v3839_v54  ;;  %6843 = vmatprep.mubr.msk.bf16.mxu1 %vm7400_vm7, %v7397_v15 }
 0xfa4   :  { %6853 = vmatprep.subr.bf16.mxu1 %v7397_v15  ;;  %v3676_v50 = vpack.c.bf16 %v3660_v21, %v3660_v21 }
 0xfa5   :  { %v3673_v55 = vpack.c.bf16 %v3657_v3, %v3657_v3  ;;  %v7323_v41 = vpop.eup %7322 }
 0xfa6   :  { %v3659_v4 = vmul.f32 %v7323_v41, %v8470_v46 }
 0xfa7   :  { %6826 = vmatmul.mubr.msk.bf16.vlgmr.msra.gmra.mrb[108].mxu0 %vm352_vm8, %v3673_v55 }
 0xfa8   :  { %6836 = vmatpush3.bf16.msra.mxu0 %v3791_v5  ;;  %4409 = vrot.lane.b32.xlu1 %v8254_v19, %s9164_s30  ;;  %v3675_v19 = vpack.c.bf16 %v3659_v4, %v3659_v4 }
 0xfa9   :  { %6837 = vmatprep.mubr.msk.bf16.mxu0 %vm7400_vm7, %v7397_v15  ;;  %6847 = vmatprep.subr.bf16.mxu0 %v7397_v15 }
 0xfaa   :  { %6844 = vmatmul.mubr.msk.bf16.vlgmr.msra.gmra.mrb[112].mxu1 %vm352_vm8, %v3676_v50 }
 0xfab   :  { %6854 = vmatpush3.bf16.msra.mxu1 %v3935_v63  ;;  %6855 = vmatprep.mubr.msk.bf16.mxu1 %vm7400_vm7, %v7397_v15 }
 0xfac   :  { %6865 = vmatprep.subr.bf16.mxu1 %v7397_v15 }
 0xfae   :  { %4361 = vrot.lane.b32.xlu0 %v8256_v26, %s9164_s30 }
 0xfaf   :  { %6838 = vmatmul.mubr.msk.bf16.vlgmr.msra.gmra.mrb[112].mxu0 %vm352_vm8, %v3675_v19 }
 0xfb0   :  { %6848 = vmatpush3.bf16.msra.mxu0 %v3887_v35  ;;  %6849 = vmatprep.mubr.msk.bf16.mxu0 %vm7400_vm7, %v7397_v15 }
 0xfb1   :  { %6859 = vmatprep.subr.bf16.mxu0 %v7397_v15 }
 0xfd3   :  { %v3607_v12 = vpop.xlane.xlu1 %3606 }
 0xfd4   :  { %7324 = vrcp.f32 %v3607_v12  ;;  %v3610_v46 = vpop.xlane.xlu0 %3609 }
 0xfd5   :  { %7326 = vrcp.f32 %v3610_v46 }
 0xfdb   :  { %v3613_v40 = vpop.xlane.xlu1 %3612 }
 0xfdc   :  { %7328 = vrcp.f32 %v3613_v40  ;;  %v3616_v0 = vpop.xlane.xlu0 %3615 }
 0xfdd   :  { %7330 = vrcp.f32 %v3616_v0 }
 0xfde   :  { %v7325_v26 = vpop.eup %7324 }
 0xfdf   :  { %v7327_v1 = vpop.eup %7326  ;;  %v3661_v61 = vmul.f32 %v7325_v26, %v8478_v52 }
 0xfe0   :  { %v3662_v7 = vmul.f32 %v7327_v1, %v8480_v33 }
 0xfe1   :  { %v3677_v23 = vpack.c.bf16 %v3661_v61, %v3661_v61 }
 0xfe2   :  { %v3678_v9 = vpack.c.bf16 %v3662_v7, %v3662_v7 }
 0xfe3   :  { %6850 = vmatmul.mubr.msk.bf16.vlgmr.msra.gmra.mrb[116].mxu0 %vm352_vm8, %v3677_v23  ;;  %v3619_v31 = vpop.xlane.xlu1 %3618 }
 0xfe4   :  { %6860 = vmatpush3.bf16.msra.mxu0 %v3983_v11  ;;  %7332 = vrcp.f32 %v3619_v31  ;;  %6856 = vmatmul.mubr.msk.bf16.vlgmr.msra.gmra.mrb[116].mxu1 %vm352_vm8, %v3678_v9  ;;  %v3622_v27 = vpop.xlane.xlu0 %3621 }
 0xfe5   :  { %6866 = vmatpush3.bf16.msra.mxu1 %v4031_v39  ;;  %7334 = vrcp.f32 %v3622_v27  ;;  %6861 = vmatprep.mubr.msk.bf16.mxu0 %vm7400_vm7, %v7397_v15 }
 0xfe6   :  { %v7329_v52 = vpop.eup %7328  ;;  %6867 = vmatprep.mubr.msk.bf16.mxu1 %vm7400_vm7, %v7397_v15  ;;  %6871 = vmatprep.subr.bf16.mxu0 %v7397_v15 }
 0xfe7   :  { %v7331_v16 = vpop.eup %7330  ;;  %v3663_v33 = vmul.f32 %v7329_v52, %v8488_v58  ;;  %6877 = vmatprep.subr.bf16.mxu1 %v7397_v15 }
 0xfe8   :  { %v3664_v62 = vmul.f32 %v7331_v16, %v8490_v8 }
 0xfe9   :  { %v3679_v30 = vpack.c.bf16 %v3663_v33, %v3663_v33 }
 0xfea   :  { %v3680_v17 = vpack.c.bf16 %v3664_v62, %v3664_v62 }
 0xfeb   :  { %6862 = vmatmul.mubr.msk.bf16.vlgmr.msra.gmra.mrb[120].mxu0 %vm352_vm8, %v3679_v30  ;;  %v3625_v14 = vpop.xlane.xlu1 %3624 }
 0xfec   :  { %6872 = vmatpush3.bf16.msra.mxu0 %v4079_v32  ;;  %7336 = vrcp.f32 %v3625_v14  ;;  %6868 = vmatmul.mubr.msk.bf16.vlgmr.msra.gmra.mrb[120].mxu1 %vm352_vm8, %v3680_v17  ;;  %v3628_v58 = vpop.xlane.xlu0 %3627 }
 0xfed   :  { %6878 = vmatpush3.bf16.msra.mxu1 %v4127_v28  ;;  %7338 = vrcp.f32 %v3628_v58  ;;  %6873 = vmatprep.mubr.msk.bf16.mxu0 %vm7400_vm7, %v7397_v15 }
 0xfee   :  { %v7333_v8 = vpop.eup %7332  ;;  %6879 = vmatprep.mubr.msk.bf16.mxu1 %vm7400_vm7, %v7397_v15  ;;  %6883 = vmatprep.subr.bf16.mxu0 %v7397_v15 }
 0xfef   :  { %v7335_v44 = vpop.eup %7334  ;;  %v3665_v48 = vmul.f32 %v7333_v8, %v8498_v6  ;;  %6889 = vmatprep.subr.bf16.mxu1 %v7397_v15  ;;  %v4314_v10 = vpop.permute.xlu1 %4313 }
 0xff0   :  { %v3666_v38 = vmul.f32 %v7335_v44, %v8500_v59  ;;  %v4266_v13 = vpop.permute.xlu0 %4265  ;;  %v4319_v42 = vsel %vm1331_vm9, %v4314_v10, 0 }
 0xff1   :  { %v3681_v45 = vpack.c.bf16 %v3665_v48, %v3665_v48  ;;  %v4271_v56 = vsel %vm1331_vm9, %v4266_v13, 0 }
 0xff2   :  { %v3682_v51 = vpack.c.bf16 %v3666_v38, %v3666_v38 }
 0xff3   :  { %6874 = vmatmul.mubr.msk.bf16.vlgmr.msra.gmra.mrb[124].mxu0 %vm352_vm8, %v3681_v45 }
 0xff4   :  { %6880 = vmatmul.mubr.msk.bf16.vlgmr.msra.gmra.mrb[124].mxu1 %vm352_vm8, %v3682_v51  ;;  %6884 = vmatpush3.bf16.msra.mxu0 %v4175_v49 }
 0xff5   :  { %6890 = vmatpush3.bf16.msra.mxu1 %v4223_v57  ;;  %6885 = vmatprep.mubr.msk.bf16.mxu0 %vm7400_vm7, %v7397_v15 }
 0xff6   :  { %v7337_v6 = vpop.eup %7336  ;;  %6891 = vmatprep.mubr.msk.bf16.mxu1 %vm7400_vm7, %v7397_v15  ;;  %6895 = vmatprep.subr.bf16.mxu0 %v7397_v15 }
 0xff7   :  { %v7339_v59 = vpop.eup %7338  ;;  %v3667_v18 = vmul.f32 %v7337_v6, %v8506_v2  ;;  %6901 = vmatprep.subr.bf16.mxu1 %v7397_v15 }
 0xff8   :  { %v3668_v36 = vmul.f32 %v7339_v59, %v8508_v60 }
 0xff9   :  { %v3683_v20 = vpack.c.bf16 %v3667_v18, %v3667_v18 }
 0xffa   :  { %v3684_v53 = vpack.c.bf16 %v3668_v36, %v3668_v36 }
 0xffb   :  { %6886 = vmatmul.mubr.msk.bf16.vlgmr.msra.gmra.mrb[128].mxu0 %vm352_vm8, %v3683_v20 }
 0xffc   :  { %6892 = vmatmul.mubr.msk.bf16.vlgmr.msra.gmra.mrb[128].mxu1 %vm352_vm8, %v3684_v53  ;;  %6896 = vmatpush3.bf16.msra.mxu0 %v4271_v56 }
 0xffd   :  { %6902 = vmatpush3.bf16.msra.mxu1 %v4319_v42  ;;  %6897 = vmatprep.mubr.msk.bf16.mxu0 %vm7400_vm7, %v7397_v15 }
 0xffe   :  { %6903 = vmatprep.mubr.msk.bf16.mxu1 %vm7400_vm7, %v7397_v15  ;;  %6907 = vmatprep.subr.bf16.mxu0 %v7397_v15 }
 0xfff   :  { %6913 = vmatprep.subr.bf16.mxu1 %v7397_v15 }
0x1020   :  { %v3631_v2 = vpop.xlane.xlu1 %3630 }
0x1021   :  { %7340 = vrcp.f32 %v3631_v2  ;;  %v3634_v60 = vpop.xlane.xlu0 %3633 }
0x1022   :  { %7342 = vrcp.f32 %v3634_v60 }
0x1024   :  { %v3637_v54 = vpop.xlane.xlu1 %3636 }
0x1025   :  { %7344 = vrcp.f32 %v3637_v54  ;;  %v3640_v3 = vpop.xlane.xlu0 %3639 }
0x1026   :  { %7346 = vrcp.f32 %v3640_v3 }
0x1028   :  { %v4410_v4 = vpop.permute.xlu1 %4409 }
0x1029   :  { %v4362_v50 = vpop.permute.xlu0 %4361  ;;  %v4415_v40 = vsel %vm1331_vm9, %v4410_v4, 0 }
0x102a   :  { %v4367_v46 = vsel %vm1331_vm9, %v4362_v50, 0 }
0x102b   :  { %v7341_v21 = vpop.eup %7340 }
0x102c   :  { %v7343_v55 = vpop.eup %7342  ;;  %v3669_v41 = vmul.f32 %v7341_v21, %v8526_v22 }
0x102d   :  { %v3670_v5 = vmul.f32 %v7343_v55, %v8528_v47 }
0x102e   :  { %v3685_v63 = vpack.c.bf16 %v3669_v41, %v3669_v41 }
0x102f   :  { %v7345_v19 = vpop.eup %7344  ;;  %v3686_v35 = vpack.c.bf16 %v3670_v5, %v3670_v5 }
0x1030   :  { %v7347_v12 = vpop.eup %7346  ;;  %6898 = vmatmul.mubr.msk.bf16.vlgmr.msra.gmra.mrb[132].mxu0 %vm352_vm8, %v3685_v63  ;;  %v3671_v0 = vmul.f32 %v7345_v19, %v8532_v29 }
0x1031   :  { %6904 = vmatmul.mubr.msk.bf16.vlgmr.msra.gmra.mrb[132].mxu1 %vm352_vm8, %v3686_v35  ;;  %6908 = vmatpush3.bf16.msra.mxu0 %v4367_v46  ;;  %v3672_v22 = vmul.f32 %v7347_v12, %v8538_v34  ;;  %v7126_v12 = vld [vmem:[%s9160_s26 + $0x10] sm:$0xff]   ;;  %v7127_v46 = vld [vmem:[%s9160_s26 + $0x18] sm:$0xff]  }
0x1032   :  { %6914 = vmatpush3.bf16.msra.mxu1 %v4415_v40  ;;  %6909 = vmatprep.mubr.msk.bf16.mxu0 %vm7400_vm7, %v7397_v15  ;;  %v3687_v47 = vpack.c.bf16 %v3671_v0, %v3671_v0 }
0x1033   :  { %6915 = vmatprep.mubr.msk.bf16.mxu1 %vm7400_vm7, %v7397_v15  ;;  %v3688_v26 = vpack.c.bf16 %v3672_v22, %v3672_v22  ;;  %6919 = vmatprep.subr.bf16.mxu0 %v7126_v12 }
0x1038   :  { %6910 = vmatmul.mubr.msk.bf16.vlgmr.msra.gmra.mrb[136].mxu0 %vm352_vm8, %v3687_v47 }
0x1039   :  { %6916 = vmatmul.mubr.msk.bf16.vlgmr.msra.gmra.mrb[136].mxu1 %vm352_vm8, %v3688_v26  ;;  %6920 = vmatpush3.bf16.msra.mxu0 %v7126_v12 }
0x103a   :  { %6921 = vmatprep.subr.bf16.mxu0 %v7127_v46 }
0x103d   :  { %6922 = vmatpush3.bf16.msra.mxu0 %v7127_v46 }
0x1075   :  { %v8644_v1 = vpop.f32.mrb[108].mxu1 }
0x1076   :  { %v6833_v61 = vpop.f32.mrb[109].mxu1 }
0x1077   :  { %v3782_v7 = vpop.f32.mrb[110].mxu1 }
0x1078   :  { %v6834_v29 = vpop.f32.mrb[111].mxu1 }
0x107a   :  { %v8646_v23 = vpop.f32.mrb[108].mxu0 }
0x107b   :  { %v6827_v9 = vpop.f32.mrb[109].mxu0 }
0x107c   :  { %v3734_v11 = vpop.f32.mrb[110].mxu0 }
0x107d   :  { %v6828_v31 = vpop.f32.mrb[111].mxu0  ;;  %v8648_v34 = vpop.f32.mrb[112].mxu1 }
0x107e   :  { %v6845_v39 = vpop.f32.mrb[113].mxu1 }
0x107f   :  { %v3878_v27 = vpop.f32.mrb[114].mxu1 }
0x1080   :  { %v6846_v52 = vpop.f32.mrb[115].mxu1 }
0x1082   :  { %v8650_v16 = vpop.f32.mrb[112].mxu0 }
0x1083   :  { %v6839_v33 = vpop.f32.mrb[113].mxu0 }
0x1084   :  { %v3830_v62 = vpop.f32.mrb[114].mxu0 }
0x1085   :  { %v6840_v30 = vpop.f32.mrb[115].mxu0 }
0x10b6   :  { %v3923_v17 = vpop.f32.mrb[116].mxu0 }
0x10b7   :  { %v3971_v32 = vpop.f32.mrb[116].mxu1  ;;  %v6851_v14 = vpop.f32.mrb[117].mxu0 }
0x10b8   :  { %v7084_v28 = vpack.i.bf16 %v3971_v32, %v3923_v17  ;;  %v6857_v58 = vpop.f32.mrb[117].mxu1  ;;  %v3926_v8 = vpop.f32.mrb[118].mxu0 }
0x10b9   :  { %v3974_v44 = vpop.f32.mrb[118].mxu1  ;;  %v6852_v48 = vpop.f32.mrb[119].mxu0 }
0x10ba   :  { %7085 = vrot.lane.b32.xlu0 %v7084_v28, %s9165_s29  ;;  %v6858_v38 = vpop.f32.mrb[119].mxu1 }
0x10be   :  { %v4019_v45 = vpop.f32.mrb[120].mxu0 }
0x10bf   :  { %v4067_v51 = vpop.f32.mrb[120].mxu1  ;;  %v6863_v49 = vpop.f32.mrb[121].mxu0 }
0x10c0   :  { %v7089_v57 = vpack.i.bf16 %v4067_v51, %v4019_v45  ;;  %v6869_v6 = vpop.f32.mrb[121].mxu1  ;;  %v4022_v59 = vpop.f32.mrb[122].mxu0 }
0x10c1   :  { %v4070_v18 = vpop.f32.mrb[122].mxu1  ;;  %v6864_v36 = vpop.f32.mrb[123].mxu0 }
0x10c2   :  { %7090 = vrot.lane.b32.xlu1 %v7089_v57, %s9165_s29  ;;  %v6870_v13 = vpop.f32.mrb[123].mxu1 }
0x10c6   :  { %v4115_v10 = vpop.f32.mrb[124].mxu0 }
0x10c7   :  { %v4163_v20 = vpop.f32.mrb[124].mxu1  ;;  %v6875_v53 = vpop.f32.mrb[125].mxu0 }
0x10c8   :  { %v7094_v56 = vpack.i.bf16 %v4163_v20, %v4115_v10  ;;  %v6881_v42 = vpop.f32.mrb[125].mxu1  ;;  %v4118_v2 = vpop.f32.mrb[126].mxu0 }
0x10c9   :  { %v4166_v60 = vpop.f32.mrb[126].mxu1  ;;  %v6876_v54 = vpop.f32.mrb[127].mxu0 }
0x10ca   :  { %7095 = vrot.lane.b32.xlu0 %v7094_v56, %s9166_s4  ;;  %v6882_v3 = vpop.f32.mrb[127].mxu1 }
0x10ce   :  { %v4211_v21 = vpop.f32.mrb[128].mxu0 }
0x10cf   :  { %v4259_v55 = vpop.f32.mrb[128].mxu1  ;;  %v6887_v41 = vpop.f32.mrb[129].mxu0 }
0x10d0   :  { %v7099_v5 = vpack.i.bf16 %v4259_v55, %v4211_v21  ;;  %v6893_v50 = vpop.f32.mrb[129].mxu1  ;;  %v4214_v4 = vpop.f32.mrb[130].mxu0 }
0x10d1   :  { %v4262_v63 = vpop.f32.mrb[130].mxu1  ;;  %v6888_v19 = vpop.f32.mrb[131].mxu0 }
0x10d2   :  { %7100 = vrot.lane.b32.xlu1 %v7099_v5, %s9166_s4  ;;  %v6894_v35 = vpop.f32.mrb[131].mxu1 }
0x1103   :  { %v4307_v40 = vpop.f32.mrb[132].mxu0 }
0x1104   :  { %v4355_v0 = vpop.f32.mrb[132].mxu1  ;;  %v6899_v22 = vpop.f32.mrb[133].mxu0 }
0x1105   :  { %v7104_v47 = vpack.i.bf16 %v4355_v0, %v4307_v40  ;;  %v6905_v26 = vpop.f32.mrb[133].mxu1  ;;  %v4310_v61 = vpop.f32.mrb[134].mxu0 }
0x1106   :  { %v4358_v7 = vpop.f32.mrb[134].mxu1  ;;  %v6900_v29 = vpop.f32.mrb[135].mxu0 }
0x1107   :  { %7105 = vrot.lane.b32.xlu0 %v7104_v47, %s9167_s3  ;;  %v6906_v9 = vpop.f32.mrb[135].mxu1 }
0x110b   :  { %v4403_v11 = vpop.f32.mrb[136].mxu0 }
0x110c   :  { %v4451_v31 = vpop.f32.mrb[136].mxu1  ;;  %v6911_v39 = vpop.f32.mrb[137].mxu0 }
0x110d   :  { %v7109_v27 = vpack.i.bf16 %v4451_v31, %v4403_v11  ;;  %v6917_v52 = vpop.f32.mrb[137].mxu1  ;;  %v4406_v33 = vpop.f32.mrb[138].mxu0 }
0x110e   :  { %v4454_v62 = vpop.f32.mrb[138].mxu1  ;;  %v6912_v30 = vpop.f32.mrb[139].mxu0 }
0x110f   :  { %v6918_v17 = vpop.f32.mrb[139].mxu1  ;;  %7110 = vrot.lane.b32.xlu1 %v7109_v27, %s9167_s3 }
0x112c   :  { %v7086_v32 = vpop.permute.xlu0 %7085 }
0x112d   :  { %v7088_v28 = vunpack.i.h.bf16 %v7086_v32  ;;  %v7087_v58 = vunpack.i.l.bf16 %v7086_v32 }
0x112f   :  { %v4506_v45 = vsel %vm352_vm8, %v8644_v1, %v7088_v28  ;;  %v4505_v51 = vsel %vm352_vm8, %v8646_v23, %v7087_v58 }
0x1134   :  { %v7091_v48 = vpop.permute.xlu1 %7090 }
0x1135   :  { %v7093_v20 = vunpack.i.h.bf16 %v7091_v48  ;;  %v7092_v53 = vunpack.i.l.bf16 %v7091_v48  ;;  %v7128_v48 = vld [vmem:[%s9119_s10 + $0x10] sm:$0xff]  }
0x1136   :  { %6927 = vmatprep.subr.bf16.mxu1 %v7128_v48 }
0x1137   :  { %v4508_v23 = vsel %vm352_vm8, %v8648_v34, %v7093_v20  ;;  %v4507_v2 = vsel %vm352_vm8, %v8650_v16, %v7092_v53  ;;  %v6084_v34 = vld [vmem:[%s9161_s2 + $0x1] ss:$0 sm:$0xff]  ;;  %6928 = vmatpush3.bf16.msra.mxu1 %v7128_v48 }
0x113c   :  { %v7096_v14 = vpop.permute.xlu0 %7095 }
0x113d   :  { %v7098_v8 = vunpack.i.h.bf16 %v7096_v14  ;;  %v7097_v44 = vunpack.i.l.bf16 %v7096_v14 }
0x113f   :  { %v4509_v6 = vsel %vm2147_vm10, %v4505_v51, %v7097_v44  ;;  %v4510_v59 = vsel %vm2147_vm10, %v4506_v45, %v7098_v8  ;;  %v7130_v45 = vld [vmem:[%s9121_s12 + $0x20] sm:$0xff]   ;;  %v7131_v51 = vld [vmem:[%s9121_s12 + $0x28] sm:$0xff]  }
0x1140   :  { %6935 = vmatprep.subr.bf16.mxu0 %v7130_v45 }
0x1144   :  { %v7101_v18 = vpop.permute.xlu1 %7100 }
0x1145   :  { %v7103_v56 = vunpack.i.h.bf16 %v7101_v18  ;;  %v7102_v42 = vunpack.i.l.bf16 %v7101_v18 }
0x1147   :  { %v4512_v3 = vsel %vm2147_vm10, %v4508_v23, %v7103_v56  ;;  %v4511_v21 = vsel %vm2147_vm10, %v4507_v2, %v7102_v42  ;;  %v6091_v23 = vld [vmem:[%s9162_s1 + $0x1] ss:$0 sm:$0xff] }
0x1179   :  { %v7106_v38 = vpop.permute.xlu0 %7105 }
0x117a   :  { %v7108_v49 = vunpack.i.h.bf16 %v7106_v38  ;;  %v7107_v57 = vunpack.i.l.bf16 %v7106_v38  ;;  %v7129_v38 = vld [vmem:[%s9119_s10 + $0x18] sm:$0xff]  }
0x117b   :  { %6929 = vmatprep.subr.bf16.mxu1 %v7129_v38 }
0x117c   :  { %v4513_v36 = vsel %vm2152_vm11, %v4509_v6, %v7107_v57  ;;  %v4514_v13 = vsel %vm2152_vm11, %v4510_v59, %v7108_v49  ;;  %6930 = vmatpush3.bf16.msra.mxu1 %v7129_v38 }
0x117d   :  { %v4517_v10 = vpack.c.bf16 %v4514_v13, %v4513_v36 }
0x117f   :  { %6923 = vmatprep.mubr.msk.bf16.mxu0 %vm237_vm6, %v4517_v10 }
0x1181   :  { %v7111_v1 = vpop.permute.xlu1 %7110 }
0x1182   :  { %v7113_v60 = vunpack.i.h.bf16 %v7111_v1  ;;  %v7112_v54 = vunpack.i.l.bf16 %v7111_v1 }
0x1184   :  { %v4516_v55 = vsel %vm2152_vm11, %v4512_v3, %v7113_v60  ;;  %v4515_v41 = vsel %vm2152_vm11, %v4511_v21, %v7112_v54 }
0x1185   :  { %v4518_v5 = vpack.c.bf16 %v4516_v55, %v4515_v41  ;;  %v6092_v55 = vld [vmem:[%s9116_s7 + $0x1] ss:$0 sm:$0xff] }
0x1187   :  { %6924 = vmatmul.mubr.msk.bf16.vlgmr.msra.gmra.mrb[140].mxu0 %vm237_vm6, %v4518_v5 }
0x1188   :  { %6936 = vmatpush3.bf16.msra.mxu0 %v7130_v45 }
0x1189   :  { %6937 = vmatprep.subr.bf16.mxu0 %v7131_v51 }
0x118c   :  { %6938 = vmatpush3.bf16.msra.mxu0 %v7131_v51 }
0x125a   :  { %v6925_v50 = vpop.f32.mrb[140].mxu0 }
0x125b   :  { %v4584_v4 = vpop.f32.mrb[141].mxu0  ;;  %v4593_v16 = vadd.f32 %v6925_v50, %v6084_v34 }
0x125c   :  { %v4585_v63 = vadd.f32 %v6084_v34, %v4584_v4  ;;  %v6926_v19 = vpop.f32.mrb[142].mxu0 }
0x125d   :  { %v4587_v35 = vpop.f32.mrb[143].mxu0  ;;  %v4601_v40 = vadd.f32 %v4593_v16, %v8170_v24  ;;  %v4596_v0 = vadd.f32 %v6926_v19, %v6084_v34 }
0x125e   :  { %v4599_v12 = vadd.f32 %v4585_v63, %v8163_v43  ;;  %v4588_v46 = vadd.f32 %v6084_v34, %v4587_v35 }
0x125f   :  { %v4602_v61 = vadd.f32 %v4596_v0, %v8172_v25  ;;  %v4613_v7 = vsel %vm237_vm6, %v4601_v40, 0.0  ;;  %v7132_v0 = vld [vmem:[%s9121_s12 + $0x30] sm:$0xff]  }
0x1260   :  { %v4600_v22 = vadd.f32 %v4588_v46, %v8165_v37  ;;  %v4607_v47 = vsel %vm237_vm6, %v4599_v12, 0.0  ;;  %6939 = vmatprep.subr.bf16.mxu0 %v7132_v0 }
0x1261   :  { %4608 = vadd.xlane.f32.xlu0 %v4607_v47  ;;  %v4616_v29 = vsel %vm237_vm6, %v4602_v61, 0.0  ;;  %6940 = vmatpush3.bf16.msra.mxu0 %v7132_v0  ;;  %v6098_v47 = vld [vmem:[%s9120_s11 + $0x1] ss:$0 sm:$0xff] }
0x1262   :  { %v4610_v26 = vsel %vm237_vm6, %v4600_v22, 0.0 }
0x1263   :  { %4611 = vadd.xlane.f32.xlu1 %v4610_v26 }
0x1265   :  { %4614 = vadd.xlane.f32.xlu0 %v4613_v7 }
0x1269   :  { %4617 = vadd.xlane.f32.xlu0 %v4616_v29 }
0x12ee   :  { %v4609_v43 = vpop.xlane.xlu0 %4608 }
0x12ef   :  { %v4619_v9 = vmul.f32 0.03125, %v4609_v43 }
0x12f0   :  { %v4612_v24 = vpop.xlane.xlu1 %4611 }
0x12f1   :  { %v4623_v11 = vsub.f32 %v4599_v12, %v4619_v9  ;;  %v4620_v31 = vmul.f32 0.03125, %v4612_v24 }
0x12f2   :  { %v4615_v37 = vpop.xlane.xlu0 %4614 }
0x12f3   :  { %v4624_v39 = vsub.f32 %v4600_v22, %v4620_v31  ;;  %v4621_v27 = vmul.f32 0.03125, %v4615_v37  ;;  %v4627_v52 = vmul.f32 %v4623_v11, %v4623_v11  ;;  %v7133_v22 = vld [vmem:[%s9121_s12 + $0x38] sm:$0xff]  }
0x12f4   :  { %6941 = vmatprep.subr.bf16.mxu0 %v7133_v22 }
0x12f5   :  { %v4625_v33 = vsub.f32 %v4601_v40, %v4621_v27  ;;  %v4631_v62 = vsel %vm237_vm6, %v4627_v52, 0.0  ;;  %v4628_v30 = vmul.f32 %v4624_v39, %v4624_v39  ;;  %6942 = vmatpush3.bf16.msra.mxu0 %v7133_v22 }
0x12f6   :  { %4632 = vadd.xlane.f32.xlu1 %v4631_v62  ;;  %v4618_v25 = vpop.xlane.xlu0 %4617  ;;  %v6112_v62 = vld [vmem:[%s9122_s13 + $0x1] ss:$0 sm:$0xff] }
0x12f7   :  { %v4622_v17 = vmul.f32 0.03125, %v4618_v25  ;;  %v4634_v32 = vsel %vm237_vm6, %v4628_v30, 0.0  ;;  %v4629_v14 = vmul.f32 %v4625_v33, %v4625_v33 }
0x12f8   :  { %4635 = vadd.xlane.f32.xlu0 %v4634_v32 }
0x12f9   :  { %v4626_v28 = vsub.f32 %v4602_v61, %v4622_v17  ;;  %v4637_v58 = vsel %vm237_vm6, %v4629_v14, 0.0 }
0x12fa   :  { %4638 = vadd.xlane.f32.xlu1 %v4637_v58 }
0x12fb   :  { %v4630_v8 = vmul.f32 %v4626_v28, %v4626_v28 }
0x12fd   :  { %v4640_v44 = vsel %vm237_vm6, %v4630_v8, 0.0 }
0x12fe   :  { %4641 = vadd.xlane.f32.xlu0 %v4640_v44 }
0x1383   :  { %v4633_v49 = vpop.xlane.xlu1 %4632 }
0x1384   :  { %v4643_v57 = vmul.f32 0.03125, %v4633_v49 }
0x1385   :  { %v4636_v6 = vpop.xlane.xlu0 %4635 }
0x1386   :  { %v4647_v59 = vadd.f32 1e-05, %v4643_v57  ;;  %v4644_v18 = vmul.f32 0.03125, %v4636_v6 }
0x1387   :  { %v4639_v36 = vpop.xlane.xlu1 %4638 }
0x1388   :  { %7348 = vrsqrt.f32 %v4647_v59  ;;  %v4648_v13 = vadd.f32 1e-05, %v4644_v18  ;;  %v4645_v10 = vmul.f32 0.03125, %v4639_v36 }
0x138a   :  { %7350 = vrsqrt.f32 %v4648_v13  ;;  %v4649_v20 = vadd.f32 1e-05, %v4645_v10 }
0x138b   :  { %v4642_v53 = vpop.xlane.xlu0 %4641 }
0x138c   :  { %7352 = vrsqrt.f32 %v4649_v20  ;;  %v4646_v56 = vmul.f32 0.03125, %v4642_v53 }
0x138e   :  { %v4650_v42 = vadd.f32 1e-05, %v4646_v56 }
0x1390   :  { %7354 = vrsqrt.f32 %v4650_v42 }
0x1392   :  { %v7349_v1 = vpop.eup %7348 }
0x1393   :  { %v4655_v2 = vmul.f32 %v7349_v1, %v4623_v11 }
0x1394   :  { %v7351_v60 = vpop.eup %7350 }
0x1395   :  { %v4656_v54 = vmul.f32 %v7351_v60, %v4624_v39  ;;  %v4665_v3 = vmul.f32 %v6091_v23, %v4655_v2 }
0x1396   :  { %v7353_v21 = vpop.eup %7352 }
0x1397   :  { %v4657_v41 = vmul.f32 %v7353_v21, %v4625_v33  ;;  %v4666_v5 = vmul.f32 %v6091_v23, %v4656_v54  ;;  %v4675_v34 = vadd.f32 %v6092_v55, %v4665_v3 }
0x1399   :  { %v4676_v50 = vadd.f32 %v6092_v55, %v4666_v5  ;;  %v4667_v16 = vmul.f32 %v6091_v23, %v4657_v41 }
0x139a   :  { %v7355_v4 = vpop.eup %7354 }
0x139b   :  { %v4658_v63 = vmul.f32 %v7355_v4, %v4626_v28  ;;  %v4679_v19 = vpack.c.bf16 %v4676_v50, %v4675_v34  ;;  %v4677_v12 = vadd.f32 %v6092_v55, %v4667_v16 }
0x139d   :  { %v4668_v35 = vmul.f32 %v6091_v23, %v4658_v63  ;;  %6931 = vmatprep.mubr.msk.bf16.mxu1 %vm237_vm6, %v4679_v19 }
0x139f   :  { %v4678_v46 = vadd.f32 %v6092_v55, %v4668_v35 }
0x13a1   :  { %v4680_v40 = vpack.c.bf16 %v4678_v46, %v4677_v12 }
0x13a3   :  { %6932 = vmatmul.mubr.msk.bf16.vlgmr.msra.gmra.mrb[140].mxu1 %vm237_vm6, %v4680_v40 }
0x1476   :  { %v6933_v26 = vpop.f32.mrb[140].mxu1 }
0x1477   :  { %v4755_v61 = vadd.f32 %v6933_v26, %v6098_v47  ;;  %v4746_v7 = vpop.f32.mrb[141].mxu1 }
0x1478   :  { %v4747_v29 = vadd.f32 %v6098_v47, %v4746_v7  ;;  %v6934_v43 = vpop.f32.mrb[142].mxu1 }
0x1479   :  { %v4758_v9 = vadd.f32 %v6934_v43, %v6098_v47  ;;  %v4749_v24 = vpop.f32.mrb[143].mxu1  ;;  %v4763_v31 = vmax.f32 %v4755_v61, 0.0  ;;  %v6121_v61 = vld [vmem:[%s9117_s8 + $0x1] ss:$0 sm:$0xff] }
0x147a   :  { %v4750_v11 = vadd.f32 %v6098_v47, %v4749_v24  ;;  %v4761_v39 = vmax.f32 %v4747_v29, 0.0  ;;  %v6122_v43 = vld [vmem:[%s9118_s9 + $0x1] ss:$0 sm:$0xff] }
0x147b   :  { %v4764_v37 = vmax.f32 %v4758_v9, 0.0 }
0x147c   :  { %v4762_v27 = vmax.f32 %v4750_v11, 0.0 }
0x147d   :  { %v4766_v52 = vpack.c.bf16 %v4764_v37, %v4763_v31 }
0x147e   :  { %v4765_v33 = vpack.c.bf16 %v4762_v27, %v4761_v39 }
0x1480   :  { %6943 = vmatprep.mubr.msk.bf16.mxu0 %vm2441_vm12, %v4765_v33 }
0x1481   :  { %6944 = vmatmul.mubr.msk.bf16.vlgmr.msra.gmra.mrb[144].mxu0 %vm2441_vm12, %v4766_v52 }
0x1554   :  { %v6945_v30 = vpop.f32.mrb[144].mxu0 }
0x1555   :  { %v4848_v25 = vpop.f32.mrb[145].mxu0  ;;  %v4857_v17 = vadd.f32 %v6945_v30, %v6112_v62 }
0x1556   :  { %v4849_v32 = vadd.f32 %v6112_v62, %v4848_v25  ;;  %v6946_v14 = vpop.f32.mrb[146].mxu0 }
0x1557   :  { %v4851_v28 = vpop.f32.mrb[147].mxu0  ;;  %v4860_v8 = vadd.f32 %v6946_v14, %v6112_v62  ;;  %v4865_v48 = vadd.f32 %v4857_v17, %v4677_v12 }
0x1558   :  { %v4863_v58 = vadd.f32 %v4849_v32, %v4675_v34  ;;  %v4852_v44 = vadd.f32 %v6112_v62, %v4851_v28 }
0x1559   :  { %v4866_v51 = vadd.f32 %v4860_v8, %v4678_v46  ;;  %v4877_v57 = vsel %vm237_vm6, %v4865_v48, 0.0 }
0x155a   :  { %v4864_v38 = vadd.f32 %v4852_v44, %v4676_v50  ;;  %v4871_v45 = vsel %vm237_vm6, %v4863_v58, 0.0 }
0x155b   :  { %4872 = vadd.xlane.f32.xlu1 %v4871_v45  ;;  %v4880_v6 = vsel %vm237_vm6, %v4866_v51, 0.0 }
0x155c   :  { %v4874_v49 = vsel %vm237_vm6, %v4864_v38, 0.0 }
0x155d   :  { %4875 = vadd.xlane.f32.xlu0 %v4874_v49 }
0x155f   :  { %4878 = vadd.xlane.f32.xlu1 %v4877_v57 }
0x1561   :  { %4881 = vadd.xlane.f32.xlu0 %v4880_v6 }
0x15e8   :  { %v4873_v59 = vpop.xlane.xlu1 %4872 }
0x15e9   :  { %v4883_v18 = vmul.f32 0.03125, %v4873_v59 }
0x15ea   :  { %v4876_v36 = vpop.xlane.xlu0 %4875 }
0x15eb   :  { %v4887_v13 = vsub.f32 %v4863_v58, %v4883_v18  ;;  %v4884_v10 = vmul.f32 0.03125, %v4876_v36 }
0x15ec   :  { %v4879_v20 = vpop.xlane.xlu1 %4878 }
0x15ed   :  { %v4888_v53 = vsub.f32 %v4864_v38, %v4884_v10  ;;  %v4885_v56 = vmul.f32 0.03125, %v4879_v20  ;;  %v4891_v42 = vmul.f32 %v4887_v13, %v4887_v13 }
0x15ee   :  { %v4882_v1 = vpop.xlane.xlu0 %4881 }
0x15ef   :  { %v4889_v23 = vsub.f32 %v4865_v48, %v4885_v56  ;;  %v4886_v2 = vmul.f32 0.03125, %v4882_v1  ;;  %v4895_v60 = vsel %vm237_vm6, %v4891_v42, 0.0  ;;  %v4892_v54 = vmul.f32 %v4888_v53, %v4888_v53 }
0x15f0   :  { %4896 = vadd.xlane.f32.xlu1 %v4895_v60  ;;  %v7135_v60 = vld [vmem:[%s9125_s16] sm:$0xff]  }
0x15f1   :  { %v4890_v3 = vsub.f32 %v4866_v51, %v4886_v2  ;;  %v4898_v21 = vsel %vm237_vm6, %v4892_v54, 0.0  ;;  %v4893_v55 = vmul.f32 %v4889_v23, %v4889_v23  ;;  %v7134_v2 = vld [vmem:[%s9125_s16 + $0x40] sm:$0xff]  }
0x15f2   :  { %4899 = vadd.xlane.f32.xlu0 %v4898_v21  ;;  %v7136_v54 = vld [vmem:[%s9125_s16 + $0xc0] sm:$0xff]   ;;  %v7138_v21 = vld [vmem:[%s9125_s16 + $0x48] sm:$0xff]   ;;  %6375 = vmatprep.subr.bf16.mxu1 %v7134_v2  ;;  %v7159_v2 = vld [vmem:[%s9125_s16 + $0x30] sm:$0xff]  }
0x15f3   :  { %v4901_v41 = vsel %vm237_vm6, %v4893_v55, 0.0  ;;  %v4894_v5 = vmul.f32 %v4890_v3, %v4890_v3  ;;  %6397 = vmatprep.subr.bf16.mxu0 %v7136_v54  ;;  %v7140_v55 = vld [vmem:[%s9125_s16 + $0xc8] sm:$0xff]   ;;  %6376 = vmatpush3.bf16.msra.mxu1 %v7135_v60 }
0x15f4   :  { %4902 = vadd.xlane.f32.xlu1 %v4901_v41  ;;  %v7139_v41 = vld [vmem:[%s9125_s16 + $0x8] sm:$0xff]   ;;  %6377 = vmatprep.subr.bf16.mxu1 %v7138_v21 }
0x15f5   :  { %v4904_v34 = vsel %vm237_vm6, %v4894_v5, 0.0  ;;  %v7141_v5 = vld [vmem:[%s9125_s16 + $0x88] sm:$0xff]  }
0x15f6   :  { %4905 = vadd.xlane.f32.xlu0 %v4904_v34  ;;  %v7142_v34 = vld [vmem:[%s9125_s16 + $0x50] sm:$0xff]  }
0x15f7   :  { %6378 = vmatpush3.bf16.msra.mxu1 %v7139_v41  ;;  %v7162_v41 = vld [vmem:[%s9125_s16 + $0x78] sm:$0xff]  }
0x15f8   :  { %6379 = vmatprep.subr.bf16.mxu1 %v7142_v34 }
0x167d   :  { %v4897_v50 = vpop.xlane.xlu1 %4896 }
0x167e   :  { %v4907_v4 = vmul.f32 0.03125, %v4897_v50  ;;  %v7144_v50 = vld [vmem:[%s9125_s16 + $0xd0] sm:$0xff]  }
0x167f   :  { %v4900_v16 = vpop.xlane.xlu0 %4899 }
0x1680   :  { %v4911_v63 = vadd.f32 1e-05, %v4907_v4  ;;  %v4908_v19 = vmul.f32 0.03125, %v4900_v16  ;;  %v7143_v4 = vld [vmem:[%s9125_s16 + $0x10] sm:$0xff]  }
0x1681   :  { %v4903_v35 = vpop.xlane.xlu1 %4902  ;;  %v7145_v16 = vld [vmem:[%s9125_s16 + $0x90] sm:$0xff]   ;;  %6380 = vmatpush3.bf16.msra.mxu1 %v7143_v4 }
0x1682   :  { %7356 = vrsqrt.f32 %v4911_v63  ;;  %v4912_v12 = vadd.f32 1e-05, %v4908_v19  ;;  %v4909_v46 = vmul.f32 0.03125, %v4903_v35  ;;  %v7146_v63 = vld [vmem:[%s9125_s16 + $0x58] sm:$0xff]  }
0x1683   :  { %v4906_v40 = vpop.xlane.xlu0 %4905  ;;  %v7148_v19 = vld [vmem:[%s9125_s16 + $0xd8] sm:$0xff]   ;;  %6381 = vmatprep.subr.bf16.mxu1 %v7146_v63 }
0x1684   :  { %7358 = vrsqrt.f32 %v4912_v12  ;;  %v4913_v0 = vadd.f32 1e-05, %v4909_v46  ;;  %v4910_v22 = vmul.f32 0.03125, %v4906_v40  ;;  %v7147_v35 = vld [vmem:[%s9125_s16 + $0x18] sm:$0xff]   ;;  %v7150_v46 = vld [vmem:[%s9125_s16 + $0x60] sm:$0xff]  }
0x1685   :  { %v7149_v12 = vld [vmem:[%s9125_s16 + $0x98] sm:$0xff]   ;;  %6382 = vmatpush3.bf16.msra.mxu1 %v7147_v35  ;;  %v7151_v40 = vld [vmem:[%s9125_s16 + $0x20] sm:$0xff]  }
0x1686   :  { %7360 = vrsqrt.f32 %v4913_v0  ;;  %v4914_v47 = vadd.f32 1e-05, %v4910_v22  ;;  %6383 = vmatprep.subr.bf16.mxu1 %v7150_v46  ;;  %v7163_v46 = vld [vmem:[%s9125_s16 + $0x38] sm:$0xff]  }
0x1688   :  { %7362 = vrsqrt.f32 %v4914_v47 }
0x1689   :  { %6384 = vmatpush3.bf16.msra.mxu1 %v7151_v40 }
0x168c   :  { %v7357_v26 = vpop.eup %7356 }
0x168d   :  { %v4919_v7 = vmul.f32 %v7357_v26, %v4887_v13 }
0x168e   :  { %v7359_v29 = vpop.eup %7358 }
0x168f   :  { %v4929_v9 = vmul.f32 %v6121_v61, %v4919_v7  ;;  %v4920_v24 = vmul.f32 %v7359_v29, %v4888_v53 }
0x1690   :  { %v7361_v11 = vpop.eup %7360 }
0x1691   :  { %v4939_v31 = vadd.f32 %v6122_v43, %v4929_v9  ;;  %v4930_v37 = vmul.f32 %v6121_v61, %v4920_v24  ;;  %v4921_v39 = vmul.f32 %v7361_v11, %v4889_v23 }
0x1692   :  { %v7363_v27 = vpop.eup %7362 }
0x1693   :  { %v4945_v52 = vsel %vm237_vm6, %v4939_v31, 0.0  ;;  %v4940_v33 = vadd.f32 %v6122_v43, %v4930_v37  ;;  %v4931_v62 = vmul.f32 %v6121_v61, %v4921_v39  ;;  %v4922_v30 = vmul.f32 %v7363_v27, %v4890_v3  ;;  %v7137_v3 = vld [vmem:[%s9125_s16 + $0x80] sm:$0xff]  }
0x1694   :  { %4946 = vadd.xlane.f32.xlu1 %v4945_v52  ;;  %6398 = vmatpush3.bf16.msra.mxu0 %v7137_v3  ;;  %v6123_v39 = vld [vmem:[%s9123_s14] ss:$0 sm:$0xff] }
0x1695   :  { %v4948_v25 = vsel %vm237_vm6, %v4940_v33, 0.0  ;;  %v4941_v17 = vadd.f32 %v6122_v43, %v4931_v62  ;;  %v4932_v32 = vmul.f32 %v6121_v61, %v4922_v30  ;;  %6399 = vmatprep.subr.bf16.mxu0 %v7140_v55  ;;  %v7160_v55 = vld [vmem:[%s9125_s16 + $0xf0] sm:$0xff]  }
0x1696   :  { %4949 = vadd.xlane.f32.xlu0 %v4948_v25  ;;  %v7152_v25 = vld [vmem:[%s9125_s16 + $0xe0] sm:$0xff]  }
0x1697   :  { %v4951_v14 = vsel %vm237_vm6, %v4941_v17, 0.0  ;;  %v4942_v28 = vadd.f32 %v6122_v43, %v4932_v32  ;;  %v7154_v32 = vld [vmem:[%s9125_s16 + $0x68] sm:$0xff]  }
0x1698   :  { %4952 = vadd.xlane.f32.xlu1 %v4951_v14  ;;  %6400 = vmatpush3.bf16.msra.mxu0 %v7141_v5 }
0x1699   :  { %v4954_v58 = vsel %vm237_vm6, %v4942_v28, 0.0  ;;  %6401 = vmatprep.subr.bf16.mxu0 %v7144_v50  ;;  %6385 = vmatprep.subr.bf16.mxu1 %v7154_v32 }
0x169a   :  { %4955 = vadd.xlane.f32.xlu0 %v4954_v58 }
0x169c   :  { %6402 = vmatpush3.bf16.msra.mxu0 %v7145_v16 }
0x169d   :  { %6403 = vmatprep.subr.bf16.mxu0 %v7148_v19 }
0x16a0   :  { %6404 = vmatpush3.bf16.msra.mxu0 %v7149_v12  ;;  %v7161_v12 = vld [vmem:[%s9125_s16 + $0xb0] sm:$0xff]  }
0x16a1   :  { %6405 = vmatprep.subr.bf16.mxu0 %v7152_v25 }
0x1721   :  { %v4947_v8 = vpop.xlane.xlu1 %4946 }
0x1722   :  { %v4957_v44 = vmul.f32 0.03125, %v4947_v8 }
0x1723   :  { %v4950_v48 = vpop.xlane.xlu0 %4949 }
0x1724   :  { %v8749_v38 = vsub.f32 %v4939_v31, %v4957_v44  ;;  %v4958_v45 = vmul.f32 0.03125, %v4950_v48 }
0x1725   :  { %v4953_v51 = vpop.xlane.xlu1 %4952 }
0x1726   :  { %v8751_v49 = vsub.f32 %v4940_v33, %v4958_v45  ;;  %v4959_v57 = vmul.f32 0.03125, %v4953_v51  ;;  %v4965_v6 = vmul.f32 %v8749_v38, %v8749_v38  ;;  %v6124_v33 = vld [vmem:[%s9124_s15] ss:$0 sm:$0xff] }
0x1727   :  { %v4956_v59 = vpop.xlane.xlu0 %4955 }
0x1728   :  { %v8755_v18 = vsub.f32 %v4941_v17, %v4959_v57  ;;  %v4960_v36 = vmul.f32 0.03125, %v4956_v59  ;;  %v4969_v13 = vsel %vm237_vm6, %v4965_v6, 0.0  ;;  %v4966_v10 = vmul.f32 %v8751_v49, %v8751_v49  ;;  %v7153_v17 = vld [vmem:[%s9125_s16 + $0xa0] sm:$0xff]  }
0x1729   :  { %4970 = vadd.xlane.f32.xlu1 %v4969_v13  ;;  %6406 = vmatpush3.bf16.msra.mxu0 %v7153_v17 }
0x172a   :  { %v8760_v20 = vsub.f32 %v4942_v28, %v4960_v36  ;;  %v4972_v53 = vsel %vm237_vm6, %v4966_v10, 0.0  ;;  %v4967_v56 = vmul.f32 %v8755_v18, %v8755_v18  ;;  %v7155_v28 = vld [vmem:[%s9125_s16 + $0x28] sm:$0xff]  }
0x172b   :  { %4973 = vadd.xlane.f32.xlu0 %v4972_v53  ;;  %6386 = vmatpush3.bf16.msra.mxu1 %v7155_v28  ;;  %v7156_v10 = vld [vmem:[%s9125_s16 + $0xe8] sm:$0xff]   ;;  %v7158_v53 = vld [vmem:[%s9125_s16 + $0x70] sm:$0xff]  }
0x172c   :  { %v4975_v42 = vsel %vm237_vm6, %v4967_v56, 0.0  ;;  %v4968_v1 = vmul.f32 %v8760_v20, %v8760_v20  ;;  %6407 = vmatprep.subr.bf16.mxu0 %v7156_v10  ;;  %6387 = vmatprep.subr.bf16.mxu1 %v7158_v53 }
0x172d   :  { %4976 = vadd.xlane.f32.xlu1 %v4975_v42 }
0x172e   :  { %v4978_v23 = vsel %vm237_vm6, %v4968_v1, 0.0 }
0x172f   :  { %4979 = vadd.xlane.f32.xlu0 %v4978_v23  ;;  %6388 = vmatpush3.bf16.msra.mxu1 %v7159_v2 }
0x1730   :  { %6389 = vmatprep.subr.bf16.mxu1 %v7162_v41 }
0x1733   :  { %6390 = vmatpush3.bf16.msra.mxu1 %v7163_v46 }
0x17b6   :  { %v4971_v0 = vpop.xlane.xlu1 %4970 }
0x17b7   :  { %v4981_v22 = vmul.f32 0.03125, %v4971_v0 }
0x17b8   :  { %v4974_v47 = vpop.xlane.xlu0 %4973 }
0x17b9   :  { %v4985_v26 = vadd.f32 1e-05, %v4981_v22  ;;  %v4982_v61 = vmul.f32 0.03125, %v4974_v47 }
0x17ba   :  { %v4977_v7 = vpop.xlane.xlu1 %4976 }
0x17bb   :  { %7364 = vrsqrt.f32 %v4985_v26  ;;  %v4986_v29 = vadd.f32 1e-05, %v4982_v61  ;;  %v4983_v43 = vmul.f32 0.03125, %v4977_v7 }
0x17bc   :  { %v4980_v9 = vpop.xlane.xlu0 %4979 }
0x17bd   :  { %7366 = vrsqrt.f32 %v4986_v29  ;;  %v4987_v24 = vadd.f32 1e-05, %v4983_v43  ;;  %v4984_v11 = vmul.f32 0.03125, %v4980_v9 }
0x17bf   :  { %7368 = vrsqrt.f32 %v4987_v24  ;;  %v4988_v31 = vadd.f32 1e-05, %v4984_v11 }
0x17c1   :  { %7370 = vrsqrt.f32 %v4988_v31 }
0x17c5   :  { %v7365_v37 = vpop.eup %7364 }
0x17c6   :  { %v4993_v27 = vmul.f32 %v7365_v37, %v8749_v38 }
0x17c7   :  { %v7367_v52 = vpop.eup %7366 }
0x17c8   :  { %v5003_v62 = vmul.f32 %v6123_v39, %v4993_v27  ;;  %v4994_v30 = vmul.f32 %v7367_v52, %v8751_v49 }
0x17c9   :  { %v7369_v14 = vpop.eup %7368 }
0x17ca   :  { %v8843_v58 = vadd.f32 %v6124_v33, %v5003_v62  ;;  %v5004_v8 = vmul.f32 %v6123_v39, %v4994_v30  ;;  %v4995_v44 = vmul.f32 %v7369_v14, %v8755_v18 }
0x17cb   :  { %v7371_v48 = vpop.eup %7370 }
0x17cc   :  { %v8846_v38 = vadd.f32 %v6124_v33, %v5004_v8  ;;  %v5005_v45 = vmul.f32 %v6123_v39, %v4995_v44  ;;  %v4996_v51 = vmul.f32 %v7371_v48, %v8760_v20  ;;  %v5066_v49 = vrot.slane %v8843_v58, 5  ;;  %v7157_v20 = vld [vmem:[%s9125_s16 + $0xa8] sm:$0xff]  }
0x17cd   :  { %v5031_v57 = vrot.slane %v8843_v58, 1  ;;  %v5076_v6 = vrot.slane %v8843_v58, 6  ;;  %v5086_v42 = vrot.slane %v8843_v58, 7  ;;  %6408 = vmatpush3.bf16.msra.mxu0 %v7157_v20  ;;  %v5040_v0 = vrot.slane %v8843_v58, 2 }
0x17ce   :  { %v8852_v59 = vadd.f32 %v6124_v33, %v5005_v45  ;;  %v5006_v18 = vmul.f32 %v6123_v39, %v4996_v51  ;;  %v5067_v36 = vrot.slane %v8846_v38, 4  ;;  %v5077_v13 = vrot.slane %v8846_v38, 5  ;;  %6409 = vmatprep.subr.bf16.mxu0 %v7160_v55  ;;  %v7164_v45 = vld [vmem:[%s9125_s16 + $0xf8] sm:$0xff]  }
0x17cf   :  { %v5032_v56 = vsel %vm5022_vm13, %v8846_v38, %v5031_v57  ;;  %v5087_v1 = vrot.slane %v8846_v38, 6  ;;  %v5041_v23 = vrot.slane %v8846_v38, 1  ;;  %v5049_v43 = vrot.slane %v8843_v58, 3  ;;  %v7165_v51 = vld [vmem:[%s9125_s16 + $0xb8] sm:$0xff]   ;;  %v7168_v57 = vld [vmem:[%s9125_s16 + $0x1c0] sm:$0xff]  }
0x17d0   :  { %v8873_v60 = vadd.f32 %v6124_v33, %v5006_v18  ;;  %v5068_v54 = vsel %vm5022_vm13, %v5067_v36, %v5066_v49  ;;  %v5069_v3 = vrot.slane %v8852_v59, 3  ;;  %v5033_v21 = vrot.slane %v8852_v59, 7 }
0x17d1   :  { %v5078_v5 = vsel %vm5022_vm13, %v5077_v13, %v5076_v6  ;;  %v5079_v34 = vrot.slane %v8852_v59, 4  ;;  %v5088_v50 = vsel %vm5022_vm13, %v5087_v1, %v5086_v42  ;;  %v5089_v4 = vrot.slane %v8852_v59, 5  ;;  %6410 = vmatpush3.bf16.msra.mxu0 %v7161_v12  ;;  %v7172_v12 = vld [vmem:[%s9125_s16 + $0x1c8] sm:$0xff]  }
0x17d2   :  { %v5070_v16 = vsel %vm5025_vm14, %v5069_v3, %v5068_v54  ;;  %v5071_v63 = vrot.slane %v8873_v60, 2  ;;  %v5034_v19 = vsel %vm5025_vm14, %v5033_v21, %v5032_v56  ;;  %v5035_v35 = vrot.slane %v8873_v60, 6  ;;  %6411 = vmatprep.subr.bf16.mxu0 %v7164_v45 }
0x17d3   :  { %v5081_v40 = vrot.slane %v8873_v60, 3  ;;  %v5080_v26 = vsel %vm5025_vm14, %v5079_v34, %v5078_v5  ;;  %v5091_v61 = vrot.slane %v8873_v60, 4  ;;  %v5090_v7 = vsel %vm5025_vm14, %v5089_v4, %v5088_v50  ;;  %v7167_v5 = vld [vmem:[%s9125_s16 + $0x100] sm:$0xff]  }
0x17d4   :  { %v5072_v22 = vsel %vm5028_vm15, %v5071_v63, %v5070_v16  ;;  %v5036_v47 = vsel %vm5028_vm15, %v5035_v35, %v5034_v19  ;;  %v5042_v29 = vsel %vm5022_vm13, %v5041_v23, %v5040_v0  ;;  %v5044_v9 = vrot.slane %v8873_v60, 7  ;;  %v7170_v16 = vld [vmem:[%s9125_s16 + $0x148] sm:$0xff]   ;;  %v7169_v19 = vld [vmem:[%s9125_s16 + $0x180] sm:$0xff]   ;;  %v7174_v0 = vld [vmem:[%s9125_s16 + $0x150] sm:$0xff]  }
0x17d5   :  { %5073 = vrot.lane.b32.xlu1 %v5072_v22, %s7407_s23  ;;  %5037 = vrot.lane.b32.xlu0 %v5036_v47, %s7407_s23  ;;  %v5050_v24 = vrot.slane %v8846_v38, 2  ;;  %v5058_v11 = vrot.slane %v8843_v58, 4  ;;  %v5059_v31 = vrot.slane %v8846_v38, 3  ;;  %v5082_v37 = vsel %vm5028_vm15, %v5081_v40, %v5080_v26  ;;  %v7171_v40 = vld [vmem:[%s9125_s16 + $0x108] sm:$0xff]   ;;  %v7176_v47 = vld [vmem:[%s9125_s16 + $0x1d0] sm:$0xff]  }
0x17d6   :  { %v5063_v39 = vrot.slane %v8873_v60, 1  ;;  %v5061_v27 = vrot.slane %v8852_v59, 2  ;;  %v5021_v52 = vrot.slane %v8846_v38, 7  ;;  %v5092_v33 = vsel %vm5028_vm15, %v5091_v61, %v5090_v7  ;;  %6412 = vmatpush3.bf16.msra.mxu0 %v7165_v51  ;;  %v7173_v22 = vld [vmem:[%s9125_s16 + $0x188] sm:$0xff]   ;;  %v7175_v26 = vld [vmem:[%s9125_s16 + $0x110] sm:$0xff]   ;;  %v7178_v61 = vld [vmem:[%s9125_s16 + $0x158] sm:$0xff]  }
0x17d7   :  { %v5060_v62 = vsel %vm5022_vm13, %v5059_v31, %v5058_v11  ;;  %v5027_v30 = vrot.slane %v8873_v60, 5  ;;  %v5024_v25 = vrot.slane %v8852_v59, 6  ;;  %v5052_v17 = vrot.slane %v8852_v59, 1  ;;  %6441 = vmatprep.subr.bf16.mxu0 %v7168_v57  ;;  %v7177_v7 = vld [vmem:[%s9125_s16 + $0x190] sm:$0xff]   ;;  %v7184_v11 = vld [vmem:[%s9125_s16 + $0x1e0] sm:$0xff]  }
0x17d8   :  { %v5062_v32 = vsel %vm5025_vm14, %v5061_v27, %v5060_v62  ;;  %v5023_v14 = vsel %vm5022_vm13, %v5021_v52, %v8843_v58  ;;  %v5051_v28 = vsel %vm5022_vm13, %v5050_v24, %v5049_v43  ;;  %v5043_v48 = vsel %vm5025_vm14, %v8852_v59, %v5042_v29  ;;  %v7166_v58 = vld [vmem:[%s9125_s16 + $0x140] sm:$0xff]   ;;  %v7180_v29 = vld [vmem:[%s9125_s16 + $0x1d8] sm:$0xff]   ;;  %v7188_v27 = vld [vmem:[%s9125_s16 + $0x1e8] sm:$0xff]  }
0x17d9   :  { %5083 = vrot.lane.b32.xlu1 %v5082_v37, %s9164_s30  ;;  %5093 = vrot.lane.b32.xlu0 %v5092_v33, %s9163_s28  ;;  %v5064_v8 = vsel %vm5028_vm15, %v5063_v39, %v5062_v32  ;;  %v5026_v44 = vsel %vm5025_vm14, %v5024_v25, %v5023_v14  ;;  %v5045_v49 = vsel %vm5028_vm15, %v5044_v9, %v5043_v48  ;;  %v7179_v43 = vld [vmem:[%s9125_s16 + $0x118] sm:$0xff]   ;;  %v7182_v9 = vld [vmem:[%s9125_s16 + $0x160] sm:$0xff]  }
0x17da   :  { %v5029_v38 = vsel %vm5028_vm15, %v5027_v30, %v5026_v44  ;;  %v5053_v6 = vsel %vm5025_vm14, %v5052_v17, %v5051_v28  ;;  %6419 = vmatprep.subr.bf16.mxu1 %v7166_v58  ;;  %v7181_v24 = vld [vmem:[%s9125_s16 + $0x198] sm:$0xff]   ;;  %v7183_v31 = vld [vmem:[%s9125_s16 + $0x120] sm:$0xff]   ;;  %v7186_v37 = vld [vmem:[%s9125_s16 + $0x168] sm:$0xff]  }
0x17db   :  { %v5054_v59 = vsel %vm5028_vm15, %v8873_v60, %v5053_v6  ;;  %v7185_v39 = vld [vmem:[%s9125_s16 + $0x1a0] sm:$0xff]   ;;  %v7187_v52 = vld [vmem:[%s9125_s16 + $0x128] sm:$0xff]   ;;  %v7190_v33 = vld [vmem:[%s9125_s16 + $0x170] sm:$0xff]  }
0x17dc   :  { %v7189_v62 = vld [vmem:[%s9125_s16 + $0x1a8] sm:$0xff]   ;;  %v7192_v30 = vld [vmem:[%s9125_s16 + $0x1f0] sm:$0xff]   ;;  %v7194_v32 = vld [vmem:[%s9125_s16 + $0x178] sm:$0xff]  }
0x17dd   :  { %5046 = vrot.lane.b32.xlu1 %v5045_v49, %s9164_s30  ;;  %v7191_v25 = vld [vmem:[%s9125_s16 + $0x130] sm:$0xff]   ;;  %v7196_v28 = vld [vmem:[%s9125_s16 + $0x1f8] sm:$0xff]   ;;  %v7198_v58 = vld [vmem:[%s9127_s18] sm:$0xff]  }
0x17de   :  { %v7193_v14 = vld [vmem:[%s9125_s16 + $0x1b0] sm:$0xff]   ;;  %v7197_v48 = vld [vmem:[%s9125_s16 + $0x1b8] sm:$0xff]   ;;  %v7199_v49 = vld [vmem:[%s9127_s18 + $0x8] sm:$0xff]  }
0x17df   :  { %v7200_v57 = vld [vmem:[%s9127_s18 + $0x10] sm:$0xff]   ;;  %v7201_v6 = vld [vmem:[%s9127_s18 + $0x18] sm:$0xff]  }
0x17e1   :  { %5055 = vrot.lane.b32.xlu1 %v5054_v59, %s9163_s28 }
0x1847   :  { %v5074_v18 = vpop.permute.xlu1 %5073  ;;  %v5038_v36 = vpop.permute.xlu0 %5037 }
0x1848   :  { %v5100_v13 = vsel %vm237_vm6, %v5064_v8, %v5074_v18  ;;  %v5096_v60 = vsel %vm237_vm6, %v5029_v38, %v5038_v36  ;;  %v7195_v8 = vld [vmem:[%s9125_s16 + $0x138] sm:$0xff]   ;;  %v6125_v18 = vld [vmem:[%s9126_s17] ss:$0 sm:$0xff] }
0x184b   :  { %v5084_v10 = vpop.permute.xlu1 %5083  ;;  %v5094_v20 = vpop.permute.xlu0 %5093 }
0x184c   :  { %v5101_v53 = vsel %vm2441_vm12, %v5100_v13, %v5084_v10 }
0x184d   :  { %v5102_v56 = vsel %vm5098_vm0, %v5101_v53, %v5094_v20 }
0x184e   :  { %v5106_v42 = vrot.slane %v5102_v56, 2  ;;  %v5116_v1 = vpack.c.bf16 %v5102_v56, %v5102_v56 }
0x184f   :  { %v5047_v23 = vpop.permute.xlu1 %5046 }
0x1850   :  { %5674 = vmatprep.mubr.bf16.mxu1 %v5116_v1  ;;  %v5118_v2 = vpack.c.bf16 %v5106_v42, %v5106_v42  ;;  %v5110_v54 = vsub.f32 %v5102_v56, %v5106_v42  ;;  %v5097_v21 = vsel %vm2441_vm12, %v5096_v60, %v5047_v23  ;;  %v5114_v34 = vmul.f32 %v5106_v42, %v5102_v56 }
0x1852   :  { %5714 = vmatprep.mubr.bf16.mxu0 %v5118_v2  ;;  %v5112_v3 = vand.u32 2147483647, %v5110_v54  ;;  %v5122_v46 = vpack.c.bf16 %v5114_v34, %v5114_v34 }
0x1853   :  { %v5056_v55 = vpop.permute.xlu1 %5055 }
0x1854   :  { %v8955_v41 = vsel %vm5098_vm0, %v5097_v21, %v5056_v55  ;;  %v5120_v63 = vpack.c.bf16 %v5112_v3, %v5112_v3 }
0x1855   :  { %v8961_v50 = vrot.slane %v8955_v41, 2  ;;  %v5115_v4 = vpack.c.bf16 %v8955_v41, %v8955_v41 }
0x1857   :  { %5675 = vmatmul.mubr.bf16.vlgmr.msra.gmra.mrb[144].mxu1 %v5115_v4  ;;  %v5117_v35 = vpack.c.bf16 %v8961_v50, %v8961_v50  ;;  %v5109_v17 = vsub.f32 %v8955_v41, %v8961_v50  ;;  %v5113_v38 = vmul.f32 %v8961_v50, %v8955_v41 }
0x1858   :  { %6420 = vmatpush3.bf16.msra.mxu1 %v7167_v5  ;;  %5754 = vmatprep.mubr.bf16.mxu1 %v5120_v63 }
0x1859   :  { %5715 = vmatmul.mubr.bf16.vlgmr.msra.gmra.mrb[148].mxu0 %v5117_v35  ;;  %6421 = vmatprep.subr.bf16.mxu1 %v7170_v16  ;;  %v5111_v44 = vand.u32 2147483647, %v5109_v17  ;;  %v5121_v51 = vpack.c.bf16 %v5113_v38, %v5113_v38 }
0x185a   :  { %6442 = vmatpush3.bf16.msra.mxu0 %v7169_v19  ;;  %5794 = vmatprep.mubr.bf16.mxu0 %v5122_v46  ;;  %v7202_v46 = vld [vmem:[%s9129_s20] sm:$0xff]  }
0x185b   :  { %6443 = vmatprep.subr.bf16.mxu0 %v7172_v12  ;;  %v5119_v45 = vpack.c.bf16 %v5111_v44, %v5111_v44 }
0x185c   :  { %6422 = vmatpush3.bf16.msra.mxu1 %v7171_v40  ;;  %v7203_v40 = vld [vmem:[%s9129_s20 + $0x8] sm:$0xff]   ;;  %s7408_s20 = smov [#allocation2]  }
0x185d   :  { %6423 = vmatprep.subr.bf16.mxu1 %v7174_v0  ;;  %v6190_v0 = vld [vmem:[%s9128_s19] ss:$0 sm:$0xff]  ;;  %s5962_s7 = sshll.u32 %s7408_s20, 4  ;;  %s5963_s7 = int_to_ptr.vmem [resolvable:$true] %s5962_s7 }
0x185e   :  { %6444 = vmatpush3.bf16.msra.mxu0 %v7173_v22  ;;  %s7372_s19 = scalar_lea.vmem %s5963_s7, 32  ;;  %p7377_p1 = scmp.lt.s32.totalorder %s5963_s7, %s5963_s7 }
0x185f   :  { %6445 = vmatprep.subr.bf16.mxu0 %v7176_v47  ;;  %p7373_p0 = scmp.ne.s32.totalorder %s5963_s7, %s7372_s19  ;;  %p7378_p2 = scmp.lt.s32.totalorder %s7372_s19, %s7372_s19 }
0x1860   :  { %6424 = vmatpush3.bf16.msra.mxu1 %v7175_v26 }
0x1861   :  { %6425 = vmatprep.subr.bf16.mxu1 %v7178_v61  ;;  %p7379_p3 = por %p7378_p2, %p7377_p1 }
0x1862   :  { %6446 = vmatpush3.bf16.msra.mxu0 %v7177_v7 }
0x1863   :  { %6447 = vmatprep.subr.bf16.mxu0 %v7180_v29  ;;  %p7380_p4 = pnand %p7379_p3, %p7373_p0 }
0x1864   :  { %6426 = vmatpush3.bf16.msra.mxu1 %v7179_v43 }
0x1865   :  { %6427 = vmatprep.subr.bf16.mxu1 %v7182_v9  ;;  %v6196_v9 = vld [vmem:[%s9130_s21] ss:$0 sm:$0xff] }
0x1866   :  { %6448 = vmatpush3.bf16.msra.mxu0 %v7181_v24 }
0x1867   :  { %6449 = vmatprep.subr.bf16.mxu0 %v7184_v11 }
0x1868   :  { %6428 = vmatpush3.bf16.msra.mxu1 %v7183_v31 }
0x1869   :  { %6429 = vmatprep.subr.bf16.mxu1 %v7186_v37 }
0x186a   :  { %6450 = vmatpush3.bf16.msra.mxu0 %v7185_v39 }
0x186b   :  { %6451 = vmatprep.subr.bf16.mxu0 %v7188_v27 }
0x186c   :  { %6430 = vmatpush3.bf16.msra.mxu1 %v7187_v52 }
0x186d   :  { %6431 = vmatprep.subr.bf16.mxu1 %v7190_v33 }
0x186e   :  { %6452 = vmatpush3.bf16.msra.mxu0 %v7189_v62 }
0x186f   :  { %6453 = vmatprep.subr.bf16.mxu0 %v7192_v30 }
0x1870   :  { %6432 = vmatpush3.bf16.msra.mxu1 %v7191_v25 }
0x1871   :  { %6433 = vmatprep.subr.bf16.mxu1 %v7194_v32 }
0x1872   :  { %6454 = vmatpush3.bf16.msra.mxu0 %v7193_v14 }
0x1873   :  { %6455 = vmatprep.subr.bf16.mxu0 %v7196_v28 }
0x1874   :  { %6434 = vmatpush3.bf16.msra.mxu1 %v7195_v8 }
0x1875   :  { %6947 = vmatprep.subr.bf16.mxu1 %v7397_v15 }
0x1876   :  { %6456 = vmatpush3.bf16.msra.mxu0 %v7197_v48 }
0x1877   :  { %5755 = vmatmul.mubr.bf16.vlgmr.msra.gmra.mrb[148].mxu1 %v5119_v45  ;;  %6959 = vmatprep.subr.bf16.mxu0 %v7397_v15 }
0x1878   :  { %6955 = vmatprep.mubr.msk.bf16.mxu1 %vm7400_vm7, %v7397_v15  ;;  %6948 = vmatpush3.bf16.msra.mxu1 %v7198_v58 }
0x1879   :  { %5795 = vmatmul.mubr.bf16.vlgmr.msra.gmra.mrb[152].mxu0 %v5121_v51  ;;  %6949 = vmatprep.subr.bf16.mxu1 %v7397_v15 }
0x187a   :  { %6963 = vmatprep.mubr.msk.bf16.mxu0 %vm7400_vm7, %v7397_v15  ;;  %6960 = vmatpush3.bf16.msra.mxu0 %v7202_v46 }
0x187b   :  { %6961 = vmatprep.subr.bf16.mxu0 %v7397_v15 }
0x187c   :  { %6950 = vmatpush3.bf16.msra.mxu1 %v7199_v49 }
0x187d   :  { %6951 = vmatprep.subr.bf16.mxu1 %v7397_v15 }
0x187e   :  { %6962 = vmatpush3.bf16.msra.mxu0 %v7203_v40 }
0x1880   :  { %6952 = vmatpush3.bf16.msra.mxu1 %v7200_v57 }
0x1881   :  { %6953 = vmatprep.subr.bf16.mxu1 %v7397_v15 }
0x1884   :  { %6954 = vmatpush3.bf16.msra.mxu1 %v7201_v6 }
0x192a   :  { %v6391_v59 = vpop.f32.mrb[144].mxu1 }
0x192b   :  { %v6392_v36 = vpop.f32.mrb[145].mxu1 }
0x192c   :  { %v6393_v13 = vadd.f32 %v6392_v36, %v6391_v59  ;;  %v6394_v10 = vpop.f32.mrb[146].mxu1  ;;  %v6413_v20 = vpop.f32.mrb[148].mxu0 }
0x192d   :  { %v6395_v53 = vpop.f32.mrb[147].mxu1  ;;  %v6414_v56 = vpop.f32.mrb[149].mxu0 }
0x192e   :  { %v5677_v42 = vadd.f32 %v6393_v13, %v6125_v18  ;;  %v6415_v1 = vadd.f32 %v6414_v56, %v6413_v20  ;;  %v6416_v23 = vpop.f32.mrb[150].mxu0 }
0x192f   :  { %v6417_v2 = vpop.f32.mrb[151].mxu0 }
0x1930   :  { %v5717_v54 = vadd.f32 %v6415_v1, %v5677_v42 }
0x194a   :  { %v6435_v60 = vpop.f32.mrb[148].mxu1 }
0x194b   :  { %v6436_v3 = vpop.f32.mrb[149].mxu1 }
0x194c   :  { %v6437_v21 = vadd.f32 %v6436_v3, %v6435_v60  ;;  %v6438_v55 = vpop.f32.mrb[150].mxu1  ;;  %v6457_v41 = vpop.f32.mrb[152].mxu0 }
0x194d   :  { %v6439_v5 = vpop.f32.mrb[151].mxu1  ;;  %v6458_v34 = vpop.f32.mrb[153].mxu0 }
0x194e   :  { %v5757_v50 = vadd.f32 %v6437_v21, %v5717_v54  ;;  %v6459_v4 = vadd.f32 %v6458_v34, %v6457_v41  ;;  %v6460_v16 = vpop.f32.mrb[154].mxu0 }
0x194f   :  { %v6461_v63 = vpop.f32.mrb[155].mxu0 }
0x1950   :  { %v5797_v19 = vadd.f32 %v6459_v4, %v5757_v50 }
0x1952   :  { %v5802_v35 = vmax.f32 %v5797_v19, 0.0 }
0x1954   :  { %v5803_v12 = vpack.c.bf16 %v5802_v35, %v5802_v35 }
0x1956   :  { %6956 = vmatmul.mubr.msk.bf16.vlgmr.msra.gmra.mrb[152].mxu1 %vm2441_vm12, %v5803_v12 }
0x1a29   :  { %v5880_v22 = vpop.f32.mrb[152].mxu1 }
0x1a2a   :  { %v5881_v47 = vadd.f32 %v6190_v0, %v5880_v22  ;;  %v6957_v26 = vpop.f32.mrb[153].mxu1 }
0x1a2b   :  { %v5883_v61 = vpop.f32.mrb[154].mxu1 }
0x1a2c   :  { %v5886_v7 = vmax.f32 %v5881_v47, 0.0  ;;  %v6958_v29 = vpop.f32.mrb[155].mxu1 }
0x1a2e   :  { %v5887_v43 = vpack.c.bf16 %v5886_v7, %v5886_v7 }
0x1a30   :  { %6964 = vmatmul.mubr.msk.bf16.vlgmr.msra.gmra.mrb[156].mxu0 %vm237_vm6, %v5887_v43 }
0x1b03   :  { %v5948_v15 = vpop.f32.mrb[156].mxu0 }
0x1b04   :  { %v5949_v24 = vadd.f32 %v6196_v9, %v5948_v15  ;;  %v6965_v11 = vpop.f32.mrb[157].mxu0 }
0x1b05   :  { %v5951_v31 = vpop.f32.mrb[158].mxu0 }
0x1b06   :  { %v6966_v37 = vpop.f32.mrb[159].mxu0  ;;  %5955 = vst.msk [vmem:[#allocation2] sm:$0x3] %vm5954_vm1, %v5949_v24 }
0x1b07   :  { %7383 = shalt.err (!%p7380_p4)
}
0x1b08   :  { %s7384_s21 = scalar_lea.hbm %s9131_s22, 32 }
0x1b09   :  { %p7385_p5 = scmp.ne.s32.totalorder %s9131_s22, %s7384_s21  ;;  %p7388_p6 = scmp.lt.u32.totalorder %s7384_s21, %s9131_s22 }
0x1b0b   :  { %p7390_p7 = pnand %p7388_p6, %p7385_p5 }
0x1b0d   :  { %7393 = shalt.err (!%p7390_p7)
}
0x1b0e   :  { %5965 = dma.vmem_to_hbm [thread:$0]  %s5963_s7, 32, %s9131_s22, [#allocation3]  }
0x1b0f   :  { %7394 = dma.done.wait [#allocation3], 32  }
0x1b10   :  { %7395 = vsyncadd [#allocation3], 4294967264 }
0x1b11   :  { %5969 = vsyncpa [#allocation3], 1 }

</bundles_post_ra>
